<compile_context>
chip_gen: v7x
topology: tpu7x:2x2x1
jax: 0.10.0
libtpu: 0.0.40
codegen_flags: <defaults>
</compile_context>

<pallas_src>
import functools

import jax
import jax.numpy as jnp
from jax import lax
from jax.experimental import pallas as pl
from jax.experimental.pallas import tpu as pltpu

LEAKY_SLOPE = 0.2
BN_EPS = 1e-5
LANE = 128


def _round_up(x, m):
    return (x + m - 1) // m * m


def _tpu_vmem_capacity_bytes():
    try:
        cap = int(pltpu.get_tpu_info().vmem_capacity_bytes)
        if cap > 0:
            return cap
    except Exception:
        pass
    return 64 * 1024 * 1024          # conservative fallback (v7x per-TC VMEM)


_VMEM_CAP = _tpu_vmem_capacity_bytes()
# v5e/v6e (128 MiB VMEM): ~100 MiB scoped limit + bigger row tiles.
# v7x (64 MiB VMEM): ~48 MiB limit, tiles <= 1024 rows.
_VMEM_LIMIT = int(min(max(_VMEM_CAP - 16 * 2**20, 32 * 2**20), 100 * 2**20))
_BN_ROW_TARGET = 2048 if _VMEM_CAP >= 100 * 2**20 else 1024


def _resident_spec(block_shape, index_map, nbytes):
    """BlockSpec for a grid-invariant operand.

    Large operands (real U-Net widths: multi-MiB weights) are single-buffered —
    they are DMA'd once, so double-buffering them only wastes VMEM (critical on
    v7x's 64 MiB).  Small operands keep the default path.
    """
    if nbytes >= (4 << 20):
        try:
            return pl.BlockSpec(block_shape, index_map, pipeline_mode=pl.Buffered(1))
        except TypeError:  # pipeline_mode not supported -> default double buffering
            pass
    return pl.BlockSpec(block_shape, index_map)


# -----------------------------------------------------------------------------
# Pallas kernels
# -----------------------------------------------------------------------------
def _down_up_stats_kernel(xs_ref, wd_ref, bd_ref, wu_ref,
                          y2_ref, psum_ref, pssq_ref, y1p_scr, *,
                          oh, ow, c_in, ic_pad, oc_pad):
    """One batch element: LeakyReLU -> Conv(k4,s2,p1) -> ReLU -> phase-decomposed
    ConvTranspose(k4,s2,p1) + per-image BatchNorm partial statistics.

    xs_ref : (1, OH+1, OW+1, 4*C)  parity-split, 1-px padded input image
    wd_ref : (4, 4*C, ICp)         down weights, one block per 2x2 spatial tap
    bd_ref : (1, ICp)              down bias (f32)
    wu_ref : (4, 4, ICp, OCp)      up weights, [phase, tap]
    y2_ref : (1, 4, OH*OW, OCp)    up-conv output, phase-major (no bias: cancels in BN)
    psum/pssq : (1, 1, OCp)        per-image partial sum / sum-of-squares (f32)
    y1p_scr : (OH+2, OW+2, ICp)    half-res activation with zero border (VMEM only)
    """
    # ---- down path, entirely in VMEM ------------------------------------------------
    xa = xs_ref[0]                                     # (OH+1, OW+1, 4*C)
    xa = jnp.where(xa >= 0, xa, LEAKY_SLOPE * xa)      # LeakyReLU fused into the load
    acc = None
    for a in range(2):                                 # 2x2 spatial taps over parities
        for b in range(2):
            lhs = xa[a:a + oh, b:b + ow, :].reshape(oh * ow, 4 * c_in)
            d = jnp.dot(lhs, wd_ref[a * 2 + b], preferred_element_type=jnp.float32)
            acc = d if acc is None else acc + d
    y1 = jnp.maximum(acc + bd_ref[...], 0.0)           # (OH*OW, ICp) f32, ReLU'd

    # keep y1 resident in VMEM with a 1-pixel zero border (no HBM round trip)
    y1p_scr[...] = jnp.zeros_like(y1p_scr)
    y1p_scr[1:oh + 1, 1:ow + 1, :] = y1.reshape(oh, ow, ic_pad).astype(y1p_scr.dtype)

    # ---- up path: 4 output phases, 4 taps each, straight from the VMEM scratch ------
    slab = {}
    for u in range(3):
        for v in range(3):
            slab[(u, v)] = y1p_scr[u:u + oh, v:v + ow, :].reshape(oh * ow, ic_pad)

    s_acc = jnp.zeros((1, oc_pad), jnp.float32)
    q_acc = jnp.zeros((1, oc_pad), jnp.float32)
    for ph in range(4):                                # phase (r, c) = output pixel parity
        r, c = divmod(ph, 2)
        acc_ph = None
        for t in range(4):                             # taps (dy, dx) in {r-1,r}x{c-1,c}
            sa, sb = divmod(t, 2)
            d = jnp.dot(slab[(r + sa, c + sb)], wu_ref[ph, t],
                        preferred_element_type=jnp.float32)
            acc_ph = d if acc_ph is None else acc_ph + d
        y_out = acc_ph.astype(y2_ref.dtype)
        y2_ref[0, ph] = y_out
        ys = y_out.astype(jnp.float32)                 # stats on the values actually stored
        s_acc = s_acc + jnp.sum(ys, axis=0, keepdims=True)
        q_acc = q_acc + jnp.sum(ys * ys, axis=0, keepdims=True)

    psum_ref[...] = s_acc.reshape(1, 1, oc_pad)
    pssq_ref[...] = q_acc.reshape(1, 1, oc_pad)


def _bn_apply_kernel(y_ref, scale_ref, shift_ref, o_ref):
    """Tiled BatchNorm application: out = y * scale + shift (per channel)."""
    y = y_ref[...].astype(jnp.float32)
    o_ref[...] = (y * scale_ref[...] + shift_ref[...]).astype(o_ref.dtype)


# -----------------------------------------------------------------------------
# JAX wrapper
# -----------------------------------------------------------------------------
@functools.partial(jax.jit, static_argnames=("compute_dtype",))
def unet_innermost_forward(x_nchw, wd, bd, wu, bu, gamma, beta, *,
                           compute_dtype=jnp.float32):
    """Forward of SingleUnetSkipConnectionBlock_R (innermost).  NCHW in / NCHW out.

    wd: (inner_nc, outer_nc, 4, 4) Conv2d weight;          bd: (inner_nc,)
    wu: (inner_nc, outer_nc, 4, 4) ConvTranspose2d weight; bu: (outer_nc,)
    gamma, beta: (outer_nc,) BatchNorm2d affine parameters.
    """
    N, C, H, W = x_nchw.shape
    IC = wd.shape[0]                                   # inner_nc
    OC = wu.shape[1]                                   # outer_nc
    OH, OW = H // 2, W // 2
    ICp = _round_up(IC, LANE)
    OCp = _round_up(OC, LANE)
    cdt = compute_dtype
    csize = jnp.dtype(cdt).itemsize

    # ConvTranspose bias cancels exactly under the training-mode BatchNorm that
    # follows (same output; also avoids adding a large offset before squaring).
    del bu

    # ------- XLA-side layout prep (~1x of x): pad 1px + 2x2 parity split -------------
    x_nhwc = jnp.transpose(x_nchw, (0, 2, 3, 1))
    xpad = jnp.pad(x_nhwc, ((0, 0), (1, 1), (1, 1), (0, 0)))
    x_split = (xpad.reshape(N, OH + 1, 2, OW + 1, 2, C)
                   .transpose(0, 1, 3, 2, 4, 5)
                   .reshape(N, OH + 1, OW + 1, 4 * C)).astype(cdt)

    # Conv2d weight -> one (4*C, ICp) block per spatial tap (a, b) on the parity split:
    # column order inside a block is (p, q, c), matching x_split's channel packing.
    wd_t = jnp.transpose(wd, (2, 3, 1, 0))             # (kh, kw, C, IC)
    w_down = jnp.stack(
        [jnp.concatenate([wd_t[2 * a + p, 2 * b + q]
                          for p in range(2) for q in range(2)], axis=0)
         for a in range(2) for b in range(2)], axis=0)                  # (4, 4C, IC)
    w_down = jnp.pad(w_down, ((0, 0), (0, 0), (0, ICp - IC))).astype(cdt)
    b_down = jnp.pad(bd, (0, ICp - IC)).reshape(1, ICp).astype(jnp.float32)

    # ConvTranspose2d weight -> (phase, tap) blocks.  Output pixel (2oy+r, 2ox+c)
    # reads y1[oy+dy, ox+dx] with dy in {r-1, r}, dx in {c-1, c}; the tap (sa, sb)
    # (sa = dy-r+1) uses kernel element (3-r-2*sa, 3-c-2*sb).
    wu_p = jnp.pad(wu, ((0, ICp - IC), (0, OCp - OC), (0, 0), (0, 0))).astype(cdt)
    w_up = jnp.stack(
        [jnp.stack([wu_p[:, :, 3 - r - 2 * sa, 3 - c - 2 * sb]
                    for sa in range(2) for sb in range(2)], axis=0)
         for r in range(2) for c in range(2)], axis=0)                  # (4, 4, ICp, OCp)

    # ------- pass A: fused down conv + up conv phases + BN partial stats --------------
    kernel_a = functools.partial(_down_up_stats_kernel, oh=OH, ow=OW, c_in=C,
                                 ic_pad=ICp, oc_pad=OCp)
    flops_a = int(2 * N * OH * OW * (16 * C * ICp + 16 * ICp * OCp))
    bytes_a = int(x_split.size * csize + w_down.size * csize + w_up.size * csize
                  + ICp * 4 + N * 4 * OH * OW * OCp * csize + 2 * N * OCp * 4)
    y2_raw, psum, pssq = pl.pallas_call(
        kernel_a,
        grid=(N,),
        in_specs=[
            pl.BlockSpec((1, OH + 1, OW + 1, 4 * C), lambda n: (n, 0, 0, 0)),
            _resident_spec((4, 4 * C, ICp), lambda n: (0, 0, 0), w_down.size * csize),
            pl.BlockSpec((1, ICp), lambda n: (0, 0)),
            _resident_spec((4, 4, ICp, OCp), lambda n: (0, 0, 0, 0), w_up.size * csize),
        ],
        out_specs=(
            pl.BlockSpec((1, 4, OH * OW, OCp), lambda n: (n, 0, 0, 0)),
            pl.BlockSpec((1, 1, OCp), lambda n: (n, 0, 0)),
            pl.BlockSpec((1, 1, OCp), lambda n: (n, 0, 0)),
        ),
        out_shape=(
            jax.ShapeDtypeStruct((N, 4, OH * OW, OCp), cdt),
            jax.ShapeDtypeStruct((N, 1, OCp), jnp.float32),
            jax.ShapeDtypeStruct((N, 1, OCp), jnp.float32),
        ),
        scratch_shapes=[pltpu.VMEM((OH + 2, OW + 2, ICp), cdt)],
        compiler_params=pltpu.CompilerParams(
            dimension_semantics=("parallel",),          # per-image partial stats -> no dep
            vmem_limit_bytes=_VMEM_LIMIT),
        cost_estimate=pl.CostEstimate(flops=flops_a, transcendentals=0,
                                      bytes_accessed=bytes_a),
    )(x_split, w_down, b_down, w_up)

    # ------- training-mode BatchNorm statistics (tiny reduction, done in JAX) ---------
    count = jnp.float32(N * H * W)
    ch_sum = jnp.sum(psum[:, 0, :], axis=0, keepdims=True)              # (1, OCp)
    ch_ssq = jnp.sum(pssq[:, 0, :], axis=0, keepdims=True)
    mean = ch_sum / count
    var = jnp.maximum(ch_ssq / count - mean * mean, 0.0)
    gamma_p = jnp.pad(gamma, (0, OCp - OC)).reshape(1, OCp).astype(jnp.float32)
    beta_p = jnp.pad(beta, (0, OCp - OC)).reshape(1, OCp).astype(jnp.float32)
    scale = gamma_p * lax.rsqrt(var + BN_EPS)
    shift = beta_p - mean * scale

    # ------- pass B: tiled BN application (compute-dtype output) ----------------------
    R = N * 4 * OH * OW
    y2_flat = y2_raw.reshape(R, OCp)                    # contiguous reshape (free)
    R8 = _round_up(R, 8)
    tm_b = min(_BN_ROW_TARGET, R8)
    R_pad = _round_up(R8, tm_b)
    if R_pad != R:
        y2_flat = jnp.pad(y2_flat, ((0, R_pad - R), (0, 0)))
    grid_b = R_pad // tm_b

    y2n_flat = pl.pallas_call(
        _bn_apply_kernel,
        grid=(grid_b,),
        in_specs=[
            pl.BlockSpec((tm_b, OCp), lambda i: (i, 0)),
            pl.BlockSpec((1, OCp), lambda i: (0, 0)),
            pl.BlockSpec((1, OCp), lambda i: (0, 0)),
        ],
        out_specs=pl.BlockSpec((tm_b, OCp), lambda i: (i, 0)),
        out_shape=jax.ShapeDtypeStruct((R_pad, OCp), cdt),
        compiler_params=pltpu.CompilerParams(
            dimension_semantics=("parallel",), vmem_limit_bytes=_VMEM_LIMIT),
        cost_estimate=pl.CostEstimate(
            flops=int(2 * R_pad * OCp), transcendentals=0,
            bytes_accessed=int(2 * R_pad * OCp * csize + 2 * OCp * 4)),
    )(y2_flat, scale, shift)

    # ------- epilogue: phase interleave, channel concat, NCHW -------------------------
    # TODO(synk): fuse this into pass B (write NHWC directly, alias x via
    #             input_output_aliases) to remove these XLA passes.
    y2n = y2n_flat[:R].reshape(N, 4, OH * OW, OCp)[..., :OC]
    y2n = y2n.reshape(N, 2, 2, OH, OW, OC).astype(jnp.float32)
    u_nchw = jnp.transpose(y2n, (0, 5, 3, 1, 4, 2)).reshape(N, OC, H, W)
    return jnp.concatenate([u_nchw, x_nchw.astype(jnp.float32)], axis=1)


# -----------------------------------------------------------------------------
# Pure-JAX reference (lax.conv) to validate the Pallas path
# -----------------------------------------------------------------------------
def reference_forward(x, wd, bd, wu, bu, gamma, beta):
    dn = ('NCHW', 'OIHW', 'NCHW')
    d = jnp.where(x >= 0, x, LEAKY_SLOPE * x)
    d = lax.conv_general_dilated(d, wd, (2, 2), ((1, 1), (1, 1)),
                                 dimension_numbers=dn) + bd[None, :, None, None]
    d = jnp.maximum(d, 0.0)
    wt = jnp.transpose(wu[:, :, ::-1, ::-1], (1, 0, 2, 3))   # (O, I, kh, kw), flipped
    u = lax.conv_general_dilated(d, wt, (1, 1), ((2, 2), (2, 2)),
                                 lhs_dilation=(2, 2),
                                 dimension_numbers=dn) + bu[None, :, None, None]
    mean = jnp.mean(u, axis=(0, 2, 3), keepdims=True)
    var = jnp.mean((u - mean) ** 2, axis=(0, 2, 3), keepdims=True)
    u = gamma[None, :, None, None] * (u - mean) * lax.rsqrt(var + BN_EPS) \
        + beta[None, :, None, None]
    return jnp.concatenate([u, x], axis=1)


# -----------------------------------------------------------------------------
if __name__ == "__main__":
    N, outer_nc, inner_nc, H, W = 2, 4, 8, 16, 16

    key = jax.random.PRNGKey(0)
    ks = jax.random.split(key, 7)
    # PyTorch parameter shapes:
    #   Conv2d:          (inner_nc, outer_nc, 4, 4), bias (inner_nc,)
    #   ConvTranspose2d: (inner_nc, outer_nc, 4, 4), bias (outer_nc,)
    #   BatchNorm2d:     gamma/beta (outer_nc,)
    wd = 0.1 * jax.random.normal(ks[0], (inner_nc, outer_nc, 4, 4), jnp.float32)
    bd = 0.1 * jax.random.normal(ks[1], (inner_nc,), jnp.float32)
    wu = 0.1 * jax.random.normal(ks[2], (inner_nc, outer_nc, 4, 4), jnp.float32)
    bu = 0.1 * jax.random.normal(ks[3], (outer_nc,), jnp.float32)
    gamma = 1.0 + 0.1 * jax.random.normal(ks[4], (outer_nc,), jnp.float32)
    beta = 0.1 * jax.random.normal(ks[5], (outer_nc,), jnp.float32)
    x = jax.random.normal(ks[6], (N, outer_nc, H, W), jnp.float32)

    ref = reference_forward(x, wd, bd, wu, bu, gamma, beta)

    # float32 path: tight check
    out = unet_innermost_forward(x, wd, bd, wu, bu, gamma, beta,
                                 compute_dtype=jnp.float32)
    out = jax.block_until_ready(out)
    assert out.shape == (N, 2 * outer_nc, H, W), out.shape
    err_f32 = float(jnp.max(jnp.abs(out - ref)))
    assert jnp.allclose(out, ref, atol=2e-3, rtol=2e-3), err_f32

    # bfloat16 MXU path (v6e/v7x): same structure, loose tolerance
    out_bf16 = unet_innermost_forward(x, wd, bd, wu, bu, gamma, beta,
                                      compute_dtype=jnp.bfloat16)
    out_bf16 = jax.block_until_ready(out_bf16)
    err_bf16 = float(jnp.max(jnp.abs(out_bf16 - ref)))
    assert jnp.allclose(out_bf16, ref, atol=2e-1, rtol=2e-1), err_bf16

    print("KERNEL_OK")
</pallas_src>

<mosaic_0001>
module attributes {stable_mosaic.version = 11 : i64} {
  func.func @_down_up_stats_kernel(%arg0: i32, %arg1: memref<1x9x9x16xf32, #tpu.memory_space<vmem>>, %arg2: memref<4x16x128xf32, #tpu.memory_space<vmem>>, %arg3: memref<1x128xf32, #tpu.memory_space<vmem>>, %arg4: memref<4x4x128x128xf32, #tpu.memory_space<vmem>>, %arg5: memref<1x4x64x128xf32, #tpu.memory_space<vmem>>, %arg6: memref<1x1x128xf32, #tpu.memory_space<vmem>>, %arg7: memref<1x1x128xf32, #tpu.memory_space<vmem>>, %arg8: memref<10x10x128xf32, #tpu.memory_space<vmem>>) attributes {dimension_semantics = [#tpu.dimension_semantics<parallel>], iteration_bounds = array<i64: 2>, scalar_prefetch = 0 : i64, scratch_operands = 1 : i64, tpu.core_type = #tpu.core_type<tc>, window_params = [{transform_indices = @transform_0, window_bounds = array<i64: 1, 9, 9, 16>}, {pipeline_mode = #tpu.pipeline_mode<synchronous>, transform_indices = @transform_1, window_bounds = array<i64: 4, 16, 128>}, {pipeline_mode = #tpu.pipeline_mode<synchronous>, transform_indices = @transform_2, window_bounds = array<i64: 1, 128>}, {pipeline_mode = #tpu.pipeline_mode<synchronous>, transform_indices = @transform_3, window_bounds = array<i64: 4, 4, 128, 128>}, {transform_indices = @transform_4, window_bounds = array<i64: 1, 4, 64, 128>}, {transform_indices = @transform_5, window_bounds = array<i64: 1, 1, 128>}, {transform_indices = @transform_6, window_bounds = array<i64: 1, 1, 128>}]} {
    %c0 = arith.constant 0 : index
    %c0_0 = arith.constant 0 : index
    %c0_1 = arith.constant 0 : index
    %c0_2 = arith.constant 0 : index
    %0 = vector.load %arg1[%c0, %c0_0, %c0_1, %c0_2] : memref<1x9x9x16xf32, #tpu.memory_space<vmem>>, vector<1x9x9x16xf32>
    %1 = vector.shape_cast %0 : vector<1x9x9x16xf32> to vector<9x9x16xf32>
    %cst = arith.constant 0.000000e+00 : f32
    %2 = vector.broadcast %cst : f32 to vector<9x9x16xf32>
    %3 = arith.cmpf oge, %1, %2 : vector<9x9x16xf32>
    %cst_3 = arith.constant 2.000000e-01 : f32
    %4 = vector.broadcast %cst_3 : f32 to vector<9x9x16xf32>
    %5 = arith.mulf %4, %1 : vector<9x9x16xf32>
    %6 = arith.select %3, %1, %5 : vector<9x9x16xi1>, vector<9x9x16xf32>
    %7 = vector.extract_strided_slice %6 {offsets = [0, 0, 0], sizes = [8, 8, 16], strides = [1, 1, 1]} : vector<9x9x16xf32> to vector<8x8x16xf32>
    %8 = vector.shape_cast %7 : vector<8x8x16xf32> to vector<64x16xf32>
    %c0_4 = arith.constant 0 : index
    %c0_5 = arith.constant 0 : index
    %c0_6 = arith.constant 0 : index
    %9 = vector.load %arg2[%c0_4, %c0_5, %c0_6] : memref<4x16x128xf32, #tpu.memory_space<vmem>>, vector<1x16x128xf32>
    %10 = vector.shape_cast %9 : vector<1x16x128xf32> to vector<16x128xf32>
    %cst_7 = arith.constant dense<0.000000e+00> : vector<64x128xf32>
    %11 = tpu.matmul %8, %10, %cst_7 {dimension_numbers = #tpu.dot_dimension_numbers<[1], [0], [0], [1], [0, 0, 1, 1], [], []>} : vector<64x16xf32>, vector<16x128xf32>, vector<64x128xf32> -> vector<64x128xf32>
    %12 = vector.extract_strided_slice %6 {offsets = [0, 1, 0], sizes = [8, 8, 16], strides = [1, 1, 1]} : vector<9x9x16xf32> to vector<8x8x16xf32>
    %13 = vector.shape_cast %12 : vector<8x8x16xf32> to vector<64x16xf32>
    %c1 = arith.constant 1 : index
    %c0_8 = arith.constant 0 : index
    %c0_9 = arith.constant 0 : index
    %14 = vector.load %arg2[%c1, %c0_8, %c0_9] : memref<4x16x128xf32, #tpu.memory_space<vmem>>, vector<1x16x128xf32>
    %15 = vector.shape_cast %14 : vector<1x16x128xf32> to vector<16x128xf32>
    %cst_10 = arith.constant dense<0.000000e+00> : vector<64x128xf32>
    %16 = tpu.matmul %13, %15, %cst_10 {dimension_numbers = #tpu.dot_dimension_numbers<[1], [0], [0], [1], [0, 0, 1, 1], [], []>} : vector<64x16xf32>, vector<16x128xf32>, vector<64x128xf32> -> vector<64x128xf32>
    %17 = arith.addf %11, %16 : vector<64x128xf32>
    %18 = vector.extract_strided_slice %6 {offsets = [1, 0, 0], sizes = [8, 8, 16], strides = [1, 1, 1]} : vector<9x9x16xf32> to vector<8x8x16xf32>
    %19 = vector.shape_cast %18 : vector<8x8x16xf32> to vector<64x16xf32>
    %c2 = arith.constant 2 : index
    %c0_11 = arith.constant 0 : index
    %c0_12 = arith.constant 0 : index
    %20 = vector.load %arg2[%c2, %c0_11, %c0_12] : memref<4x16x128xf32, #tpu.memory_space<vmem>>, vector<1x16x128xf32>
    %21 = vector.shape_cast %20 : vector<1x16x128xf32> to vector<16x128xf32>
    %cst_13 = arith.constant dense<0.000000e+00> : vector<64x128xf32>
    %22 = tpu.matmul %19, %21, %cst_13 {dimension_numbers = #tpu.dot_dimension_numbers<[1], [0], [0], [1], [0, 0, 1, 1], [], []>} : vector<64x16xf32>, vector<16x128xf32>, vector<64x128xf32> -> vector<64x128xf32>
    %23 = arith.addf %17, %22 : vector<64x128xf32>
    %24 = vector.extract_strided_slice %6 {offsets = [1, 1, 0], sizes = [8, 8, 16], strides = [1, 1, 1]} : vector<9x9x16xf32> to vector<8x8x16xf32>
    %25 = vector.shape_cast %24 : vector<8x8x16xf32> to vector<64x16xf32>
    %c3 = arith.constant 3 : index
    %c0_14 = arith.constant 0 : index
    %c0_15 = arith.constant 0 : index
    %26 = vector.load %arg2[%c3, %c0_14, %c0_15] : memref<4x16x128xf32, #tpu.memory_space<vmem>>, vector<1x16x128xf32>
    %27 = vector.shape_cast %26 : vector<1x16x128xf32> to vector<16x128xf32>
    %cst_16 = arith.constant dense<0.000000e+00> : vector<64x128xf32>
    %28 = tpu.matmul %25, %27, %cst_16 {dimension_numbers = #tpu.dot_dimension_numbers<[1], [0], [0], [1], [0, 0, 1, 1], [], []>} : vector<64x16xf32>, vector<16x128xf32>, vector<64x128xf32> -> vector<64x128xf32>
    %29 = arith.addf %23, %28 : vector<64x128xf32>
    %c0_17 = arith.constant 0 : index
    %c0_18 = arith.constant 0 : index
    %30 = vector.load %arg3[%c0_17, %c0_18] : memref<1x128xf32, #tpu.memory_space<vmem>>, vector<1x128xf32>
    %31 = vector.broadcast %30 : vector<1x128xf32> to vector<64x128xf32>
    %32 = arith.addf %29, %31 : vector<64x128xf32>
    %cst_19 = arith.constant 0.000000e+00 : f32
    %33 = vector.broadcast %cst_19 : f32 to vector<64x128xf32>
    %34 = arith.maximumf %32, %33 : vector<64x128xf32>
    %cst_20 = arith.constant 0.000000e+00 : f32
    %35 = vector.broadcast %cst_20 : f32 to vector<10x10x128xf32>
    %c0_21 = arith.constant 0 : index
    %c0_22 = arith.constant 0 : index
    %c0_23 = arith.constant 0 : index
    %36 = vector.load %arg8[%c0_21, %c0_22, %c0_23] : memref<10x10x128xf32, #tpu.memory_space<vmem>>, vector<10x10x128xf32>
    tpu.vector_store %arg8[%c0_21, %c0_22, %c0_23], %35 {strides = array<i32>} : memref<10x10x128xf32, #tpu.memory_space<vmem>>, vector<10x10x128xf32>,
    %37 = vector.shape_cast %34 : vector<64x128xf32> to vector<8x8x128xf32>
    %c1_24 = arith.constant 1 : index
    %c1_25 = arith.constant 1 : index
    %c0_26 = arith.constant 0 : index
    %38 = vector.load %arg8[%c1_24, %c1_25, %c0_26] : memref<10x10x128xf32, #tpu.memory_space<vmem>>, vector<8x8x128xf32>
    tpu.vector_store %arg8[%c1_24, %c1_25, %c0_26], %37 {strides = array<i32>} : memref<10x10x128xf32, #tpu.memory_space<vmem>>, vector<8x8x128xf32>,
    %c0_27 = arith.constant 0 : index
    %c0_28 = arith.constant 0 : index
    %c0_29 = arith.constant 0 : index
    %39 = vector.load %arg8[%c0_27, %c0_28, %c0_29] : memref<10x10x128xf32, #tpu.memory_space<vmem>>, vector<8x8x128xf32>
    %40 = vector.shape_cast %39 : vector<8x8x128xf32> to vector<64x128xf32>
    %c0_30 = arith.constant 0 : index
    %c1_31 = arith.constant 1 : index
    %c0_32 = arith.constant 0 : index
    %41 = vector.load %arg8[%c0_30, %c1_31, %c0_32] : memref<10x10x128xf32, #tpu.memory_space<vmem>>, vector<8x8x128xf32>
    %42 = vector.shape_cast %41 : vector<8x8x128xf32> to vector<64x128xf32>
    %c0_33 = arith.constant 0 : index
    %c2_34 = arith.constant 2 : index
    %c0_35 = arith.constant 0 : index
    %43 = vector.load %arg8[%c0_33, %c2_34, %c0_35] : memref<10x10x128xf32, #tpu.memory_space<vmem>>, vector<8x8x128xf32>
    %44 = vector.shape_cast %43 : vector<8x8x128xf32> to vector<64x128xf32>
    %c1_36 = arith.constant 1 : index
    %c0_37 = arith.constant 0 : index
    %c0_38 = arith.constant 0 : index
    %45 = vector.load %arg8[%c1_36, %c0_37, %c0_38] : memref<10x10x128xf32, #tpu.memory_space<vmem>>, vector<8x8x128xf32>
    %46 = vector.shape_cast %45 : vector<8x8x128xf32> to vector<64x128xf32>
    %c1_39 = arith.constant 1 : index
    %c1_40 = arith.constant 1 : index
    %c0_41 = arith.constant 0 : index
    %47 = vector.load %arg8[%c1_39, %c1_40, %c0_41] : memref<10x10x128xf32, #tpu.memory_space<vmem>>, vector<8x8x128xf32>
    %48 = vector.shape_cast %47 : vector<8x8x128xf32> to vector<64x128xf32>
    %c1_42 = arith.constant 1 : index
    %c2_43 = arith.constant 2 : index
    %c0_44 = arith.constant 0 : index
    %49 = vector.load %arg8[%c1_42, %c2_43, %c0_44] : memref<10x10x128xf32, #tpu.memory_space<vmem>>, vector<8x8x128xf32>
    %50 = vector.shape_cast %49 : vector<8x8x128xf32> to vector<64x128xf32>
    %c2_45 = arith.constant 2 : index
    %c0_46 = arith.constant 0 : index
    %c0_47 = arith.constant 0 : index
    %51 = vector.load %arg8[%c2_45, %c0_46, %c0_47] : memref<10x10x128xf32, #tpu.memory_space<vmem>>, vector<8x8x128xf32>
    %52 = vector.shape_cast %51 : vector<8x8x128xf32> to vector<64x128xf32>
    %c2_48 = arith.constant 2 : index
    %c1_49 = arith.constant 1 : index
    %c0_50 = arith.constant 0 : index
    %53 = vector.load %arg8[%c2_48, %c1_49, %c0_50] : memref<10x10x128xf32, #tpu.memory_space<vmem>>, vector<8x8x128xf32>
    %54 = vector.shape_cast %53 : vector<8x8x128xf32> to vector<64x128xf32>
    %c2_51 = arith.constant 2 : index
    %c2_52 = arith.constant 2 : index
    %c0_53 = arith.constant 0 : index
    %55 = vector.load %arg8[%c2_51, %c2_52, %c0_53] : memref<10x10x128xf32, #tpu.memory_space<vmem>>, vector<8x8x128xf32>
    %56 = vector.shape_cast %55 : vector<8x8x128xf32> to vector<64x128xf32>
    %cst_54 = arith.constant 0.000000e+00 : f32
    %57 = vector.broadcast %cst_54 : f32 to vector<1x128xf32>
    %cst_55 = arith.constant 0.000000e+00 : f32
    %58 = vector.broadcast %cst_55 : f32 to vector<1x128xf32>
    %c0_56 = arith.constant 0 : index
    %c0_57 = arith.constant 0 : index
    %c0_58 = arith.constant 0 : index
    %c0_59 = arith.constant 0 : index
    %59 = vector.load %arg4[%c0_56, %c0_57, %c0_58, %c0_59] : memref<4x4x128x128xf32, #tpu.memory_space<vmem>>, vector<1x1x128x128xf32>
    %60 = vector.shape_cast %59 : vector<1x1x128x128xf32> to vector<128x128xf32>
    %cst_60 = arith.constant dense<0.000000e+00> : vector<64x128xf32>
    %61 = tpu.matmul %40, %60, %cst_60 {dimension_numbers = #tpu.dot_dimension_numbers<[1], [0], [0], [1], [0, 0, 1, 1], [], []>} : vector<64x128xf32>, vector<128x128xf32>, vector<64x128xf32> -> vector<64x128xf32>
    %c0_61 = arith.constant 0 : index
    %c1_62 = arith.constant 1 : index
    %c0_63 = arith.constant 0 : index
    %c0_64 = arith.constant 0 : index
    %62 = vector.load %arg4[%c0_61, %c1_62, %c0_63, %c0_64] : memref<4x4x128x128xf32, #tpu.memory_space<vmem>>, vector<1x1x128x128xf32>
    %63 = vector.shape_cast %62 : vector<1x1x128x128xf32> to vector<128x128xf32>
    %cst_65 = arith.constant dense<0.000000e+00> : vector<64x128xf32>
    %64 = tpu.matmul %42, %63, %cst_65 {dimension_numbers = #tpu.dot_dimension_numbers<[1], [0], [0], [1], [0, 0, 1, 1], [], []>} : vector<64x128xf32>, vector<128x128xf32>, vector<64x128xf32> -> vector<64x128xf32>
    %65 = arith.addf %61, %64 : vector<64x128xf32>
    %c0_66 = arith.constant 0 : index
    %c2_67 = arith.constant 2 : index
    %c0_68 = arith.constant 0 : index
    %c0_69 = arith.constant 0 : index
    %66 = vector.load %arg4[%c0_66, %c2_67, %c0_68, %c0_69] : memref<4x4x128x128xf32, #tpu.memory_space<vmem>>, vector<1x1x128x128xf32>
    %67 = vector.shape_cast %66 : vector<1x1x128x128xf32> to vector<128x128xf32>
    %cst_70 = arith.constant dense<0.000000e+00> : vector<64x128xf32>
    %68 = tpu.matmul %46, %67, %cst_70 {dimension_numbers = #tpu.dot_dimension_numbers<[1], [0], [0], [1], [0, 0, 1, 1], [], []>} : vector<64x128xf32>, vector<128x128xf32>, vector<64x128xf32> -> vector<64x128xf32>
    %69 = arith.addf %65, %68 : vector<64x128xf32>
    %c0_71 = arith.constant 0 : index
    %c3_72 = arith.constant 3 : index
    %c0_73 = arith.constant 0 : index
    %c0_74 = arith.constant 0 : index
    %70 = vector.load %arg4[%c0_71, %c3_72, %c0_73, %c0_74] : memref<4x4x128x128xf32, #tpu.memory_space<vmem>>, vector<1x1x128x128xf32>
    %71 = vector.shape_cast %70 : vector<1x1x128x128xf32> to vector<128x128xf32>
    %cst_75 = arith.constant dense<0.000000e+00> : vector<64x128xf32>
    %72 = tpu.matmul %48, %71, %cst_75 {dimension_numbers = #tpu.dot_dimension_numbers<[1], [0], [0], [1], [0, 0, 1, 1], [], []>} : vector<64x128xf32>, vector<128x128xf32>, vector<64x128xf32> -> vector<64x128xf32>
    %73 = arith.addf %69, %72 : vector<64x128xf32>
    %c0_76 = arith.constant 0 : index
    %c0_77 = arith.constant 0 : index
    %c0_78 = arith.constant 0 : index
    %c0_79 = arith.constant 0 : index
    %74 = vector.load %arg5[%c0_76, %c0_77, %c0_78, %c0_79] : memref<1x4x64x128xf32, #tpu.memory_space<vmem>>, vector<1x1x64x128xf32>
    %75 = vector.shape_cast %74 : vector<1x1x64x128xf32> to vector<64x128xf32>
    %76 = vector.shape_cast %73 : vector<64x128xf32> to vector<1x1x64x128xf32>
    tpu.vector_store %arg5[%c0_76, %c0_77, %c0_78, %c0_79], %76 {strides = array<i32>} : memref<1x4x64x128xf32, #tpu.memory_space<vmem>>, vector<1x1x64x128xf32>,
    %cst_80 = arith.constant dense<0.000000e+00> : vector<128xf32>
    %77 = vector.multi_reduction <add>, %73, %cst_80 [0] : vector<64x128xf32> to vector<128xf32>
    %78 = vector.shape_cast %77 : vector<128xf32> to vector<1x128xf32>
    %79 = arith.addf %57, %78 : vector<1x128xf32>
    %80 = arith.mulf %73, %73 : vector<64x128xf32>
    %cst_81 = arith.constant dense<0.000000e+00> : vector<128xf32>
    %81 = vector.multi_reduction <add>, %80, %cst_81 [0] : vector<64x128xf32> to vector<128xf32>
    %82 = vector.shape_cast %81 : vector<128xf32> to vector<1x128xf32>
    %83 = arith.addf %58, %82 : vector<1x128xf32>
    %c1_82 = arith.constant 1 : index
    %c0_83 = arith.constant 0 : index
    %c0_84 = arith.constant 0 : index
    %c0_85 = arith.constant 0 : index
    %84 = vector.load %arg4[%c1_82, %c0_83, %c0_84, %c0_85] : memref<4x4x128x128xf32, #tpu.memory_space<vmem>>, vector<1x1x128x128xf32>
    %85 = vector.shape_cast %84 : vector<1x1x128x128xf32> to vector<128x128xf32>
    %cst_86 = arith.constant dense<0.000000e+00> : vector<64x128xf32>
    %86 = tpu.matmul %42, %85, %cst_86 {dimension_numbers = #tpu.dot_dimension_numbers<[1], [0], [0], [1], [0, 0, 1, 1], [], []>} : vector<64x128xf32>, vector<128x128xf32>, vector<64x128xf32> -> vector<64x128xf32>
    %c1_87 = arith.constant 1 : index
    %c1_88 = arith.constant 1 : index
    %c0_89 = arith.constant 0 : index
    %c0_90 = arith.constant 0 : index
    %87 = vector.load %arg4[%c1_87, %c1_88, %c0_89, %c0_90] : memref<4x4x128x128xf32, #tpu.memory_space<vmem>>, vector<1x1x128x128xf32>
    %88 = vector.shape_cast %87 : vector<1x1x128x128xf32> to vector<128x128xf32>
    %cst_91 = arith.constant dense<0.000000e+00> : vector<64x128xf32>
    %89 = tpu.matmul %44, %88, %cst_91 {dimension_numbers = #tpu.dot_dimension_numbers<[1], [0], [0], [1], [0, 0, 1, 1], [], []>} : vector<64x128xf32>, vector<128x128xf32>, vector<64x128xf32> -> vector<64x128xf32>
    %90 = arith.addf %86, %89 : vector<64x128xf32>
    %c1_92 = arith.constant 1 : index
    %c2_93 = arith.constant 2 : index
    %c0_94 = arith.constant 0 : index
    %c0_95 = arith.constant 0 : index
    %91 = vector.load %arg4[%c1_92, %c2_93, %c0_94, %c0_95] : memref<4x4x128x128xf32, #tpu.memory_space<vmem>>, vector<1x1x128x128xf32>
    %92 = vector.shape_cast %91 : vector<1x1x128x128xf32> to vector<128x128xf32>
    %cst_96 = arith.constant dense<0.000000e+00> : vector<64x128xf32>
    %93 = tpu.matmul %48, %92, %cst_96 {dimension_numbers = #tpu.dot_dimension_numbers<[1], [0], [0], [1], [0, 0, 1, 1], [], []>} : vector<64x128xf32>, vector<128x128xf32>, vector<64x128xf32> -> vector<64x128xf32>
    %94 = arith.addf %90, %93 : vector<64x128xf32>
    %c1_97 = arith.constant 1 : index
    %c3_98 = arith.constant 3 : index
    %c0_99 = arith.constant 0 : index
    %c0_100 = arith.constant 0 : index
    %95 = vector.load %arg4[%c1_97, %c3_98, %c0_99, %c0_100] : memref<4x4x128x128xf32, #tpu.memory_space<vmem>>, vector<1x1x128x128xf32>
    %96 = vector.shape_cast %95 : vector<1x1x128x128xf32> to vector<128x128xf32>
    %cst_101 = arith.constant dense<0.000000e+00> : vector<64x128xf32>
    %97 = tpu.matmul %50, %96, %cst_101 {dimension_numbers = #tpu.dot_dimension_numbers<[1], [0], [0], [1], [0, 0, 1, 1], [], []>} : vector<64x128xf32>, vector<128x128xf32>, vector<64x128xf32> -> vector<64x128xf32>
    %98 = arith.addf %94, %97 : vector<64x128xf32>
    %c0_102 = arith.constant 0 : index
    %c1_103 = arith.constant 1 : index
    %c0_104 = arith.constant 0 : index
    %c0_105 = arith.constant 0 : index
    %99 = vector.load %arg5[%c0_102, %c1_103, %c0_104, %c0_105] : memref<1x4x64x128xf32, #tpu.memory_space<vmem>>, vector<1x1x64x128xf32>
    %100 = vector.shape_cast %99 : vector<1x1x64x128xf32> to vector<64x128xf32>
    %101 = vector.shape_cast %98 : vector<64x128xf32> to vector<1x1x64x128xf32>
    tpu.vector_store %arg5[%c0_102, %c1_103, %c0_104, %c0_105], %101 {strides = array<i32>} : memref<1x4x64x128xf32, #tpu.memory_space<vmem>>, vector<1x1x64x128xf32>,
    %cst_106 = arith.constant dense<0.000000e+00> : vector<128xf32>
    %102 = vector.multi_reduction <add>, %98, %cst_106 [0] : vector<64x128xf32> to vector<128xf32>
    %103 = vector.shape_cast %102 : vector<128xf32> to vector<1x128xf32>
    %104 = arith.addf %79, %103 : vector<1x128xf32>
    %105 = arith.mulf %98, %98 : vector<64x128xf32>
    %cst_107 = arith.constant dense<0.000000e+00> : vector<128xf32>
    %106 = vector.multi_reduction <add>, %105, %cst_107 [0] : vector<64x128xf32> to vector<128xf32>
    %107 = vector.shape_cast %106 : vector<128xf32> to vector<1x128xf32>
    %108 = arith.addf %83, %107 : vector<1x128xf32>
    %c2_108 = arith.constant 2 : index
    %c0_109 = arith.constant 0 : index
    %c0_110 = arith.constant 0 : index
    %c0_111 = arith.constant 0 : index
    %109 = vector.load %arg4[%c2_108, %c0_109, %c0_110, %c0_111] : memref<4x4x128x128xf32, #tpu.memory_space<vmem>>, vector<1x1x128x128xf32>
    %110 = vector.shape_cast %109 : vector<1x1x128x128xf32> to vector<128x128xf32>
    %cst_112 = arith.constant dense<0.000000e+00> : vector<64x128xf32>
    %111 = tpu.matmul %46, %110, %cst_112 {dimension_numbers = #tpu.dot_dimension_numbers<[1], [0], [0], [1], [0, 0, 1, 1], [], []>} : vector<64x128xf32>, vector<128x128xf32>, vector<64x128xf32> -> vector<64x128xf32>
    %c2_113 = arith.constant 2 : index
    %c1_114 = arith.constant 1 : index
    %c0_115 = arith.constant 0 : index
    %c0_116 = arith.constant 0 : index
    %112 = vector.load %arg4[%c2_113, %c1_114, %c0_115, %c0_116] : memref<4x4x128x128xf32, #tpu.memory_space<vmem>>, vector<1x1x128x128xf32>
    %113 = vector.shape_cast %112 : vector<1x1x128x128xf32> to vector<128x128xf32>
    %cst_117 = arith.constant dense<0.000000e+00> : vector<64x128xf32>
    %114 = tpu.matmul %48, %113, %cst_117 {dimension_numbers = #tpu.dot_dimension_numbers<[1], [0], [0], [1], [0, 0, 1, 1], [], []>} : vector<64x128xf32>, vector<128x128xf32>, vector<64x128xf32> -> vector<64x128xf32>
    %115 = arith.addf %111, %114 : vector<64x128xf32>
    %c2_118 = arith.constant 2 : index
    %c2_119 = arith.constant 2 : index
    %c0_120 = arith.constant 0 : index
    %c0_121 = arith.constant 0 : index
    %116 = vector.load %arg4[%c2_118, %c2_119, %c0_120, %c0_121] : memref<4x4x128x128xf32, #tpu.memory_space<vmem>>, vector<1x1x128x128xf32>
    %117 = vector.shape_cast %116 : vector<1x1x128x128xf32> to vector<128x128xf32>
    %cst_122 = arith.constant dense<0.000000e+00> : vector<64x128xf32>
    %118 = tpu.matmul %52, %117, %cst_122 {dimension_numbers = #tpu.dot_dimension_numbers<[1], [0], [0], [1], [0, 0, 1, 1], [], []>} : vector<64x128xf32>, vector<128x128xf32>, vector<64x128xf32> -> vector<64x128xf32>
    %119 = arith.addf %115, %118 : vector<64x128xf32>
    %c2_123 = arith.constant 2 : index
    %c3_124 = arith.constant 3 : index
    %c0_125 = arith.constant 0 : index
    %c0_126 = arith.constant 0 : index
    %120 = vector.load %arg4[%c2_123, %c3_124, %c0_125, %c0_126] : memref<4x4x128x128xf32, #tpu.memory_space<vmem>>, vector<1x1x128x128xf32>
    %121 = vector.shape_cast %120 : vector<1x1x128x128xf32> to vector<128x128xf32>
    %cst_127 = arith.constant dense<0.000000e+00> : vector<64x128xf32>
    %122 = tpu.matmul %54, %121, %cst_127 {dimension_numbers = #tpu.dot_dimension_numbers<[1], [0], [0], [1], [0, 0, 1, 1], [], []>} : vector<64x128xf32>, vector<128x128xf32>, vector<64x128xf32> -> vector<64x128xf32>
    %123 = arith.addf %119, %122 : vector<64x128xf32>
    %c0_128 = arith.constant 0 : index
    %c2_129 = arith.constant 2 : index
    %c0_130 = arith.constant 0 : index
    %c0_131 = arith.constant 0 : index
    %124 = vector.load %arg5[%c0_128, %c2_129, %c0_130, %c0_131] : memref<1x4x64x128xf32, #tpu.memory_space<vmem>>, vector<1x1x64x128xf32>
    %125 = vector.shape_cast %124 : vector<1x1x64x128xf32> to vector<64x128xf32>
    %126 = vector.shape_cast %123 : vector<64x128xf32> to vector<1x1x64x128xf32>
    tpu.vector_store %arg5[%c0_128, %c2_129, %c0_130, %c0_131], %126 {strides = array<i32>} : memref<1x4x64x128xf32, #tpu.memory_space<vmem>>, vector<1x1x64x128xf32>,
    %cst_132 = arith.constant dense<0.000000e+00> : vector<128xf32>
    %127 = vector.multi_reduction <add>, %123, %cst_132 [0] : vector<64x128xf32> to vector<128xf32>
    %128 = vector.shape_cast %127 : vector<128xf32> to vector<1x128xf32>
    %129 = arith.addf %104, %128 : vector<1x128xf32>
    %130 = arith.mulf %123, %123 : vector<64x128xf32>
    %cst_133 = arith.constant dense<0.000000e+00> : vector<128xf32>
    %131 = vector.multi_reduction <add>, %130, %cst_133 [0] : vector<64x128xf32> to vector<128xf32>
    %132 = vector.shape_cast %131 : vector<128xf32> to vector<1x128xf32>
    %133 = arith.addf %108, %132 : vector<1x128xf32>
    %c3_134 = arith.constant 3 : index
    %c0_135 = arith.constant 0 : index
    %c0_136 = arith.constant 0 : index
    %c0_137 = arith.constant 0 : index
    %134 = vector.load %arg4[%c3_134, %c0_135, %c0_136, %c0_137] : memref<4x4x128x128xf32, #tpu.memory_space<vmem>>, vector<1x1x128x128xf32>
    %135 = vector.shape_cast %134 : vector<1x1x128x128xf32> to vector<128x128xf32>
    %cst_138 = arith.constant dense<0.000000e+00> : vector<64x128xf32>
    %136 = tpu.matmul %48, %135, %cst_138 {dimension_numbers = #tpu.dot_dimension_numbers<[1], [0], [0], [1], [0, 0, 1, 1], [], []>} : vector<64x128xf32>, vector<128x128xf32>, vector<64x128xf32> -> vector<64x128xf32>
    %c3_139 = arith.constant 3 : index
    %c1_140 = arith.constant 1 : index
    %c0_141 = arith.constant 0 : index
    %c0_142 = arith.constant 0 : index
    %137 = vector.load %arg4[%c3_139, %c1_140, %c0_141, %c0_142] : memref<4x4x128x128xf32, #tpu.memory_space<vmem>>, vector<1x1x128x128xf32>
    %138 = vector.shape_cast %137 : vector<1x1x128x128xf32> to vector<128x128xf32>
    %cst_143 = arith.constant dense<0.000000e+00> : vector<64x128xf32>
    %139 = tpu.matmul %50, %138, %cst_143 {dimension_numbers = #tpu.dot_dimension_numbers<[1], [0], [0], [1], [0, 0, 1, 1], [], []>} : vector<64x128xf32>, vector<128x128xf32>, vector<64x128xf32> -> vector<64x128xf32>
    %140 = arith.addf %136, %139 : vector<64x128xf32>
    %c3_144 = arith.constant 3 : index
    %c2_145 = arith.constant 2 : index
    %c0_146 = arith.constant 0 : index
    %c0_147 = arith.constant 0 : index
    %141 = vector.load %arg4[%c3_144, %c2_145, %c0_146, %c0_147] : memref<4x4x128x128xf32, #tpu.memory_space<vmem>>, vector<1x1x128x128xf32>
    %142 = vector.shape_cast %141 : vector<1x1x128x128xf32> to vector<128x128xf32>
    %cst_148 = arith.constant dense<0.000000e+00> : vector<64x128xf32>
    %143 = tpu.matmul %54, %142, %cst_148 {dimension_numbers = #tpu.dot_dimension_numbers<[1], [0], [0], [1], [0, 0, 1, 1], [], []>} : vector<64x128xf32>, vector<128x128xf32>, vector<64x128xf32> -> vector<64x128xf32>
    %144 = arith.addf %140, %143 : vector<64x128xf32>
    %c3_149 = arith.constant 3 : index
    %c3_150 = arith.constant 3 : index
    %c0_151 = arith.constant 0 : index
    %c0_152 = arith.constant 0 : index
    %145 = vector.load %arg4[%c3_149, %c3_150, %c0_151, %c0_152] : memref<4x4x128x128xf32, #tpu.memory_space<vmem>>, vector<1x1x128x128xf32>
    %146 = vector.shape_cast %145 : vector<1x1x128x128xf32> to vector<128x128xf32>
    %cst_153 = arith.constant dense<0.000000e+00> : vector<64x128xf32>
    %147 = tpu.matmul %56, %146, %cst_153 {dimension_numbers = #tpu.dot_dimension_numbers<[1], [0], [0], [1], [0, 0, 1, 1], [], []>} : vector<64x128xf32>, vector<128x128xf32>, vector<64x128xf32> -> vector<64x128xf32>
    %148 = arith.addf %144, %147 : vector<64x128xf32>
    %c0_154 = arith.constant 0 : index
    %c3_155 = arith.constant 3 : index
    %c0_156 = arith.constant 0 : index
    %c0_157 = arith.constant 0 : index
    %149 = vector.load %arg5[%c0_154, %c3_155, %c0_156, %c0_157] : memref<1x4x64x128xf32, #tpu.memory_space<vmem>>, vector<1x1x64x128xf32>
    %150 = vector.shape_cast %149 : vector<1x1x64x128xf32> to vector<64x128xf32>
    %151 = vector.shape_cast %148 : vector<64x128xf32> to vector<1x1x64x128xf32>
    tpu.vector_store %arg5[%c0_154, %c3_155, %c0_156, %c0_157], %151 {strides = array<i32>} : memref<1x4x64x128xf32, #tpu.memory_space<vmem>>, vector<1x1x64x128xf32>,
    %cst_158 = arith.constant dense<0.000000e+00> : vector<128xf32>
    %152 = vector.multi_reduction <add>, %148, %cst_158 [0] : vector<64x128xf32> to vector<128xf32>
    %153 = vector.shape_cast %152 : vector<128xf32> to vector<1x128xf32>
    %154 = arith.addf %129, %153 : vector<1x128xf32>
    %155 = arith.mulf %148, %148 : vector<64x128xf32>
    %cst_159 = arith.constant dense<0.000000e+00> : vector<128xf32>
    %156 = vector.multi_reduction <add>, %155, %cst_159 [0] : vector<64x128xf32> to vector<128xf32>
    %157 = vector.shape_cast %156 : vector<128xf32> to vector<1x128xf32>
    %158 = arith.addf %133, %157 : vector<1x128xf32>
    %159 = vector.shape_cast %154 : vector<1x128xf32> to vector<1x1x128xf32>
    %c0_160 = arith.constant 0 : index
    %c0_161 = arith.constant 0 : index
    %c0_162 = arith.constant 0 : index
    %160 = vector.load %arg6[%c0_160, %c0_161, %c0_162] : memref<1x1x128xf32, #tpu.memory_space<vmem>>, vector<1x1x128xf32>
    tpu.vector_store %arg6[%c0_160, %c0_161, %c0_162], %159 {strides = array<i32>} : memref<1x1x128xf32, #tpu.memory_space<vmem>>, vector<1x1x128xf32>,
    %161 = vector.shape_cast %158 : vector<1x128xf32> to vector<1x1x128xf32>
    %c0_163 = arith.constant 0 : index
    %c0_164 = arith.constant 0 : index
    %c0_165 = arith.constant 0 : index
    %162 = vector.load %arg7[%c0_163, %c0_164, %c0_165] : memref<1x1x128xf32, #tpu.memory_space<vmem>>, vector<1x1x128xf32>
    tpu.vector_store %arg7[%c0_163, %c0_164, %c0_165], %161 {strides = array<i32>} : memref<1x1x128xf32, #tpu.memory_space<vmem>>, vector<1x1x128xf32>,
    return
  }
  func.func @transform_0(%arg0: i32) -> (i32, i32, i32, i32) {
    %c0_i32 = arith.constant 0 : i32
    %c0_i32_0 = arith.constant 0 : i32
    %c0_i32_1 = arith.constant 0 : i32
    %c0_i32_2 = arith.constant 0 : i32
    return %arg0, %c0_i32, %c0_i32_0, %c0_i32_1 : i32, i32, i32, i32
  }
  func.func @transform_1(%arg0: i32) -> (i32, i32, i32) {
    %c0_i32 = arith.constant 0 : i32
    %c0_i32_0 = arith.constant 0 : i32
    %c0_i32_1 = arith.constant 0 : i32
    %c0_i32_2 = arith.constant 0 : i32
    return %c0_i32, %c0_i32_0, %c0_i32_1 : i32, i32, i32
  }
  func.func @transform_2(%arg0: i32) -> (i32, i32) {
    %c0_i32 = arith.constant 0 : i32
    %c0_i32_0 = arith.constant 0 : i32
    %c0_i32_1 = arith.constant 0 : i32
    return %c0_i32, %c0_i32_0 : i32, i32
  }
  func.func @transform_3(%arg0: i32) -> (i32, i32, i32, i32) {
    %c0_i32 = arith.constant 0 : i32
    %c0_i32_0 = arith.constant 0 : i32
    %c0_i32_1 = arith.constant 0 : i32
    %c0_i32_2 = arith.constant 0 : i32
    %c0_i32_3 = arith.constant 0 : i32
    return %c0_i32, %c0_i32_0, %c0_i32_1, %c0_i32_2 : i32, i32, i32, i32
  }
  func.func @transform_4(%arg0: i32) -> (i32, i32, i32, i32) {
    %c0_i32 = arith.constant 0 : i32
    %c0_i32_0 = arith.constant 0 : i32
    %c0_i32_1 = arith.constant 0 : i32
    %c0_i32_2 = arith.constant 0 : i32
    return %arg0, %c0_i32, %c0_i32_0, %c0_i32_1 : i32, i32, i32, i32
  }
  func.func @transform_5(%arg0: i32) -> (i32, i32, i32) {
    %c0_i32 = arith.constant 0 : i32
    %c0_i32_0 = arith.constant 0 : i32
    %c0_i32_1 = arith.constant 0 : i32
    return %arg0, %c0_i32, %c0_i32_0 : i32, i32, i32
  }
  func.func @transform_6(%arg0: i32) -> (i32, i32, i32) {
    %c0_i32 = arith.constant 0 : i32
    %c0_i32_0 = arith.constant 0 : i32
    %c0_i32_1 = arith.constant 0 : i32
    return %arg0, %c0_i32, %c0_i32_0 : i32, i32, i32
  }
}

module attributes {stable_mosaic.version = 11 : i64} {
  func.func @_bn_apply_kernel(%arg0: i32, %arg1: memref<512x128xf32, #tpu.memory_space<vmem>>, %arg2: memref<1x128xf32, #tpu.memory_space<vmem>>, %arg3: memref<1x128xf32, #tpu.memory_space<vmem>>, %arg4: memref<512x128xf32, #tpu.memory_space<vmem>>) attributes {dimension_semantics = [#tpu.dimension_semantics<parallel>], iteration_bounds = array<i64: 1>, scalar_prefetch = 0 : i64, scratch_operands = 0 : i64, tpu.core_type = #tpu.core_type<tc>, window_params = [{transform_indices = @transform_0, window_bounds = array<i64: 512, 128>}, {pipeline_mode = #tpu.pipeline_mode<synchronous>, transform_indices = @transform_1, window_bounds = array<i64: 1, 128>}, {pipeline_mode = #tpu.pipeline_mode<synchronous>, transform_indices = @transform_2, window_bounds = array<i64: 1, 128>}, {transform_indices = @transform_3, window_bounds = array<i64: 512, 128>}]} {
    %c0 = arith.constant 0 : index
    %c0_0 = arith.constant 0 : index
    %0 = vector.load %arg1[%c0, %c0_0] : memref<512x128xf32, #tpu.memory_space<vmem>>, vector<512x128xf32>
    %c0_1 = arith.constant 0 : index
    %c0_2 = arith.constant 0 : index
    %1 = vector.load %arg2[%c0_1, %c0_2] : memref<1x128xf32, #tpu.memory_space<vmem>>, vector<1x128xf32>
    %2 = vector.broadcast %1 : vector<1x128xf32> to vector<512x128xf32>
    %3 = arith.mulf %0, %2 : vector<512x128xf32>
    %c0_3 = arith.constant 0 : index
    %c0_4 = arith.constant 0 : index
    %4 = vector.load %arg3[%c0_3, %c0_4] : memref<1x128xf32, #tpu.memory_space<vmem>>, vector<1x128xf32>
    %5 = vector.broadcast %4 : vector<1x128xf32> to vector<512x128xf32>
    %6 = arith.addf %3, %5 : vector<512x128xf32>
    %c0_5 = arith.constant 0 : index
    %c0_6 = arith.constant 0 : index
    %7 = vector.load %arg4[%c0_5, %c0_6] : memref<512x128xf32, #tpu.memory_space<vmem>>, vector<512x128xf32>
    tpu.vector_store %arg4[%c0_5, %c0_6], %6 {strides = array<i32>} : memref<512x128xf32, #tpu.memory_space<vmem>>, vector<512x128xf32>,
    return
  }
  func.func @transform_0(%arg0: i32) -> (i32, i32) {
    %c0_i32 = arith.constant 0 : i32
    %c0_i32_0 = arith.constant 0 : i32
    return %arg0, %c0_i32 : i32, i32
  }
  func.func @transform_1(%arg0: i32) -> (i32, i32) {
    %c0_i32 = arith.constant 0 : i32
    %c0_i32_0 = arith.constant 0 : i32
    %c0_i32_1 = arith.constant 0 : i32
    return %c0_i32, %c0_i32_0 : i32, i32
  }
  func.func @transform_2(%arg0: i32) -> (i32, i32) {
    %c0_i32 = arith.constant 0 : i32
    %c0_i32_0 = arith.constant 0 : i32
    %c0_i32_1 = arith.constant 0 : i32
    return %c0_i32, %c0_i32_0 : i32, i32
  }
  func.func @transform_3(%arg0: i32) -> (i32, i32) {
    %c0_i32 = arith.constant 0 : i32
    %c0_i32_0 = arith.constant 0 : i32
    return %arg0, %c0_i32 : i32, i32
  }
}

</mosaic_0001>

<bundles_post_ra>
// kernel: unet_innermost_forward.3
= control target key start
LH: loop header
LB: loop body
LE: loop exit
PB: predicated region body
PF: predicated region fallthrough
CT: control target
= control target key end

     0   :  { %s832_s0 = inlined_call_operand.vmem [shape: f32[512,128], index: 0, kind: input, shape index: {}]   ;;  %s833_s1 = inlined_call_operand.vmem [shape: f32[1,128], index: 1, kind: input, shape index: {}]   ;;  %s834_s2 = inlined_call_operand.vmem [shape: f32[1,128], index: 2, kind: input, shape index: {}]   ;;  %s835_s3 = inlined_call_operand.vmem [shape: f32[512,128], index: 3, kind: output, shape index: {}]  }
   0x1   :  { %v14_v0 = vld [vmem:[%s832_s0] sm:$0xff]  ;;  %v15_v4 = vld [vmem:[%s832_s0 + $0x8] sm:$0xff]  ;;  %v16_v5 = vld [vmem:[%s832_s0 + $0x10] sm:$0xff] }
   0x2   :  { %v316_v1 = vld [vmem:[%s833_s1] ss:$0 sm:$0xff]  ;;  %v17_v6 = vld [vmem:[%s832_s0 + $0x18] sm:$0xff]  ;;  %v19_v11 = vld [vmem:[%s832_s0 + $0x28] sm:$0xff] }
   0x3   :  { %v321_v2 = vld [vmem:[%s834_s2] ss:$0 sm:$0xff]  ;;  %v85_v3 = vmul.f32 %v316_v1, %v14_v0  ;;  %v86_v7 = vmul.f32 %v316_v1, %v15_v4  ;;  %v87_v8 = vmul.f32 %v316_v1, %v16_v5  ;;  %v88_v9 = vmul.f32 %v316_v1, %v17_v6  ;;  %v20_v12 = vld [vmem:[%s832_s0 + $0x30] sm:$0xff]  ;;  %v21_v17 = vld [vmem:[%s832_s0 + $0x38] sm:$0xff] }
   0x4   :  { %v18_v10 = vld [vmem:[%s832_s0 + $0x20] sm:$0xff]  ;;  %v90_v15 = vmul.f32 %v316_v1, %v19_v11  ;;  %v91_v16 = vmul.f32 %v316_v1, %v20_v12  ;;  %v23_v19 = vld [vmem:[%s832_s0 + $0x48] sm:$0xff]  ;;  %v92_v23 = vmul.f32 %v316_v1, %v21_v17  ;;  %v24_v24 = vld [vmem:[%s832_s0 + $0x50] sm:$0xff] }
   0x5   :  { %v156_v13 = vadd.f32 %v321_v2, %v85_v3  ;;  %v89_v14 = vmul.f32 %v316_v1, %v18_v10  ;;  %v22_v18 = vld [vmem:[%s832_s0 + $0x40] sm:$0xff]  ;;  %v157_v20 = vadd.f32 %v321_v2, %v86_v7  ;;  %v158_v21 = vadd.f32 %v321_v2, %v87_v8  ;;  %v25_v25 = vld [vmem:[%s832_s0 + $0x58] sm:$0xff]  ;;  %v27_v31 = vld [vmem:[%s832_s0 + $0x68] sm:$0xff] }
   0x6   :  { %v159_v22 = vadd.f32 %v321_v2, %v88_v9  ;;  %v26_v26 = vld [vmem:[%s832_s0 + $0x60] sm:$0xff]  ;;  %v161_v28 = vadd.f32 %v321_v2, %v90_v15  ;;  %v162_v29 = vadd.f32 %v321_v2, %v91_v16  ;;  %v93_v30 = vmul.f32 %v316_v1, %v22_v18  ;;  %v28_v32 = vld [vmem:[%s832_s0 + $0x70] sm:$0xff]  ;;  %v29_v33 = vld [vmem:[%s832_s0 + $0x78] sm:$0xff] }
   0x7   :  { %220 = vst [vmem:[%s835_s3] sm:$0xff] %v156_v13  ;;  %v160_v27 = vadd.f32 %v321_v2, %v89_v14  ;;  %221 = vst [vmem:[%s835_s3 + $0x8] sm:$0xff] %v157_v20  ;;  %v163_v34 = vadd.f32 %v321_v2, %v92_v23  ;;  %v94_v35 = vmul.f32 %v316_v1, %v23_v19  ;;  %v30_v38 = vld [vmem:[%s832_s0 + $0x80] sm:$0xff]  ;;  %v31_v43 = vld [vmem:[%s832_s0 + $0x88] sm:$0xff] }
   0x8   :  { %222 = vst [vmem:[%s835_s3 + $0x10] sm:$0xff] %v158_v21  ;;  %223 = vst [vmem:[%s835_s3 + $0x18] sm:$0xff] %v159_v22  ;;  %v95_v36 = vmul.f32 %v316_v1, %v24_v24  ;;  %v96_v37 = vmul.f32 %v316_v1, %v25_v25  ;;  %v164_v39 = vadd.f32 %v321_v2, %v93_v30  ;;  %v32_v44 = vld [vmem:[%s832_s0 + $0x90] sm:$0xff]  ;;  %v33_v45 = vld [vmem:[%s832_s0 + $0x98] sm:$0xff] }
   0x9   :  { %224 = vst [vmem:[%s835_s3 + $0x20] sm:$0xff] %v160_v27  ;;  %225 = vst [vmem:[%s835_s3 + $0x28] sm:$0xff] %v161_v28  ;;  %v97_v40 = vmul.f32 %v316_v1, %v26_v26  ;;  %v98_v41 = vmul.f32 %v316_v1, %v27_v31  ;;  %v99_v42 = vmul.f32 %v316_v1, %v28_v32  ;;  %v34_v50 = vld [vmem:[%s832_s0 + $0xa0] sm:$0xff]  ;;  %v35_v51 = vld [vmem:[%s832_s0 + $0xa8] sm:$0xff] }
   0xa   :  { %226 = vst [vmem:[%s835_s3 + $0x30] sm:$0xff] %v162_v29  ;;  %227 = vst [vmem:[%s835_s3 + $0x38] sm:$0xff] %v163_v34  ;;  %v165_v46 = vadd.f32 %v321_v2, %v94_v35  ;;  %v166_v47 = vadd.f32 %v321_v2, %v95_v36  ;;  %v167_v48 = vadd.f32 %v321_v2, %v96_v37  ;;  %v36_v52 = vld [vmem:[%s832_s0 + $0xb0] sm:$0xff]  ;;  %v37_v57 = vld [vmem:[%s832_s0 + $0xb8] sm:$0xff] }
   0xb   :  { %v100_v49 = vmul.f32 %v316_v1, %v29_v33  ;;  %228 = vst [vmem:[%s835_s3 + $0x40] sm:$0xff] %v164_v39  ;;  %v168_v53 = vadd.f32 %v321_v2, %v97_v40  ;;  %v169_v54 = vadd.f32 %v321_v2, %v98_v41  ;;  %v170_v55 = vadd.f32 %v321_v2, %v99_v42  ;;  %v38_v62 = vld [vmem:[%s832_s0 + $0xc0] sm:$0xff]  ;;  %v39_v5 = vld [vmem:[%s832_s0 + $0xc8] sm:$0xff]  ;;  %v40_v6 = vld [vmem:[%s832_s0 + $0xd0] sm:$0xff] }
   0xc   :  { %v101_v56 = vmul.f32 %v316_v1, %v30_v38  ;;  %229 = vst [vmem:[%s835_s3 + $0x48] sm:$0xff] %v165_v46  ;;  %230 = vst [vmem:[%s835_s3 + $0x50] sm:$0xff] %v166_v47  ;;  %v102_v59 = vmul.f32 %v316_v1, %v31_v43  ;;  %v103_v60 = vmul.f32 %v316_v1, %v32_v44  ;;  %v41_v7 = vld [vmem:[%s832_s0 + $0xd8] sm:$0xff]  ;;  %v42_v12 = vld [vmem:[%s832_s0 + $0xe0] sm:$0xff] }
   0xd   :  { %231 = vst [vmem:[%s835_s3 + $0x58] sm:$0xff] %v167_v48  ;;  %v171_v58 = vadd.f32 %v321_v2, %v100_v49  ;;  %v104_v61 = vmul.f32 %v316_v1, %v33_v45  ;;  %232 = vst [vmem:[%s835_s3 + $0x60] sm:$0xff] %v168_v53  ;;  %v105_v0 = vmul.f32 %v316_v1, %v34_v50  ;;  %v43_v13 = vld [vmem:[%s832_s0 + $0xe8] sm:$0xff]  ;;  %v44_v14 = vld [vmem:[%s832_s0 + $0xf0] sm:$0xff] }
   0xe   :  { %233 = vst [vmem:[%s835_s3 + $0x68] sm:$0xff] %v169_v54  ;;  %234 = vst [vmem:[%s835_s3 + $0x70] sm:$0xff] %v170_v55  ;;  %v172_v63 = vadd.f32 %v321_v2, %v101_v56  ;;  %v106_v3 = vmul.f32 %v316_v1, %v35_v51  ;;  %v107_v4 = vmul.f32 %v316_v1, %v36_v52  ;;  %v45_v19 = vld [vmem:[%s832_s0 + $0xf8] sm:$0xff]  ;;  %v46_v24 = vld [vmem:[%s832_s0 + $0x100] sm:$0xff] }
   0xf   :  { %235 = vst [vmem:[%s835_s3 + $0x78] sm:$0xff] %v171_v58  ;;  %v173_v8 = vadd.f32 %v321_v2, %v102_v59  ;;  %v174_v9 = vadd.f32 %v321_v2, %v103_v60  ;;  %v175_v10 = vadd.f32 %v321_v2, %v104_v61  ;;  %v108_v11 = vmul.f32 %v316_v1, %v37_v57  ;;  %v47_v29 = vld [vmem:[%s832_s0 + $0x108] sm:$0xff]  ;;  %v48_v30 = vld [vmem:[%s832_s0 + $0x110] sm:$0xff]  ;;  %v49_v31 = vld [vmem:[%s832_s0 + $0x118] sm:$0xff] }
  0x10   :  { %236 = vst [vmem:[%s835_s3 + $0x80] sm:$0xff] %v172_v63  ;;  %v176_v15 = vadd.f32 %v321_v2, %v105_v0  ;;  %v177_v16 = vadd.f32 %v321_v2, %v106_v3  ;;  %v178_v17 = vadd.f32 %v321_v2, %v107_v4  ;;  %v109_v18 = vmul.f32 %v316_v1, %v38_v62  ;;  %v50_v36 = vld [vmem:[%s832_s0 + $0x120] sm:$0xff]  ;;  %v51_v37 = vld [vmem:[%s832_s0 + $0x128] sm:$0xff]  ;;  %v52_v38 = vld [vmem:[%s832_s0 + $0x130] sm:$0xff] }
  0x11   :  { %237 = vst [vmem:[%s835_s3 + $0x88] sm:$0xff] %v173_v8  ;;  %238 = vst [vmem:[%s835_s3 + $0x90] sm:$0xff] %v174_v9  ;;  %v179_v20 = vadd.f32 %v321_v2, %v108_v11  ;;  %v110_v21 = vmul.f32 %v316_v1, %v39_v5  ;;  %v111_v22 = vmul.f32 %v316_v1, %v40_v6  ;;  %v53_v43 = vld [vmem:[%s832_s0 + $0x138] sm:$0xff]  ;;  %v54_v48 = vld [vmem:[%s832_s0 + $0x140] sm:$0xff] }
  0x12   :  { %239 = vst [vmem:[%s835_s3 + $0x98] sm:$0xff] %v175_v10  ;;  %v112_v23 = vmul.f32 %v316_v1, %v41_v7  ;;  %240 = vst [vmem:[%s835_s3 + $0xa0] sm:$0xff] %v176_v15  ;;  %v180_v25 = vadd.f32 %v321_v2, %v109_v18  ;;  %v113_v26 = vmul.f32 %v316_v1, %v42_v12  ;;  %v55_v53 = vld [vmem:[%s832_s0 + $0x148] sm:$0xff]  ;;  %v56_v54 = vld [vmem:[%s832_s0 + $0x150] sm:$0xff] }
  0x13   :  { %241 = vst [vmem:[%s835_s3 + $0xa8] sm:$0xff] %v177_v16  ;;  %242 = vst [vmem:[%s835_s3 + $0xb0] sm:$0xff] %v178_v17  ;;  %v114_v27 = vmul.f32 %v316_v1, %v43_v13  ;;  %v115_v28 = vmul.f32 %v316_v1, %v44_v14  ;;  %v181_v32 = vadd.f32 %v321_v2, %v110_v21  ;;  %v57_v55 = vld [vmem:[%s832_s0 + $0x158] sm:$0xff]  ;;  %v58_v60 = vld [vmem:[%s832_s0 + $0x160] sm:$0xff] }
  0x14   :  { %243 = vst [vmem:[%s835_s3 + $0xb8] sm:$0xff] %v179_v20  ;;  %v182_v33 = vadd.f32 %v321_v2, %v111_v22  ;;  %v183_v34 = vadd.f32 %v321_v2, %v112_v23  ;;  %v116_v35 = vmul.f32 %v316_v1, %v45_v19  ;;  %244 = vst [vmem:[%s835_s3 + $0xc0] sm:$0xff] %v180_v25  ;;  %v59_v61 = vld [vmem:[%s832_s0 + $0x168] sm:$0xff]  ;;  %v60_v62 = vld [vmem:[%s832_s0 + $0x170] sm:$0xff] }
  0x15   :  { %v184_v39 = vadd.f32 %v321_v2, %v113_v26  ;;  %v185_v40 = vadd.f32 %v321_v2, %v114_v27  ;;  %v186_v41 = vadd.f32 %v321_v2, %v115_v28  ;;  %v117_v42 = vmul.f32 %v316_v1, %v46_v24  ;;  %245 = vst [vmem:[%s835_s3 + $0xc8] sm:$0xff] %v181_v32  ;;  %v61_v5 = vld [vmem:[%s832_s0 + $0x178] sm:$0xff]  ;;  %v62_v10 = vld [vmem:[%s832_s0 + $0x180] sm:$0xff]  ;;  %v63_v15 = vld [vmem:[%s832_s0 + $0x188] sm:$0xff] }
  0x16   :  { %246 = vst [vmem:[%s835_s3 + $0xd0] sm:$0xff] %v182_v33  ;;  %247 = vst [vmem:[%s835_s3 + $0xd8] sm:$0xff] %v183_v34  ;;  %v187_v44 = vadd.f32 %v321_v2, %v116_v35  ;;  %v118_v45 = vmul.f32 %v316_v1, %v47_v29  ;;  %v119_v46 = vmul.f32 %v316_v1, %v48_v30  ;;  %v64_v16 = vld [vmem:[%s832_s0 + $0x190] sm:$0xff]  ;;  %v65_v17 = vld [vmem:[%s832_s0 + $0x198] sm:$0xff] }
  0x17   :  { %v120_v47 = vmul.f32 %v316_v1, %v49_v31  ;;  %248 = vst [vmem:[%s835_s3 + $0xe0] sm:$0xff] %v184_v39  ;;  %249 = vst [vmem:[%s835_s3 + $0xe8] sm:$0xff] %v185_v40  ;;  %v188_v49 = vadd.f32 %v321_v2, %v117_v42  ;;  %v121_v50 = vmul.f32 %v316_v1, %v50_v36  ;;  %v66_v22 = vld [vmem:[%s832_s0 + $0x1a0] sm:$0xff]  ;;  %v67_v23 = vld [vmem:[%s832_s0 + $0x1a8] sm:$0xff] }
  0x18   :  { %250 = vst [vmem:[%s835_s3 + $0xf0] sm:$0xff] %v186_v41  ;;  %v122_v51 = vmul.f32 %v316_v1, %v51_v37  ;;  %v123_v52 = vmul.f32 %v316_v1, %v52_v38  ;;  %251 = vst [vmem:[%s835_s3 + $0xf8] sm:$0xff] %v187_v44  ;;  %v189_v56 = vadd.f32 %v321_v2, %v118_v45  ;;  %v68_v24 = vld [vmem:[%s832_s0 + $0x1b0] sm:$0xff]  ;;  %v69_v29 = vld [vmem:[%s832_s0 + $0x1b8] sm:$0xff] }
  0x19   :  { %v190_v57 = vadd.f32 %v321_v2, %v119_v46  ;;  %v191_v58 = vadd.f32 %v321_v2, %v120_v47  ;;  %v124_v59 = vmul.f32 %v316_v1, %v53_v43  ;;  %252 = vst [vmem:[%s835_s3 + $0x100] sm:$0xff] %v188_v49  ;;  %v192_v63 = vadd.f32 %v321_v2, %v121_v50  ;;  %v70_v34 = vld [vmem:[%s832_s0 + $0x1c0] sm:$0xff]  ;;  %v71_v39 = vld [vmem:[%s832_s0 + $0x1c8] sm:$0xff]  ;;  %v72_v40 = vld [vmem:[%s832_s0 + $0x1d0] sm:$0xff] }
  0x1a   :  { %v193_v0 = vadd.f32 %v321_v2, %v122_v51  ;;  %v194_v3 = vadd.f32 %v321_v2, %v123_v52  ;;  %v125_v4 = vmul.f32 %v316_v1, %v54_v48  ;;  %253 = vst [vmem:[%s835_s3 + $0x108] sm:$0xff] %v189_v56  ;;  %v126_v7 = vmul.f32 %v316_v1, %v55_v53  ;;  %v73_v41 = vld [vmem:[%s832_s0 + $0x1d8] sm:$0xff]  ;;  %v74_v46 = vld [vmem:[%s832_s0 + $0x1e0] sm:$0xff]  ;;  %v75_v47 = vld [vmem:[%s832_s0 + $0x1e8] sm:$0xff] }
  0x1b   :  { %254 = vst [vmem:[%s835_s3 + $0x110] sm:$0xff] %v190_v57  ;;  %255 = vst [vmem:[%s835_s3 + $0x118] sm:$0xff] %v191_v58  ;;  %v195_v6 = vadd.f32 %v321_v2, %v124_v59  ;;  %v127_v8 = vmul.f32 %v316_v1, %v56_v54  ;;  %v128_v9 = vmul.f32 %v316_v1, %v57_v55  ;;  %v76_v48 = vld [vmem:[%s832_s0 + $0x1f0] sm:$0xff]  ;;  %v77_v53 = vld [vmem:[%s832_s0 + $0x1f8] sm:$0xff] }
  0x1c   :  { %256 = vst [vmem:[%s835_s3 + $0x120] sm:$0xff] %v192_v63  ;;  %257 = vst [vmem:[%s835_s3 + $0x128] sm:$0xff] %v193_v0  ;;  %v196_v11 = vadd.f32 %v321_v2, %v125_v4  ;;  %v129_v12 = vmul.f32 %v316_v1, %v58_v60  ;;  %v130_v13 = vmul.f32 %v316_v1, %v59_v61 }
  0x1d   :  { %258 = vst [vmem:[%s835_s3 + $0x130] sm:$0xff] %v194_v3  ;;  %v131_v14 = vmul.f32 %v316_v1, %v60_v62  ;;  %259 = vst [vmem:[%s835_s3 + $0x138] sm:$0xff] %v195_v6  ;;  %v197_v18 = vadd.f32 %v321_v2, %v126_v7  ;;  %v198_v19 = vadd.f32 %v321_v2, %v127_v8 }
  0x1e   :  { %v199_v20 = vadd.f32 %v321_v2, %v128_v9  ;;  %v132_v21 = vmul.f32 %v316_v1, %v61_v5  ;;  %260 = vst [vmem:[%s835_s3 + $0x140] sm:$0xff] %v196_v11  ;;  %v200_v25 = vadd.f32 %v321_v2, %v129_v12  ;;  %v201_v26 = vadd.f32 %v321_v2, %v130_v13 }
  0x1f   :  { %v202_v27 = vadd.f32 %v321_v2, %v131_v14  ;;  %v133_v28 = vmul.f32 %v316_v1, %v62_v10  ;;  %261 = vst [vmem:[%s835_s3 + $0x148] sm:$0xff] %v197_v18  ;;  %262 = vst [vmem:[%s835_s3 + $0x150] sm:$0xff] %v198_v19  ;;  %v134_v31 = vmul.f32 %v316_v1, %v63_v15 }
  0x20   :  { %263 = vst [vmem:[%s835_s3 + $0x158] sm:$0xff] %v199_v20  ;;  %v203_v30 = vadd.f32 %v321_v2, %v132_v21  ;;  %v135_v32 = vmul.f32 %v316_v1, %v64_v16  ;;  %v136_v33 = vmul.f32 %v316_v1, %v65_v17  ;;  %264 = vst [vmem:[%s835_s3 + $0x160] sm:$0xff] %v200_v25 }
  0x21   :  { %265 = vst [vmem:[%s835_s3 + $0x168] sm:$0xff] %v201_v26  ;;  %266 = vst [vmem:[%s835_s3 + $0x170] sm:$0xff] %v202_v27  ;;  %v204_v35 = vadd.f32 %v321_v2, %v133_v28  ;;  %v137_v36 = vmul.f32 %v316_v1, %v66_v22  ;;  %v138_v37 = vmul.f32 %v316_v1, %v67_v23 }
  0x22   :  { %v139_v38 = vmul.f32 %v316_v1, %v68_v24  ;;  %267 = vst [vmem:[%s835_s3 + $0x178] sm:$0xff] %v203_v30  ;;  %v205_v42 = vadd.f32 %v321_v2, %v134_v31  ;;  %v206_v43 = vadd.f32 %v321_v2, %v135_v32  ;;  %v207_v44 = vadd.f32 %v321_v2, %v136_v33 }
  0x23   :  { %v140_v45 = vmul.f32 %v316_v1, %v69_v29  ;;  %268 = vst [vmem:[%s835_s3 + $0x180] sm:$0xff] %v204_v35  ;;  %v208_v49 = vadd.f32 %v321_v2, %v137_v36  ;;  %v209_v50 = vadd.f32 %v321_v2, %v138_v37  ;;  %v141_v52 = vmul.f32 %v316_v1, %v70_v34 }
  0x24   :  { %v210_v51 = vadd.f32 %v321_v2, %v139_v38  ;;  %269 = vst [vmem:[%s835_s3 + $0x188] sm:$0xff] %v205_v42  ;;  %270 = vst [vmem:[%s835_s3 + $0x190] sm:$0xff] %v206_v43  ;;  %v142_v55 = vmul.f32 %v316_v1, %v71_v39  ;;  %v143_v56 = vmul.f32 %v316_v1, %v72_v40 }
  0x25   :  { %271 = vst [vmem:[%s835_s3 + $0x198] sm:$0xff] %v207_v44  ;;  %v211_v54 = vadd.f32 %v321_v2, %v140_v45  ;;  %v144_v57 = vmul.f32 %v316_v1, %v73_v41  ;;  %272 = vst [vmem:[%s835_s3 + $0x1a0] sm:$0xff] %v208_v49  ;;  %v212_v58 = vadd.f32 %v321_v2, %v141_v52 }
  0x26   :  { %273 = vst [vmem:[%s835_s3 + $0x1a8] sm:$0xff] %v209_v50  ;;  %274 = vst [vmem:[%s835_s3 + $0x1b0] sm:$0xff] %v210_v51  ;;  %v145_v59 = vmul.f32 %v316_v1, %v74_v46  ;;  %v146_v60 = vmul.f32 %v316_v1, %v75_v47  ;;  %v147_v61 = vmul.f32 %v316_v1, %v76_v48 }
  0x27   :  { %275 = vst [vmem:[%s835_s3 + $0x1b8] sm:$0xff] %v211_v54  ;;  %v213_v62 = vadd.f32 %v321_v2, %v142_v55  ;;  %v214_v63 = vadd.f32 %v321_v2, %v143_v56  ;;  %v215_v0 = vadd.f32 %v321_v2, %v144_v57  ;;  %v148_v3 = vmul.f32 %v316_v1, %v77_v53 }
  0x28   :  { %276 = vst [vmem:[%s835_s3 + $0x1c0] sm:$0xff] %v212_v58  ;;  %v216_v4 = vadd.f32 %v321_v2, %v145_v59  ;;  %v217_v5 = vadd.f32 %v321_v2, %v146_v60  ;;  %v218_v6 = vadd.f32 %v321_v2, %v147_v61 }
  0x29   :  { %277 = vst [vmem:[%s835_s3 + $0x1c8] sm:$0xff] %v213_v62  ;;  %278 = vst [vmem:[%s835_s3 + $0x1d0] sm:$0xff] %v214_v63  ;;  %v219_v1 = vadd.f32 %v321_v2, %v148_v3 }
  0x2a   :  { %279 = vst [vmem:[%s835_s3 + $0x1d8] sm:$0xff] %v215_v0  ;;  %280 = vst [vmem:[%s835_s3 + $0x1e0] sm:$0xff] %v216_v4 }
  0x2b   :  { %281 = vst [vmem:[%s835_s3 + $0x1e8] sm:$0xff] %v217_v5  ;;  %282 = vst [vmem:[%s835_s3 + $0x1f0] sm:$0xff] %v218_v6 }
  0x2c   :  { %283 = vst [vmem:[%s835_s3 + $0x1f8] sm:$0xff] %v219_v1 }

// kernel: unet_innermost_forward.2
= control target key start
LH: loop header
LB: loop body
LE: loop exit
PB: predicated region body
PF: predicated region fallthrough
CT: control target
= control target key end

     0   :  { %s5509_s21 = smov 0   ;;  %s6726_s0 = inlined_call_operand.vmem [shape: f32[2,9,9,16], index: 0, kind: input, shape index: {}]   ;;  %s6727_s1 = inlined_call_operand.vmem [shape: f32[4,16,128], index: 1, kind: input, shape index: {}]   ;;  %s6728_s2 = inlined_call_operand.vmem [shape: f32[1,128], index: 2, kind: input, shape index: {}]   ;;  %s6729_s3 = inlined_call_operand.vmem [shape: f32[4,4,128,128], index: 3, kind: input, shape index: {}]   ;;  %s6730_s4 = inlined_call_operand.vmem [shape: f32[2,4,64,128], index: 4, kind: output, shape index: {0}]   ;;  %s6731_s5 = inlined_call_operand.vmem [shape: f32[2,1,128], index: 5, kind: output, shape index: {1}]   ;;  %s6732_s6 = inlined_call_operand.vmem [shape: f32[2,1,128], index: 6, kind: output, shape index: {2}]  }
   0x1 LB: > { %s3297_s22 = sadd.s32 4294967295, %s5471_s21   ;;  %p3301_p0 = scmp.ge.s32.totalorder %s5471_s21, 1  ;;  %s5471_s21 = sphi %s5509_s21, %s17_s21  }
   0x2   : > { %p217_p1 = scmp.lt.s32.totalorder %s5471_s21, 3 }
   0x4   : > { %p218_p2 = pnand %p3301_p0, %p217_p1 }
   0x5   : > { %v3305_v0 = vld [vmem:[%s6727_s1 + $0x10] sm:$0xff] (!%p218_p2)  ;;  %v3306_v1 = vld [vmem:[%s6727_s1 + $0x18] sm:$0xff] (!%p218_p2)  ;;  %p253_p3 = scmp.lt.s32.totalorder (!%p218_p2), %s3297_s22, 1  ;;  %v341_v2 = vld [vmem:[%s6727_s1] sm:$0xff] (!%p218_p2)  ;;  %vm359_vm0 = vcmask (!%p218_p2), 1046528   ;;  %vm387_vm1 = vcmask (!%p218_p2), 130048  }
   0x6   : > { %221 = sbr.rel (%p218_p2) target bundleno = 801 (0x321), region = 36  ;;  %v4803_v3 = vpack.c.bf16 (!%p218_p2), %v3306_v1, %v3305_v0  ;;  %v342_v4 = vld [vmem:[%s6727_s1 + $0x8] sm:$0xff] (!%p218_p2)  ;;  %v3344_v6 = vld [vmem:[%s6729_s3 + $0x80] sm:$0xff] (!%p218_p2)  ;;  %v3346_v9 = vld [vmem:[%s6729_s3 + $0x90] sm:$0xff] (!%p218_p2) }
   0x7   : > { %v5531_v5 = vpack.c.bf16 (!%p218_p2), %v342_v4, %v341_v2  ;;  %v3345_v7 = vld [vmem:[%s6729_s3 + $0x88] sm:$0xff] (!%p218_p2)  ;;  %v3347_v10 = vld [vmem:[%s6729_s3 + $0x98] sm:$0xff] (!%p218_p2)  ;;  %v3348_v12 = vld [vmem:[%s6729_s3 + $0xa0] sm:$0xff] (!%p218_p2) }
   0x8   : > { %4804 = vmatprep.subr.bf16.mxu0 (!%p218_p2), %v4803_v3  ;;  %v4819_v8 = vpack.c.bf16 (!%p218_p2), %v3345_v7, %v3344_v6  ;;  %v4823_v11 = vpack.c.bf16 (!%p218_p2), %v3347_v10, %v3346_v9  ;;  %v3349_v13 = vld [vmem:[%s6729_s3 + $0xa8] sm:$0xff] (!%p218_p2)  ;;  %v3323_v14 = vld [vmem:[%s6727_s1 + $0x20] sm:$0xff] (!%p218_p2) }
   0x9   : > { %4806 = vmatpush3.bf16.msra.mxu0 (!%p218_p2), %v4803_v3  ;;  %v3324_v15 = vld [vmem:[%s6727_s1 + $0x28] sm:$0xff] (!%p218_p2)  ;;  %v4827_v19 = vpack.c.bf16 (!%p218_p2), %v3349_v13, %v3348_v12 }
   0xa   : > { %4808 = vmatprep.subr.bf16.mxu0 (!%p218_p2), %v5531_v5  ;;  %4820 = vmatprep.subr.bf16.mxu1 (!%p218_p2), %v4819_v8  ;;  %v5569_v25 = vpack.c.bf16 (!%p218_p2), %v3324_v15, %v3323_v14 }
   0xb   : > { %4822 = vmatpush3.bf16.msra.mxu1 (!%p218_p2), %v4819_v8 }
   0xc   : > { %4824 = vmatprep.subr.bf16.mxu1 (!%p218_p2), %v4823_v11 }
   0xd   : > { %s6734_s22 = smov (!%p253_p3, %s3297_s22), 1 }
   0xe   : > { %s5451_s11 = smul.u32 144, %s6734_s22  ;;  %s268_s14 = scalar_lea.vmem %s6732_s6, %s6734_s22 }
   0xf   : > { %4826 = vmatpush3.bf16.msra.mxu1 %v4823_v11 }
  0x10   : > { %s5556_s24 = scalar_lea.vmem %s6726_s0, %s5451_s11  ;;  %4828 = vmatprep.subr.bf16.mxu1 %v4827_v19  ;;  %s265_s11 = scalar_lea.vmem %s6731_s5, %s6734_s22 }
  0x11   : > { %v269_v16 = vld [vmem:[%s5556_s24] sm:$0xff]  ;;  %v270_v17 = vld [vmem:[%s5556_s24 + $0x8] sm:$0x1]  ;;  %v271_v18 = vld [vmem:[%s5556_s24 + $0x10] sm:$0xff] }
  0x12   : > { %vm287_vm2 = vcmp.ge.f32.partialorder %v269_v16, 0.0  ;;  %vm288_vm3 = vcmp.ge.f32.partialorder %v270_v17, 0.0  ;;  %v305_v20 = vmul.f32 0.2, %v269_v16  ;;  %v306_v21 = vmul.f32 0.2, %v270_v17 }
  0x13   : > { %v272_v22 = vld [vmem:[%s5556_s24 + $0x18] sm:$0x1]  ;;  %vm289_vm4 = vcmp.ge.f32.partialorder %v271_v18, 0.0  ;;  %v307_v23 = vmul.f32 0.2, %v271_v18  ;;  %v273_v24 = vld [vmem:[%s5556_s24 + $0x20] sm:$0xff]  ;;  %4830 = vmatpush3.bf16.msra.mxu1 %v4827_v19 }
  0x14   : > { %v5571_v26 = vsel %vm287_vm2, %v269_v16, %v305_v20  ;;  %v324_v27 = vsel %vm288_vm3, %v270_v17, %v306_v21  ;;  %vm290_vm5 = vcmp.ge.f32.partialorder %v272_v22, 0.0  ;;  %v308_v28 = vmul.f32 0.2, %v272_v22  ;;  %v274_v29 = vld [vmem:[%s5556_s24 + $0x28] sm:$0x1]  ;;  %v275_v30 = vld [vmem:[%s5556_s24 + $0x30] sm:$0xff] }
  0x15   : > { %v360_v31 = vrot.slane %v5571_v26, 1  ;;  %v361_v32 = vrot.slane %v324_v27, 1  ;;  %v5576_v33 = vsel %vm289_vm4, %v271_v18, %v307_v23  ;;  %vm291_vm6 = vcmp.ge.f32.partialorder %v273_v24, 0.0  ;;  %v276_v34 = vld [vmem:[%s5556_s24 + $0x38] sm:$0x1]  ;;  %v277_v38 = vld [vmem:[%s5556_s24 + $0x40] sm:$0xff] }
  0x16   : > { %v326_v35 = vsel %vm290_vm5, %v272_v22, %v308_v28  ;;  %v363_v36 = vrot.slane %v5576_v33, 1  ;;  %vm292_vm7 = vcmp.ge.f32.partialorder %v274_v29, 0.0  ;;  %v309_v37 = vmul.f32 0.2, %v273_v24  ;;  %v278_v42 = vld [vmem:[%s5556_s24 + $0x48] sm:$0x1] }
  0x17   : > { %v362_v39 = vsel %vm359_vm0, %v360_v31, %v361_v32  ;;  %v364_v40 = vrot.slane %v326_v35, 1  ;;  %v310_v41 = vmul.f32 0.2, %v274_v29  ;;  %vm293_vm8 = vcmp.ge.f32.partialorder %v275_v30, 0.0  ;;  %v279_v49 = vld [vmem:[%s5556_s24 + $0x50] sm:$0xff]  ;;  %v281_v54 = vld [vmem:[%s5556_s24 + $0x60] sm:$0xff] }
  0x18   : > { %4039 = vmatprep.mubr.msk.f32.mxu0 %vm387_vm1, %v362_v39  ;;  %v5584_v43 = vsel %vm291_vm6, %v273_v24, %v309_v37  ;;  %vm294_vm9 = vcmp.ge.f32.partialorder %v276_v34, 0.0  ;;  %v311_v44 = vmul.f32 0.2, %v275_v30  ;;  %v312_v45 = vmul.f32 0.2, %v276_v34  ;;  %v283_v2 = vld [vmem:[%s5556_s24 + $0x70] sm:$0xff] }
  0x19   : > { %v5587_v46 = vsel %vm359_vm0, %v363_v36, %v364_v40  ;;  %v328_v47 = vsel %vm292_vm7, %v274_v29, %v310_v41  ;;  %v366_v48 = vrot.slane %v5584_v43, 1  ;;  %vm295_vm10 = vcmp.ge.f32.partialorder %v277_v38, 0.0  ;;  %v280_v50 = vld [vmem:[%s5556_s24 + $0x58] sm:$0x1]  ;;  %v282_v61 = vld [vmem:[%s5556_s24 + $0x68] sm:$0x1] }
  0x1a   : > { %4040 = vmatmul.mubr.msk.f32.vlgmr.msra.gmra.mrb[0].mxu0 %vm387_vm1, %v5587_v46  ;;  %v367_v51 = vrot.slane %v328_v47, 1  ;;  %v5595_v52 = vsel %vm293_vm8, %v275_v30, %v311_v44  ;;  %v330_v53 = vsel %vm294_vm9, %v276_v34, %v312_v45  ;;  %vm296_vm11 = vcmp.ge.f32.partialorder %v278_v42, 0.0  ;;  %v284_v6 = vld [vmem:[%s5556_s24 + $0x78] sm:$0x1]  ;;  %v3350_v19 = vld [vmem:[%s6729_s3 + $0xb0] sm:$0xff]  ;;  %v3352_v24 = vld [vmem:[%s6729_s3 + $0xc0] sm:$0xff] }
  0x1b   : > { %4810 = vmatpush3.bf16.msra.mxu0 %v5531_v5  ;;  %v369_v55 = vrot.slane %v5595_v52, 1  ;;  %v370_v56 = vrot.slane %v330_v53, 1  ;;  %v313_v57 = vmul.f32 0.2, %v277_v38  ;;  %v314_v58 = vmul.f32 0.2, %v278_v42 }
  0x1c   : > { %v5601_v59 = vsel %vm359_vm0, %v366_v48, %v367_v51  ;;  %vm297_vm12 = vcmp.ge.f32.partialorder %v279_v49, 0.0  ;;  %vm298_vm13 = vcmp.ge.f32.partialorder %v280_v50, 0.0  ;;  %v315_v60 = vmul.f32 0.2, %v279_v49  ;;  %4812 = vmatprep.subr.bf16.mxu0 %v5569_v25  ;;  %v3351_v20 = vld [vmem:[%s6729_s3 + $0xb8] sm:$0xff]  ;;  %v3353_v27 = vld [vmem:[%s6729_s3 + $0xc8] sm:$0xff] }
  0x1d   : > { %4042 = vmatprep.mubr.msk.f32.mxu0 %vm387_vm1, %v5601_v59  ;;  %v5608_v62 = vsel %vm359_vm0, %v369_v55, %v370_v56  ;;  %v5611_v63 = vsel %vm295_vm10, %v277_v38, %v313_v57  ;;  %v332_v0 = vsel %vm296_vm11, %v278_v42, %v314_v58  ;;  %v316_v1 = vmul.f32 0.2, %v280_v50  ;;  %v3333_v34 = vld [vmem:[%s6727_s1 + $0x30] sm:$0xff]  ;;  %v3334_v35 = vld [vmem:[%s6727_s1 + $0x38] sm:$0xff]  ;;  %v285_v39 = vld [vmem:[%s5556_s24 + $0x80] sm:$0xff] }
  0x1e   : > { %4043 = vmatmul.mubr.msk.f32.gmra.mrb[2].mxu0 %vm387_vm1, %v5608_v62  ;;  %v372_v3 = vrot.slane %v5611_v63, 1  ;;  %v373_v4 = vrot.slane %v332_v0, 1  ;;  %v333_v5 = vsel %vm297_vm12, %v279_v49, %v315_v60  ;;  %vm299_vm14 = vcmp.ge.f32.partialorder %v281_v54, 0.0  ;;  %v286_v41 = vld [vmem:[%s5556_s24 + $0x88] sm:$0x1]  ;;  %v3394_v42 = vld [vmem:[%s6729_s3 + $0x210] sm:$0xff] }
  0x1f   : > { %v334_v7 = vsel %vm298_vm13, %v280_v50, %v316_v1  ;;  %v375_v8 = vrot.slane %v333_v5, 1  ;;  %vm300_vm15 = vcmp.ge.f32.partialorder %v282_v61, 0.0  ;;  %v317_v9 = vmul.f32 0.2, %v281_v54  ;;  %v3396_v47 = vld [vmem:[%s6729_s3 + $0x220] sm:$0xff]  ;;  %v3397_v48 = vld [vmem:[%s6729_s3 + $0x228] sm:$0xff] }
  0x20   : > { %v5621_v10 = vsel %vm359_vm0, %v372_v3, %v373_v4  ;;  %v376_v11 = vrot.slane %v334_v7, 1  ;;  %v318_v12 = vmul.f32 0.2, %v282_v61  ;;  %vm301_vm2 = vcmp.ge.f32.partialorder %v283_v2, 0.0  ;;  %v3398_v50 = vld [vmem:[%s6729_s3 + $0x230] sm:$0xff]  ;;  %v3399_v51 = vld [vmem:[%s6729_s3 + $0x238] sm:$0xff] }
  0x21   : > { %4045 = vmatprep.mubr.msk.f32.mxu0 %vm387_vm1, %v5621_v10  ;;  %v335_v13 = vsel %vm299_vm14, %v281_v54, %v317_v9  ;;  %vm302_vm3 = vcmp.ge.f32.partialorder %v284_v6, 0.0  ;;  %v319_v14 = vmul.f32 0.2, %v283_v2  ;;  %v320_v15 = vmul.f32 0.2, %v284_v6  ;;  %v3400_v55 = vld [vmem:[%s6729_s3 + $0x240] sm:$0xff] }
  0x22   : > { %v5626_v16 = vsel %vm359_vm0, %v375_v8, %v376_v11  ;;  %v336_v17 = vsel %vm300_vm15, %v282_v61, %v318_v12  ;;  %v378_v18 = vrot.slane %v335_v13, 1  ;;  %v4831_v31 = vpack.c.bf16 %v3351_v20, %v3350_v19  ;;  %v3401_v56 = vld [vmem:[%s6729_s3 + $0x248] sm:$0xff]  ;;  %v3355_v60 = vld [vmem:[%s6729_s3 + $0xd8] sm:$0xff]  ;;  %v3402_v61 = vld [vmem:[%s6729_s3 + $0x250] sm:$0xff]  ;;  %s3610_s24 = sshll.u32 %s6734_s22, 8 }
  0x23   : > { %4046 = vmatmul.mubr.msk.f32.gmra.mrb[4].mxu0 %vm387_vm1, %v5626_v16  ;;  %v379_v21 = vrot.slane %v336_v17, 1  ;;  %v337_v22 = vsel %vm301_vm2, %v283_v2, %v319_v14  ;;  %v338_v23 = vsel %vm302_vm3, %v284_v6, %v320_v15  ;;  %v4835_v36 = vpack.c.bf16 %v3353_v27, %v3352_v24  ;;  %v3356_v1 = vld [vmem:[%s6729_s3 + $0xe0] sm:$0xff]  ;;  %v3357_v2 = vld [vmem:[%s6729_s3 + $0xe8] sm:$0xff]  ;;  %v3358_v8 = vld [vmem:[%s6729_s3 + $0xf0] sm:$0xff]  ;;  %s6671_s8 = scalar_lea.vmem %s6730_s4, %s3610_s24 }
  0x24   : > { %v381_v28 = vrot.slane %v337_v22, 1  ;;  %v382_v29 = vrot.slane %v338_v23, 1  ;;  %4832 = vmatprep.subr.bf16.mxu1 %v4831_v31  ;;  %v4815_v37 = vpack.c.bf16 %v3334_v35, %v3333_v34  ;;  %v321_v40 = vmul.f32 0.2, %v285_v39  ;;  %v3404_v3 = vld [vmem:[%s6729_s3 + $0x260] sm:$0xff]  ;;  %v3359_v9 = vld [vmem:[%s6729_s3 + $0xf8] sm:$0xff] }
  0x25   : > { %v5643_v30 = vsel %vm359_vm0, %v378_v18, %v379_v21  ;;  %4834 = vmatpush3.bf16.msra.mxu1 %v4831_v31  ;;  %vm303_vm4 = vcmp.ge.f32.partialorder %v285_v39, 0.0  ;;  %v322_v44 = vmul.f32 0.2, %v286_v41  ;;  %vm304_vm5 = vcmp.ge.f32.partialorder %v286_v41, 0.0  ;;  %v3407_v12 = vld [vmem:[%s6729_s3 + $0x278] sm:$0xff]  ;;  %v996_v14 = vld [vmem:[%s6729_s3] sm:$0xff] }
  0x26   : > { %4048 = vmatprep.mubr.msk.f32.mxu0 %vm387_vm1, %v5643_v30  ;;  %v5648_v32 = vsel %vm359_vm0, %v381_v28, %v382_v29  ;;  %4836 = vmatprep.subr.bf16.mxu1 %v4835_v36  ;;  %v4991_v54 = vpack.c.bf16 %v3399_v51, %v3398_v50  ;;  %v4995_v58 = vpack.c.bf16 %v3401_v56, %v3400_v55  ;;  %v5473_v7 = vmov 0.0   ;;  %v997_v15 = vld [vmem:[%s6729_s3 + $0x8] sm:$0xff]  ;;  %v5803_v21 = vld [vmem:[%s6728_s2] ss:$0 sm:$0xff]  ;;  %v998_v27 = vld [vmem:[%s6729_s3 + $0x10] sm:$0xff] }
  0x27   : > { %4049 = vmatmul.mubr.msk.f32.gmra.mrb[6].mxu0 %vm387_vm1, %v5648_v32  ;;  %v340_v49 = vsel %vm304_vm5, %v286_v41, %v322_v44  ;;  %v4843_v4 = vpack.c.bf16 %v3357_v2, %v3356_v1  ;;  %898 = vst [vmem:[#allocation2 + $0x20] sm:$0xff] %v5473_v7  ;;  %899 = vst [vmem:[#allocation2 + $0x28] sm:$0x3] %v5473_v7  ;;  %v4847_v11 = vpack.c.bf16 %v3359_v9, %v3358_v8  ;;  %v3425_v18 = vld [vmem:[%s6729_s3 + $0x308] sm:$0xff]  ;;  %v999_v29 = vld [vmem:[%s6729_s3 + $0x18] sm:$0xff] }
  0x28   : > { %4055 = vmatprep.mubr.msk.f32.mxu0 %vm387_vm1, %v5571_v26  ;;  %v3393_v26 = vld [vmem:[%s6729_s3 + $0x208] sm:$0xff]  ;;  %v751_v53 = vrot.slane %v340_v49, 1  ;;  %894 = vst [vmem:[#allocation2] sm:$0xff] %v5473_v7  ;;  %895 = vst [vmem:[#allocation2 + $0x8] sm:$0x3] %v5473_v7  ;;  %v4851_v17 = vpack.c.bf16 %v997_v15, %v996_v14  ;;  %v3427_v31 = vld [vmem:[%s6729_s3 + $0x318] sm:$0xff] }
  0x29   : > { %4838 = vmatpush3.bf16.msra.mxu1 %v4835_v36  ;;  %896 = vst [vmem:[#allocation2 + $0x10] sm:$0xff] %v5473_v7  ;;  %897 = vst [vmem:[#allocation2 + $0x18] sm:$0x3] %v5473_v7  ;;  %v3429_v41 = vld [vmem:[%s6729_s3 + $0x328] sm:$0xff]  ;;  %v1003_v51 = vld [vmem:[%s6729_s3 + $0x38] sm:$0xff] }
  0x2a   : > { %900 = vst [vmem:[#allocation2 + $0x30] sm:$0xff] %v5473_v7  ;;  %901 = vst [vmem:[#allocation2 + $0x38] sm:$0x3] %v5473_v7  ;;  %v3433_v1 = vld [vmem:[%s6729_s3 + $0x348] sm:$0xff]  ;;  %v1007_v8 = vld [vmem:[%s6729_s3 + $0x58] sm:$0xff] }
  0x2b   : > { %4056 = vmatmul.mubr.msk.f32.vlgmr.msra.gmra.mrb[0].mxu0 %vm387_vm1, %v5576_v33  ;;  %902 = vst [vmem:[#allocation2 + $0x40] sm:$0xff] %v5473_v7  ;;  %903 = vst [vmem:[#allocation2 + $0x48] sm:$0x3] %v5473_v7  ;;  %v3434_v9 = vld [vmem:[%s6729_s3 + $0x350] sm:$0xff]  ;;  %v1009_v14 = vld [vmem:[%s6729_s3 + $0x68] sm:$0xff] }
  0x2c   : > { %4814 = vmatpush3.bf16.msra.mxu0 %v5569_v25  ;;  %4058 = vmatprep.mubr.msk.f32.mxu0 %vm387_vm1, %v5584_v43  ;;  %v3392_v25 = vld [vmem:[%s6729_s3 + $0x200] sm:$0xff]  ;;  %904 = vst [vmem:[#allocation2 + $0x50] sm:$0xff] %v5473_v7  ;;  %905 = vst [vmem:[#allocation2 + $0x58] sm:$0x3] %v5473_v7 }
  0x2d   : > { %4816 = vmatprep.subr.bf16.mxu0 %v4815_v37  ;;  %v4979_v38 = vpack.c.bf16 %v3393_v26, %v3392_v25  ;;  %906 = vst [vmem:[#allocation2 + $0x60] sm:$0xff] %v5473_v7  ;;  %907 = vst [vmem:[#allocation2 + $0x68] sm:$0x3] %v5473_v7  ;;  %v4855_v25 = vpack.c.bf16 %v999_v29, %v998_v27  ;;  %v3436_v15 = vld [vmem:[%s6729_s3 + $0x360] sm:$0xff]  ;;  %v3361_v27 = vld [vmem:[%s6729_s3 + $0x108] sm:$0xff] }
  0x2e   : > { %908 = vst [vmem:[#allocation2 + $0x70] sm:$0xff] %v5473_v7  ;;  %909 = vst [vmem:[#allocation2 + $0x78] sm:$0x3] %v5473_v7  ;;  %v3441_v29 = vld [vmem:[%s6729_s3 + $0x388] sm:$0xff] }
  0x2f   : > { %4059 = vmatmul.mubr.msk.f32.gmra.mrb[2].mxu0 %vm387_vm1, %v5595_v52  ;;  %910 = vst [vmem:[#allocation2 + $0x80] sm:$0xff] %v5473_v7  ;;  %911 = vst [vmem:[#allocation2 + $0x88] sm:$0x3] %v5473_v7  ;;  %v931_v19 = vld [vmem:[#allocation2 + $0x1] sm:$0xff] }
  0x30   : > { %4061 = vmatprep.mubr.msk.f32.mxu0 %vm387_vm1, %v5611_v63  ;;  %912 = vst [vmem:[#allocation2 + $0x90] sm:$0xff] %v5473_v7  ;;  %913 = vst [vmem:[#allocation2 + $0x98] sm:$0x3] %v5473_v7  ;;  %4131 = vmatprep.mubr.f32.mxu1 %v931_v19 }
  0x33   : > { %4062 = vmatmul.mubr.msk.f32.gmra.mrb[4].mxu0 %vm387_vm1, %v333_v5 }
  0x34   : > { %4064 = vmatprep.mubr.msk.f32.mxu0 %vm387_vm1, %v335_v13 }
  0x37   : > { %4065 = vmatmul.mubr.msk.f32.gmra.mrb[6].mxu0 %vm387_vm1, %v337_v22 }
  0x38   : > { %4071 = vmatprep.mubr.msk.f32.mxu0 %vm387_vm1, %v5576_v33  ;;  %v339_v33 = vsel %vm303_vm4, %v285_v39, %v321_v40  ;;  %v1001_v40 = vld [vmem:[%s6729_s3 + $0x28] sm:$0xff] }
  0x3b   : > { %4072 = vmatmul.mubr.msk.f32.vlgmr.msra.gmra.mrb[0].mxu0 %vm387_vm1, %v5584_v43  ;;  %v3395_v43 = vld [vmem:[%s6729_s3 + $0x218] sm:$0xff] }
  0x3c   : > { %4818 = vmatpush3.bf16.msra.mxu0 %v4815_v37  ;;  %4074 = vmatprep.mubr.msk.f32.mxu0 %vm387_vm1, %v5595_v52  ;;  %v4983_v45 = vpack.c.bf16 %v3395_v43, %v3394_v42  ;;  %v750_v52 = vrot.slane %v339_v33, 1 }
  0x3d   : > { %4980 = vmatprep.subr.bf16.mxu0 %v4979_v38 }
  0x3e   : > { %v752_v57 = vsel %vm359_vm0, %v750_v52, %v751_v53  ;;  %v3430_v52 = vld [vmem:[%s6729_s3 + $0x330] sm:$0xff]  ;;  %v3431_v53 = vld [vmem:[%s6729_s3 + $0x338] sm:$0xff] }
  0x3f   : > { %4075 = vmatmul.mubr.msk.f32.gmra.mrb[2].mxu0 %vm387_vm1, %v5611_v63  ;;  %v3403_v63 = vld [vmem:[%s6729_s3 + $0x258] sm:$0xff] }
  0x40   : > { %4077 = vmatprep.mubr.msk.f32.mxu0 %vm387_vm1, %v333_v5  ;;  %v4999_v0 = vpack.c.bf16 %v3403_v63, %v3402_v61  ;;  %v3405_v5 = vld [vmem:[%s6729_s3 + $0x268] sm:$0xff]  ;;  %v1004_v61 = vld [vmem:[%s6729_s3 + $0x40] sm:$0xff] }
  0x41   : > { %v5003_v6 = vpack.c.bf16 %v3405_v5, %v3404_v3  ;;  %v1006_v5 = vld [vmem:[%s6729_s3 + $0x50] sm:$0xff] }
  0x43   : > { %4078 = vmatmul.mubr.msk.f32.gmra.mrb[4].mxu0 %vm387_vm1, %v335_v13 }
  0x44   : > { %4080 = vmatprep.mubr.msk.f32.mxu0 %vm387_vm1, %v337_v22 }
  0x47   : > { %4081 = vmatmul.mubr.msk.f32.gmra.mrb[6].mxu0 %vm387_vm1, %v339_v33  ;;  %v3428_v33 = vld [vmem:[%s6729_s3 + $0x320] sm:$0xff] }
  0x48   : > { %4087 = vmatprep.mubr.msk.f32.mxu0 %vm387_vm1, %v5587_v46  ;;  %v4987_v46 = vpack.c.bf16 %v3397_v48, %v3396_v47  ;;  %v5019_v49 = vpack.c.bf16 %v3429_v41, %v3428_v33  ;;  %v3365_v33 = vld [vmem:[%s6729_s3 + $0x128] sm:$0xff] }
  0x4b   : > { %4088 = vmatmul.mubr.msk.f32.vlgmr.msra.gmra.mrb[0].mxu0 %vm387_vm1, %v5601_v59  ;;  %v3354_v59 = vld [vmem:[%s6729_s3 + $0xd0] sm:$0xff] }
  0x4c   : > { %4090 = vmatprep.mubr.msk.f32.mxu0 %vm387_vm1, %v5608_v62  ;;  %4982 = vmatpush3.bf16.msra.mxu0 %v4979_v38  ;;  %v4839_v62 = vpack.c.bf16 %v3355_v60, %v3354_v59  ;;  %v1000_v38 = vld [vmem:[%s6729_s3 + $0x20] sm:$0xff]  ;;  %v5023_v60 = vpack.c.bf16 %v3431_v53, %v3430_v52  ;;  %v3446_v52 = vld [vmem:[%s6729_s3 + $0x3b0] sm:$0xff]  ;;  %v3447_v53 = vld [vmem:[%s6729_s3 + $0x3b8] sm:$0xff] }
  0x4d   : > { %4984 = vmatprep.subr.bf16.mxu0 %v4983_v45  ;;  %v4859_v48 = vpack.c.bf16 %v1001_v40, %v1000_v38  ;;  %v3364_v40 = vld [vmem:[%s6729_s3 + $0x120] sm:$0xff] }
  0x4e   : > { %4840 = vmatprep.subr.bf16.mxu1 %v4839_v62 }
  0x4f   : > { %4091 = vmatmul.mubr.msk.f32.gmra.mrb[2].mxu0 %vm387_vm1, %v5621_v10  ;;  %4842 = vmatpush3.bf16.msra.mxu1 %v4839_v62  ;;  %v3406_v10 = vld [vmem:[%s6729_s3 + $0x270] sm:$0xff]  ;;  %v1005_v62 = vld [vmem:[%s6729_s3 + $0x48] sm:$0xff] }
  0x50   : > { %4093 = vmatprep.mubr.msk.f32.mxu0 %vm387_vm1, %v5626_v16  ;;  %4986 = vmatpush3.bf16.msra.mxu0 %v4983_v45  ;;  %v5007_v13 = vpack.c.bf16 %v3407_v12, %v3406_v10  ;;  %v3424_v16 = vld [vmem:[%s6729_s3 + $0x300] sm:$0xff]  ;;  %v3435_v10 = vld [vmem:[%s6729_s3 + $0x358] sm:$0xff] }
  0x51   : > { %4988 = vmatprep.subr.bf16.mxu0 %v4987_v46  ;;  %4844 = vmatprep.subr.bf16.mxu1 %v4843_v4  ;;  %v5011_v20 = vpack.c.bf16 %v3425_v18, %v3424_v16  ;;  %v5031_v12 = vpack.c.bf16 %v3435_v10, %v3434_v9  ;;  %v3437_v16 = vld [vmem:[%s6729_s3 + $0x368] sm:$0xff]  ;;  %v3451_v9 = vld [vmem:[%s6729_s3 + $0x3d8] sm:$0xff] }
  0x52   : > { %v5035_v18 = vpack.c.bf16 %v3437_v16, %v3436_v15  ;;  %v3452_v15 = vld [vmem:[%s6729_s3 + $0x3e0] sm:$0xff]  ;;  %v3453_v16 = vld [vmem:[%s6729_s3 + $0x3e8] sm:$0xff] }
  0x53   : > { %4094 = vmatmul.mubr.msk.f32.gmra.mrb[4].mxu0 %vm387_vm1, %v5643_v30  ;;  %4846 = vmatpush3.bf16.msra.mxu1 %v4843_v4  ;;  %v3426_v30 = vld [vmem:[%s6729_s3 + $0x310] sm:$0xff]  ;;  %v4867_v4 = vpack.c.bf16 %v1005_v62, %v1004_v61  ;;  %v3448_v62 = vld [vmem:[%s6729_s3 + $0x3c0] sm:$0xff] }
  0x54   : > { %4096 = vmatprep.mubr.msk.f32.mxu0 %vm387_vm1, %v5648_v32  ;;  %4990 = vmatpush3.bf16.msra.mxu0 %v4987_v46  ;;  %v5015_v26 = vpack.c.bf16 %v3427_v31, %v3426_v30  ;;  %v1002_v46 = vld [vmem:[%s6729_s3 + $0x30] sm:$0xff] }
  0x55   : > { %4992 = vmatprep.subr.bf16.mxu0 %v4991_v54  ;;  %4848 = vmatprep.subr.bf16.mxu1 %v4847_v11  ;;  %v4863_v59 = vpack.c.bf16 %v1003_v51, %v1002_v46  ;;  %v3366_v46 = vld [vmem:[%s6729_s3 + $0x130] sm:$0xff] }
  0x57   : > { %4097 = vmatmul.mubr.msk.f32.gmra.mrb[6].mxu0 %vm387_vm1, %v752_v57  ;;  %4850 = vmatpush3.bf16.msra.mxu1 %v4847_v11  ;;  %v4871_v11 = vpack.c.bf16 %v1007_v8, %v1006_v5  ;;  %v3370_v5 = vld [vmem:[%s6729_s3 + $0x150] sm:$0xff] }
  0x58   : > { %4994 = vmatpush3.bf16.msra.mxu0 %v4991_v54  ;;  %4852 = vmatprep.subr.bf16.mxu1 %v4851_v17  ;;  %v3450_v8 = vld [vmem:[%s6729_s3 + $0x3d0] sm:$0xff] }
  0x59   : > { %4996 = vmatprep.subr.bf16.mxu0 %v4995_v58  ;;  %4351 = vmatprep.mubr.f32.mxu0 %v931_v19  ;;  %v1010_v19 = vld [vmem:[%s6729_s3 + $0x70] sm:$0xff] }
  0x5c   : > { %4998 = vmatpush3.bf16.msra.mxu0 %v4995_v58 }
  0x5d   : > { %5000 = vmatprep.subr.bf16.mxu0 %v4999_v0 }
  0x60   : > { %5002 = vmatpush3.bf16.msra.mxu0 %v4999_v0  ;;  %v3432_v0 = vld [vmem:[%s6729_s3 + $0x340] sm:$0xff] }
  0x61   : > { %5004 = vmatprep.subr.bf16.mxu0 %v5003_v6 }
  0x64   : > { %5006 = vmatpush3.bf16.msra.mxu0 %v5003_v6  ;;  %v5027_v6 = vpack.c.bf16 %v3433_v1, %v3432_v0 }
  0x65   : > { %5008 = vmatprep.subr.bf16.mxu0 %v5007_v13 }
  0x68   : > { %5010 = vmatpush3.bf16.msra.mxu0 %v5007_v13  ;;  %v1008_v13 = vld [vmem:[%s6729_s3 + $0x60] sm:$0xff] }
  0x69   : > { %5012 = vmatprep.subr.bf16.mxu0 %v5011_v20 }
 0x11e   : > { %v4089_v22 = vpop.f32.mrb[0].mxu0 }
 0x11f   : > { %v879_v23 = vadd.f32 %v4089_v22, %v5803_v21  ;;  %v824_v24 = vpop.f32.mrb[1].mxu0 }
 0x120   : > { %v878_v28 = vadd.f32 %v5803_v21, %v824_v24  ;;  %v3360_v24 = vld [vmem:[%s6729_s3 + $0x100] sm:$0xff] }
 0x121   : > { %v5819_v32 = vmax.f32 %v879_v23, 0.0  ;;  %v4883_v30 = vpack.c.bf16 %v3361_v27, %v3360_v24  ;;  %v3376_v24 = vld [vmem:[%s6729_s3 + $0x180] sm:$0xff]  ;;  %v3377_v27 = vld [vmem:[%s6729_s3 + $0x188] sm:$0xff] }
 0x122   : > { %v5821_v34 = vmax.f32 %v878_v28, 0.0  ;;  %v4092_v35 = vpop.f32.mrb[2].mxu0  ;;  %v3440_v28 = vld [vmem:[%s6729_s3 + $0x380] sm:$0xff] }
 0x123   : > { %916 = vst [vmem:[#allocation2 + $0x21] sm:$0xff] %v5819_v32  ;;  %v881_v36 = vadd.f32 %v4092_v35, %v5803_v21  ;;  %v834_v37 = vpop.f32.mrb[3].mxu0  ;;  %v5043_v31 = vpack.c.bf16 %v3441_v29, %v3440_v28  ;;  %v3362_v35 = vld [vmem:[%s6729_s3 + $0x110] sm:$0xff]  ;;  %v3552_v28 = vld [vmem:[%s6729_s3 + $0x680] sm:$0xff]  ;;  %v3553_v29 = vld [vmem:[%s6729_s3 + $0x688] sm:$0xff] }
 0x124   : > { %915 = vst [vmem:[#allocation2 + $0x11] sm:$0xff] %v5821_v34  ;;  %v880_v39 = vadd.f32 %v5803_v21, %v834_v37  ;;  %4132 = vmatmul.mubr.f32.vlgmr.msra.gmra.mrb[0].mxu1 %v5821_v34  ;;  %4352 = vmatmul.mubr.f32.vlgmr.msra.gmra.mrb[8].mxu0 %v5821_v34  ;;  %v3442_v37 = vld [vmem:[%s6729_s3 + $0x390] sm:$0xff] }
 0x125   : > { %v5841_v42 = vmax.f32 %v881_v36, 0.0  ;;  %4854 = vmatpush3.bf16.msra.mxu1 %v4851_v17  ;;  %5014 = vmatpush3.bf16.msra.mxu0 %v5011_v20  ;;  %v4875_v17 = vpack.c.bf16 %v1009_v14, %v1008_v13  ;;  %v1011_v20 = vld [vmem:[%s6729_s3 + $0x78] sm:$0xff]  ;;  %v3372_v13 = vld [vmem:[%s6729_s3 + $0x160] sm:$0xff]  ;;  %v3373_v14 = vld [vmem:[%s6729_s3 + $0x168] sm:$0xff] }
 0x126   : > { %v5843_v43 = vmax.f32 %v880_v39, 0.0  ;;  %v4095_v44 = vpop.f32.mrb[4].mxu0  ;;  %4134 = vmatprep.mubr.f32.mxu1 %v5819_v32  ;;  %4354 = vmatprep.mubr.f32.mxu0 %v5819_v32  ;;  %v4879_v22 = vpack.c.bf16 %v1011_v20, %v1010_v19  ;;  %v3363_v36 = vld [vmem:[%s6729_s3 + $0x118] sm:$0xff]  ;;  %v3374_v19 = vld [vmem:[%s6729_s3 + $0x170] sm:$0xff] }
 0x127   : > { %918 = vst [vmem:[#allocation2 + $0x41] sm:$0xff] %v5841_v42  ;;  %v883_v45 = vadd.f32 %v4095_v44, %v5803_v21  ;;  %v844_v47 = vpop.f32.mrb[5].mxu0  ;;  %4856 = vmatprep.subr.bf16.mxu1 %v4855_v25  ;;  %5016 = vmatprep.subr.bf16.mxu0 %v5015_v26  ;;  %v4887_v38 = vpack.c.bf16 %v3363_v36, %v3362_v35  ;;  %v3444_v44 = vld [vmem:[%s6729_s3 + $0x3a0] sm:$0xff]  ;;  %v3375_v20 = vld [vmem:[%s6729_s3 + $0x178] sm:$0xff]  ;;  %v3378_v35 = vld [vmem:[%s6729_s3 + $0x190] sm:$0xff] }
 0x128   : > { %917 = vst [vmem:[#allocation2 + $0x31] sm:$0xff] %v5843_v43  ;;  %v882_v50 = vadd.f32 %v5803_v21, %v844_v47  ;;  %4135 = vmatmul.mubr.f32.gmra.mrb[2].mxu1 %v5843_v43  ;;  %4355 = vmatmul.mubr.f32.gmra.mrb[10].mxu0 %v5843_v43  ;;  %v3379_v36 = vld [vmem:[%s6729_s3 + $0x198] sm:$0xff] }
 0x129   : > { %v5865_v54 = vmax.f32 %v883_v45, 0.0  ;;  %4858 = vmatpush3.bf16.msra.mxu1 %v4855_v25  ;;  %5018 = vmatpush3.bf16.msra.mxu0 %v5015_v26  ;;  %v3443_v25 = vld [vmem:[%s6729_s3 + $0x398] sm:$0xff]  ;;  %v3445_v45 = vld [vmem:[%s6729_s3 + $0x3a8] sm:$0xff] }
 0x12a   : > { %v5867_v55 = vmax.f32 %v882_v50, 0.0  ;;  %v4098_v56 = vpop.f32.mrb[6].mxu0  ;;  %4137 = vmatprep.mubr.f32.mxu1 %v5841_v42  ;;  %4357 = vmatprep.mubr.f32.mxu0 %v5841_v42  ;;  %v5047_v39 = vpack.c.bf16 %v3443_v25, %v3442_v37  ;;  %v5971_v41 = vld [vmem:[#allocation2 + $0x20] sm:$0xff]  ;;  %v3367_v50 = vld [vmem:[%s6729_s3 + $0x138] sm:$0xff]  ;;  %v3554_v37 = vld [vmem:[%s6729_s3 + $0x690] sm:$0xff] }
 0x12b   : > { %920 = vst [vmem:[#allocation2 + $0x61] sm:$0xff] %v5865_v54  ;;  %v885_v57 = vadd.f32 %v4098_v56, %v5803_v21  ;;  %v854_v58 = vpop.f32.mrb[7].mxu0  ;;  %4860 = vmatprep.subr.bf16.mxu1 %v4859_v48  ;;  %5020 = vmatprep.subr.bf16.mxu0 %v5019_v49  ;;  %v5961_v26 = vld [vmem:[#allocation2 + $0x10] sm:$0xff]  ;;  %v3555_v25 = vld [vmem:[%s6729_s3 + $0x698] sm:$0xff] }
 0x12c   : > { %919 = vst [vmem:[#allocation2 + $0x51] sm:$0xff] %v5867_v55  ;;  %v884_v63 = vadd.f32 %v5803_v21, %v854_v58  ;;  %4138 = vmatmul.mubr.f32.gmra.mrb[4].mxu1 %v5867_v55  ;;  %4358 = vmatmul.mubr.f32.gmra.mrb[12].mxu0 %v5867_v55  ;;  %v3438_v21 = vld [vmem:[%s6729_s3 + $0x370] sm:$0xff]  ;;  %v5055_v58 = vpack.c.bf16 %v3447_v53, %v3446_v52 }
 0x12d   : > { %v5889_v2 = vmax.f32 %v885_v57, 0.0  ;;  %4862 = vmatpush3.bf16.msra.mxu1 %v4859_v48  ;;  %5022 = vmatpush3.bf16.msra.mxu0 %v5019_v49  ;;  %v4891_v48 = vpack.c.bf16 %v3365_v33, %v3364_v40  ;;  %v5051_v49 = vpack.c.bf16 %v3445_v45, %v3444_v44  ;;  %v4895_v57 = vpack.c.bf16 %v3367_v50, %v3366_v46  ;;  %v6038_v10 = vld [vmem:[#allocation2 + $0x12] sm:$0xff]  ;;  %v3380_v33 = vld [vmem:[%s6729_s3 + $0x1a0] sm:$0xff]  ;;  %v3381_v44 = vld [vmem:[%s6729_s3 + $0x1a8] sm:$0xff] }
 0x12e   : > { %v5891_v3 = vmax.f32 %v884_v63, 0.0  ;;  %4140 = vmatprep.mubr.f32.mxu1 %v5865_v54  ;;  %4360 = vmatprep.mubr.f32.mxu0 %v5865_v54  ;;  %v5991_v51 = vld [vmem:[#allocation2 + $0x40] sm:$0xff]  ;;  %v3449_v63 = vld [vmem:[%s6729_s3 + $0x3c8] sm:$0xff]  ;;  %v5207_v40 = vpack.c.bf16 %v3555_v25, %v3554_v37  ;;  %v4923_v46 = vpack.c.bf16 %v3381_v44, %v3380_v33  ;;  %v3382_v53 = vld [vmem:[%s6729_s3 + $0x1b0] sm:$0xff] }
 0x12f   : > { %922 = vst [vmem:[#allocation2 + $0x81] sm:$0xff] %v5889_v2  ;;  %4864 = vmatprep.subr.bf16.mxu1 %v4863_v59  ;;  %5024 = vmatprep.subr.bf16.mxu0 %v5023_v60  ;;  %v5981_v47 = vld [vmem:[#allocation2 + $0x30] sm:$0xff]  ;;  %v6110_v50 = vld [vmem:[#allocation2 + $0x42] sm:$0xff] }
 0x130   : > { %921 = vst [vmem:[#allocation2 + $0x71] sm:$0xff] %v5891_v3  ;;  %4141 = vmatmul.mubr.f32.gmra.mrb[6].mxu1 %v5891_v3  ;;  %4361 = vmatmul.mubr.f32.gmra.mrb[14].mxu0 %v5891_v3  ;;  %v6100_v45 = vld [vmem:[#allocation2 + $0x32] sm:$0xff]  ;;  %v3408_v37 = vld [vmem:[%s6729_s3 + $0x280] sm:$0xff]  ;;  %v3409_v25 = vld [vmem:[%s6729_s3 + $0x288] sm:$0xff] }
 0x131   : > { %4866 = vmatpush3.bf16.msra.mxu1 %v4863_v59  ;;  %5026 = vmatpush3.bf16.msra.mxu0 %v5023_v60  ;;  %v3368_v59 = vld [vmem:[%s6729_s3 + $0x140] sm:$0xff]  ;;  %v3369_v60 = vld [vmem:[%s6729_s3 + $0x148] sm:$0xff]  ;;  %v4947_v33 = vpack.c.bf16 %v3409_v25, %v3408_v37 }
 0x132   : > { %4395 = vmatprep.mubr.f32.mxu0 %v5821_v34  ;;  %4868 = vmatprep.subr.bf16.mxu1 %v4867_v4  ;;  %v6011_v61 = vld [vmem:[#allocation2 + $0x60] sm:$0xff]  ;;  %v4899_v1 = vpack.c.bf16 %v3369_v60, %v3368_v59  ;;  %v3558_v59 = vld [vmem:[%s6729_s3 + $0x6b0] sm:$0xff]  ;;  %v3559_v60 = vld [vmem:[%s6729_s3 + $0x6b8] sm:$0xff] }
 0x133   : > { %5028 = vmatprep.subr.bf16.mxu0 %v5027_v6  ;;  %4175 = vmatprep.mubr.f32.mxu1 %v5473_v7  ;;  %v3439_v7 = vld [vmem:[%s6729_s3 + $0x378] sm:$0xff]  ;;  %v6001_v56 = vld [vmem:[#allocation2 + $0x50] sm:$0xff]  ;;  %v3549_v37 = vld [vmem:[%s6729_s3 + $0x668] sm:$0xff] }
 0x134   : > { %v5039_v23 = vpack.c.bf16 %v3439_v7, %v3438_v21  ;;  %v3454_v21 = vld [vmem:[%s6729_s3 + $0x3f0] sm:$0xff]  ;;  %v3455_v7 = vld [vmem:[%s6729_s3 + $0x3f8] sm:$0xff] }
 0x135   : > { %4870 = vmatpush3.bf16.msra.mxu1 %v4867_v4  ;;  %5030 = vmatpush3.bf16.msra.mxu0 %v5027_v6  ;;  %v5059_v4 = vpack.c.bf16 %v3449_v63, %v3448_v62  ;;  %v3371_v6 = vld [vmem:[%s6729_s3 + $0x158] sm:$0xff]  ;;  %v6130_v63 = vld [vmem:[#allocation2 + $0x62] sm:$0xff] }
 0x136   : > { %4872 = vmatprep.subr.bf16.mxu1 %v4871_v11  ;;  %5032 = vmatprep.subr.bf16.mxu0 %v5031_v12 }
 0x137   : > { %v6021_v0 = vld [vmem:[#allocation2 + $0x70] sm:$0xff] }
 0x139   : > { %4874 = vmatpush3.bf16.msra.mxu1 %v4871_v11  ;;  %5034 = vmatpush3.bf16.msra.mxu0 %v5031_v12  ;;  %v4903_v11 = vpack.c.bf16 %v3371_v6, %v3370_v5  ;;  %v5063_v12 = vpack.c.bf16 %v3451_v9, %v3450_v8  ;;  %v3385_v5 = vld [vmem:[%s6729_s3 + $0x1c8] sm:$0xff]  ;;  %v6140_v6 = vld [vmem:[#allocation2 + $0x72] sm:$0xff]  ;;  %v3560_v8 = vld [vmem:[%s6729_s3 + $0x6c0] sm:$0xff] }
 0x13a   : > { %4876 = vmatprep.subr.bf16.mxu1 %v4875_v17  ;;  %5036 = vmatprep.subr.bf16.mxu0 %v5035_v18  ;;  %v3561_v9 = vld [vmem:[%s6729_s3 + $0x6c8] sm:$0xff] }
 0x13d   : > { %4878 = vmatpush3.bf16.msra.mxu1 %v4875_v17  ;;  %5038 = vmatpush3.bf16.msra.mxu0 %v5035_v18  ;;  %v4907_v17 = vpack.c.bf16 %v3373_v14, %v3372_v13  ;;  %v5067_v18 = vpack.c.bf16 %v3453_v16, %v3452_v15  ;;  %v6152_v13 = vld [vmem:[#allocation2 + $0x82] sm:$0xff]  ;;  %v5219_v14 = vpack.c.bf16 %v3561_v9, %v3560_v8  ;;  %v3386_v15 = vld [vmem:[%s6729_s3 + $0x1d0] sm:$0xff]  ;;  %v3387_v16 = vld [vmem:[%s6729_s3 + $0x1d8] sm:$0xff] }
 0x13e   : > { %4880 = vmatprep.subr.bf16.mxu1 %v4879_v22  ;;  %5040 = vmatprep.subr.bf16.mxu0 %v5039_v23  ;;  %v3414_v8 = vld [vmem:[%s6729_s3 + $0x2b0] sm:$0xff]  ;;  %v3415_v9 = vld [vmem:[%s6729_s3 + $0x2b8] sm:$0xff] }
 0x141   : > { %4882 = vmatpush3.bf16.msra.mxu1 %v4879_v22  ;;  %5042 = vmatpush3.bf16.msra.mxu0 %v5039_v23  ;;  %v4911_v22 = vpack.c.bf16 %v3375_v20, %v3374_v19  ;;  %v5071_v23 = vpack.c.bf16 %v3455_v7, %v3454_v21  ;;  %v4935_v19 = vpack.c.bf16 %v3387_v16, %v3386_v15  ;;  %v3388_v21 = vld [vmem:[%s6729_s3 + $0x1e0] sm:$0xff]  ;;  %v3389_v7 = vld [vmem:[%s6729_s3 + $0x1e8] sm:$0xff] }
 0x142   : > { %4884 = vmatprep.subr.bf16.mxu1 %v4883_v30  ;;  %5044 = vmatprep.subr.bf16.mxu0 %v5043_v31  ;;  %v4959_v15 = vpack.c.bf16 %v3415_v9, %v3414_v8  ;;  %v3571_v8 = vld [vmem:[%s6729_s3 + $0x718] sm:$0xff] }
 0x144   : > { %4176 = vmatmul.mubr.f32.vlgmr.msra.gmra.mrb[0].mxu1 %v5961_v26  ;;  %4396 = vmatmul.mubr.f32.vlgmr.msra.gmra.mrb[8].mxu0 %v5819_v32 }
 0x145   : > { %4178 = vmatprep.mubr.f32.mxu1 %v5971_v41  ;;  %4886 = vmatpush3.bf16.msra.mxu1 %v4883_v30  ;;  %v4915_v30 = vpack.c.bf16 %v3377_v27, %v3376_v24  ;;  %v4939_v24 = vpack.c.bf16 %v3389_v7, %v3388_v21  ;;  %v939_v21 = vld [vmem:[#allocation2 + $0x2] sm:$0xff] }
 0x146   : > { %4398 = vmatprep.mubr.f32.mxu0 %v5843_v43  ;;  %5046 = vmatpush3.bf16.msra.mxu0 %v5043_v31  ;;  %v5203_v31 = vpack.c.bf16 %v3553_v29, %v3552_v28  ;;  %v3390_v28 = vld [vmem:[%s6729_s3 + $0x1f0] sm:$0xff]  ;;  %v3391_v29 = vld [vmem:[%s6729_s3 + $0x1f8] sm:$0xff] }
 0x147   : > { %4888 = vmatprep.subr.bf16.mxu1 %v4887_v38  ;;  %5048 = vmatprep.subr.bf16.mxu0 %v5047_v39 }
 0x148   : > { %4179 = vmatmul.mubr.f32.gmra.mrb[2].mxu1 %v5981_v47  ;;  %4399 = vmatmul.mubr.f32.gmra.mrb[10].mxu0 %v5841_v42 }
 0x149   : > { %4181 = vmatprep.mubr.f32.mxu1 %v5991_v51  ;;  %4890 = vmatpush3.bf16.msra.mxu1 %v4887_v38  ;;  %v4919_v38 = vpack.c.bf16 %v3379_v36, %v3378_v35  ;;  %v4943_v35 = vpack.c.bf16 %v3391_v29, %v3390_v28  ;;  %v3547_v28 = vld [vmem:[%s6729_s3 + $0x658] sm:$0xff] }
 0x14a   : > { %4401 = vmatprep.mubr.f32.mxu0 %v5867_v55  ;;  %5050 = vmatpush3.bf16.msra.mxu0 %v5047_v39  ;;  %v6090_v39 = vld [vmem:[#allocation2 + $0x22] sm:$0xff] }
 0x14b   : > { %4892 = vmatprep.subr.bf16.mxu1 %v4891_v48  ;;  %5052 = vmatprep.subr.bf16.mxu0 %v5051_v49 }
 0x14c   : > { %4182 = vmatmul.mubr.f32.gmra.mrb[4].mxu1 %v6001_v56  ;;  %4402 = vmatmul.mubr.f32.gmra.mrb[12].mxu0 %v5865_v54 }
 0x14d   : > { %4184 = vmatprep.mubr.f32.mxu1 %v6011_v61  ;;  %4894 = vmatpush3.bf16.msra.mxu1 %v4891_v48  ;;  %v3556_v48 = vld [vmem:[%s6729_s3 + $0x6a0] sm:$0xff] }
 0x14e   : > { %4404 = vmatprep.mubr.f32.mxu0 %v5891_v3  ;;  %5054 = vmatpush3.bf16.msra.mxu0 %v5051_v49  ;;  %v3557_v49 = vld [vmem:[%s6729_s3 + $0x6a8] sm:$0xff] }
 0x14f   : > { %4896 = vmatprep.subr.bf16.mxu1 %v4895_v57  ;;  %5056 = vmatprep.subr.bf16.mxu0 %v5055_v58  ;;  %v5211_v52 = vpack.c.bf16 %v3557_v49, %v3556_v48  ;;  %v3410_v48 = vld [vmem:[%s6729_s3 + $0x290] sm:$0xff]  ;;  %v3411_v49 = vld [vmem:[%s6729_s3 + $0x298] sm:$0xff] }
 0x150   : > { %4185 = vmatmul.mubr.f32.gmra.mrb[6].mxu1 %v6021_v0  ;;  %4405 = vmatmul.mubr.f32.gmra.mrb[14].mxu0 %v5889_v2 }
 0x151   : > { %4898 = vmatpush3.bf16.msra.mxu1 %v4895_v57  ;;  %4219 = vmatprep.mubr.f32.mxu1 %v5961_v26  ;;  %v3383_v57 = vld [vmem:[%s6729_s3 + $0x1b8] sm:$0xff] }
 0x152   : > { %5058 = vmatpush3.bf16.msra.mxu0 %v5055_v58  ;;  %4439 = vmatprep.mubr.f32.mxu0 %v6038_v10  ;;  %v6120_v58 = vld [vmem:[#allocation2 + $0x52] sm:$0xff]  ;;  %v4927_v62 = vpack.c.bf16 %v3383_v57, %v3382_v53  ;;  %v4951_v53 = vpack.c.bf16 %v3411_v49, %v3410_v48 }
 0x153   : > { %4900 = vmatprep.subr.bf16.mxu1 %v4899_v1  ;;  %5060 = vmatprep.subr.bf16.mxu0 %v5059_v4  ;;  %v3551_v48 = vld [vmem:[%s6729_s3 + $0x678] sm:$0xff] }
 0x155   : > { %4902 = vmatpush3.bf16.msra.mxu1 %v4899_v1  ;;  %v5215_v1 = vpack.c.bf16 %v3559_v60, %v3558_v59  ;;  %v3412_v59 = vld [vmem:[%s6729_s3 + $0x2a0] sm:$0xff]  ;;  %v3413_v60 = vld [vmem:[%s6729_s3 + $0x2a8] sm:$0xff] }
 0x156   : > { %5062 = vmatpush3.bf16.msra.mxu0 %v5059_v4  ;;  %4904 = vmatprep.subr.bf16.mxu1 %v4903_v11  ;;  %v3384_v4 = vld [vmem:[%s6729_s3 + $0x1c0] sm:$0xff] }
 0x157   : > { %5064 = vmatprep.subr.bf16.mxu0 %v5063_v12 }
 0x159   : > { %4906 = vmatpush3.bf16.msra.mxu1 %v4903_v11  ;;  %v6149_v11 = vld [vmem:[#allocation2 + $0x80] sm:$0xff] }
 0x15a   : > { %5066 = vmatpush3.bf16.msra.mxu0 %v5063_v12  ;;  %4908 = vmatprep.subr.bf16.mxu1 %v4907_v17  ;;  %v4931_v12 = vpack.c.bf16 %v3385_v5, %v3384_v4  ;;  %v4955_v4 = vpack.c.bf16 %v3413_v60, %v3412_v59  ;;  %v3569_v59 = vld [vmem:[%s6729_s3 + $0x708] sm:$0xff] }
 0x15b   : > { %5068 = vmatprep.subr.bf16.mxu0 %v5067_v18 }
 0x15d   : > { %4910 = vmatpush3.bf16.msra.mxu1 %v4907_v17  ;;  %v3562_v17 = vld [vmem:[%s6729_s3 + $0x6d0] sm:$0xff] }
 0x15e   : > { %5070 = vmatpush3.bf16.msra.mxu0 %v5067_v18  ;;  %4912 = vmatprep.subr.bf16.mxu1 %v4911_v22  ;;  %v3563_v18 = vld [vmem:[%s6729_s3 + $0x6d8] sm:$0xff] }
 0x15f   : > { %5072 = vmatprep.subr.bf16.mxu0 %v5071_v23  ;;  %v5223_v20 = vpack.c.bf16 %v3563_v18, %v3562_v17  ;;  %v3416_v17 = vld [vmem:[%s6729_s3 + $0x2c0] sm:$0xff]  ;;  %v3417_v18 = vld [vmem:[%s6729_s3 + $0x2c8] sm:$0xff] }
 0x160   : > { %v4963_v7 = vpack.c.bf16 %v3417_v18, %v3416_v17  ;;  %v3486_v18 = vld [vmem:[%s6729_s3 + $0x4b0] sm:$0xff] }
 0x161   : > { %4914 = vmatpush3.bf16.msra.mxu1 %v4911_v22  ;;  %v3564_v22 = vld [vmem:[%s6729_s3 + $0x6e0] sm:$0xff] }
 0x162   : > { %5074 = vmatpush3.bf16.msra.mxu0 %v5071_v23  ;;  %4916 = vmatprep.subr.bf16.mxu1 %v4915_v30  ;;  %v3565_v23 = vld [vmem:[%s6729_s3 + $0x6e8] sm:$0xff] }
 0x163   : > { %5204 = vmatprep.subr.bf16.mxu0 %v5203_v31  ;;  %v5227_v27 = vpack.c.bf16 %v3565_v23, %v3564_v22  ;;  %v3418_v23 = vld [vmem:[%s6729_s3 + $0x2d0] sm:$0xff] }
 0x164   : > { %4220 = vmatmul.mubr.f32.vlgmr.msra.gmra.mrb[0].mxu1 %v5971_v41 }
 0x165   : > { %4440 = vmatmul.mubr.f32.vlgmr.msra.gmra.mrb[8].mxu0 %v6090_v39  ;;  %4222 = vmatprep.mubr.f32.mxu1 %v5981_v47 }
 0x166   : > { %4918 = vmatpush3.bf16.msra.mxu1 %v4915_v30  ;;  %4442 = vmatprep.mubr.f32.mxu0 %v6100_v45  ;;  %v3566_v30 = vld [vmem:[%s6729_s3 + $0x6f0] sm:$0xff] }
 0x167   : > { %5206 = vmatpush3.bf16.msra.mxu0 %v5203_v31  ;;  %4920 = vmatprep.subr.bf16.mxu1 %v4919_v38  ;;  %v3567_v31 = vld [vmem:[%s6729_s3 + $0x6f8] sm:$0xff] }
 0x168   : > { %4223 = vmatmul.mubr.f32.gmra.mrb[2].mxu1 %v5991_v51  ;;  %5208 = vmatprep.subr.bf16.mxu0 %v5207_v40  ;;  %v5231_v36 = vpack.c.bf16 %v3567_v31, %v3566_v30  ;;  %v3420_v31 = vld [vmem:[%s6729_s3 + $0x2e0] sm:$0xff] }
 0x169   : > { %4443 = vmatmul.mubr.f32.gmra.mrb[10].mxu0 %v6110_v50  ;;  %4225 = vmatprep.mubr.f32.mxu1 %v6001_v56 }
 0x16a   : > { %4922 = vmatpush3.bf16.msra.mxu1 %v4919_v38  ;;  %4445 = vmatprep.mubr.f32.mxu0 %v6120_v58  ;;  %v3536_v38 = vld [vmem:[%s6729_s3 + $0x600] sm:$0xff] }
 0x16b   : > { %5210 = vmatpush3.bf16.msra.mxu0 %v5207_v40  ;;  %4924 = vmatprep.subr.bf16.mxu1 %v4923_v46  ;;  %v3537_v40 = vld [vmem:[%s6729_s3 + $0x608] sm:$0xff] }
 0x16c   : > { %4226 = vmatmul.mubr.f32.gmra.mrb[4].mxu1 %v6011_v61  ;;  %5212 = vmatprep.subr.bf16.mxu0 %v5211_v52  ;;  %v5235_v44 = vpack.c.bf16 %v3537_v40, %v3536_v38  ;;  %v3422_v40 = vld [vmem:[%s6729_s3 + $0x2f0] sm:$0xff] }
 0x16d   : > { %4446 = vmatmul.mubr.f32.gmra.mrb[12].mxu0 %v6130_v63  ;;  %4228 = vmatprep.mubr.f32.mxu1 %v6021_v0 }
 0x16e   : > { %4926 = vmatpush3.bf16.msra.mxu1 %v4923_v46  ;;  %4448 = vmatprep.mubr.f32.mxu0 %v6140_v6  ;;  %v3538_v46 = vld [vmem:[%s6729_s3 + $0x610] sm:$0xff] }
 0x16f   : > { %5214 = vmatpush3.bf16.msra.mxu0 %v5211_v52  ;;  %4928 = vmatprep.subr.bf16.mxu1 %v4927_v62  ;;  %v3539_v52 = vld [vmem:[%s6729_s3 + $0x618] sm:$0xff] }
 0x170   : > { %4229 = vmatmul.mubr.f32.gmra.mrb[6].mxu1 %v6149_v11  ;;  %5216 = vmatprep.subr.bf16.mxu0 %v5215_v1  ;;  %v5239_v57 = vpack.c.bf16 %v3539_v52, %v3538_v46  ;;  %v3480_v52 = vld [vmem:[%s6729_s3 + $0x480] sm:$0xff] }
 0x171   : > { %4449 = vmatmul.mubr.f32.gmra.mrb[14].mxu0 %v6152_v13  ;;  %4263 = vmatprep.mubr.f32.mxu1 %v5821_v34 }
 0x172   : > { %4930 = vmatpush3.bf16.msra.mxu1 %v4927_v62  ;;  %4659 = vmatprep.mubr.f32.mxu0 %v6038_v10  ;;  %v3540_v62 = vld [vmem:[%s6729_s3 + $0x620] sm:$0xff] }
 0x173   : > { %5218 = vmatpush3.bf16.msra.mxu0 %v5215_v1  ;;  %4932 = vmatprep.subr.bf16.mxu1 %v4931_v12  ;;  %v3541_v1 = vld [vmem:[%s6729_s3 + $0x628] sm:$0xff] }
 0x174   : > { %5220 = vmatprep.subr.bf16.mxu0 %v5219_v14  ;;  %v5243_v5 = vpack.c.bf16 %v3541_v1, %v3540_v62  ;;  %v3482_v1 = vld [vmem:[%s6729_s3 + $0x490] sm:$0xff] }
 0x176   : > { %4934 = vmatpush3.bf16.msra.mxu1 %v4931_v12  ;;  %v3542_v12 = vld [vmem:[%s6729_s3 + $0x630] sm:$0xff] }
 0x177   : > { %5222 = vmatpush3.bf16.msra.mxu0 %v5219_v14  ;;  %4936 = vmatprep.subr.bf16.mxu1 %v4935_v19  ;;  %v3543_v14 = vld [vmem:[%s6729_s3 + $0x638] sm:$0xff] }
 0x178   : > { %5224 = vmatprep.subr.bf16.mxu0 %v5223_v20  ;;  %v5247_v16 = vpack.c.bf16 %v3543_v14, %v3542_v12  ;;  %v3484_v14 = vld [vmem:[%s6729_s3 + $0x4a0] sm:$0xff] }
 0x17a   : > { %4938 = vmatpush3.bf16.msra.mxu1 %v4935_v19  ;;  %v3544_v19 = vld [vmem:[%s6729_s3 + $0x640] sm:$0xff] }
 0x17b   : > { %5226 = vmatpush3.bf16.msra.mxu0 %v5223_v20  ;;  %4940 = vmatprep.subr.bf16.mxu1 %v4939_v24  ;;  %v3545_v20 = vld [vmem:[%s6729_s3 + $0x648] sm:$0xff] }
 0x17c   : > { %5228 = vmatprep.subr.bf16.mxu0 %v5227_v27  ;;  %v5251_v22 = vpack.c.bf16 %v3545_v20, %v3544_v19  ;;  %v3487_v19 = vld [vmem:[%s6729_s3 + $0x4b8] sm:$0xff]  ;;  %v3574_v20 = vld [vmem:[%s6729_s3 + $0x730] sm:$0xff] }
 0x17e   : > { %4942 = vmatpush3.bf16.msra.mxu1 %v4939_v24  ;;  %v3419_v24 = vld [vmem:[%s6729_s3 + $0x2d8] sm:$0xff] }
 0x17f   : > { %5230 = vmatpush3.bf16.msra.mxu0 %v5227_v27  ;;  %4944 = vmatprep.subr.bf16.mxu1 %v4943_v35  ;;  %v3546_v27 = vld [vmem:[%s6729_s3 + $0x650] sm:$0xff]  ;;  %v4967_v29 = vpack.c.bf16 %v3419_v24, %v3418_v23  ;;  %v3489_v23 = vld [vmem:[%s6729_s3 + $0x4c8] sm:$0xff]  ;;  %v3576_v24 = vld [vmem:[%s6729_s3 + $0x740] sm:$0xff] }
 0x180   : > { %5232 = vmatprep.subr.bf16.mxu0 %v5231_v36  ;;  %v5255_v30 = vpack.c.bf16 %v3547_v28, %v3546_v27  ;;  %v3577_v27 = vld [vmem:[%s6729_s3 + $0x748] sm:$0xff] }
 0x182   : > { %4946 = vmatpush3.bf16.msra.mxu1 %v4943_v35  ;;  %v3421_v35 = vld [vmem:[%s6729_s3 + $0x2e8] sm:$0xff] }
 0x183   : > { %5234 = vmatpush3.bf16.msra.mxu0 %v5231_v36  ;;  %4948 = vmatprep.subr.bf16.mxu1 %v4947_v33  ;;  %v3548_v36 = vld [vmem:[%s6729_s3 + $0x660] sm:$0xff]  ;;  %v4971_v25 = vpack.c.bf16 %v3421_v35, %v3420_v31  ;;  %v3578_v35 = vld [vmem:[%s6729_s3 + $0x750] sm:$0xff] }
 0x184   : > { %5236 = vmatprep.subr.bf16.mxu0 %v5235_v44  ;;  %v5259_v38 = vpack.c.bf16 %v3549_v37, %v3548_v36  ;;  %v6385_v31 = vld [vmem:[#allocation2 + $0x21] sm:$0xff]  ;;  %v3579_v36 = vld [vmem:[%s6729_s3 + $0x758] sm:$0xff] }
 0x185   : > { %4264 = vmatmul.mubr.f32.vlgmr.msra.gmra.mrb[0].mxu1 %v5819_v32 }
 0x186   : > { %4660 = vmatmul.mubr.f32.vlgmr.msra.gmra.mrb[16].mxu0 %v6090_v39  ;;  %4266 = vmatprep.mubr.f32.mxu1 %v5843_v43 }
 0x187   : > { %4950 = vmatpush3.bf16.msra.mxu1 %v4947_v33  ;;  %4662 = vmatprep.mubr.f32.mxu0 %v6100_v45  ;;  %v3423_v33 = vld [vmem:[%s6729_s3 + $0x2f8] sm:$0xff] }
 0x188   : > { %5238 = vmatpush3.bf16.msra.mxu0 %v5235_v44  ;;  %4952 = vmatprep.subr.bf16.mxu1 %v4951_v53  ;;  %v3550_v44 = vld [vmem:[%s6729_s3 + $0x670] sm:$0xff]  ;;  %v4975_v49 = vpack.c.bf16 %v3423_v33, %v3422_v40  ;;  %v3580_v40 = vld [vmem:[%s6729_s3 + $0x760] sm:$0xff]  ;;  %v3581_v33 = vld [vmem:[%s6729_s3 + $0x768] sm:$0xff] }
 0x189   : > { %4267 = vmatmul.mubr.f32.gmra.mrb[2].mxu1 %v5841_v42  ;;  %5240 = vmatprep.subr.bf16.mxu0 %v5239_v57  ;;  %v5263_v46 = vpack.c.bf16 %v3551_v48, %v3550_v44  ;;  %v5291_v48 = vpack.c.bf16 %v3581_v33, %v3580_v40  ;;  %v3593_v40 = vld [vmem:[%s6729_s3 + $0x7c8] sm:$0xff]  ;;  %v6499_v33 = vld [vmem:[#allocation2 + $0x91] sm:$0xff] }
 0x18a   : > { %4663 = vmatmul.mubr.f32.gmra.mrb[18].mxu0 %v6110_v50  ;;  %4269 = vmatprep.mubr.f32.mxu1 %v5867_v55 }
 0x18b   : > { %4954 = vmatpush3.bf16.msra.mxu1 %v4951_v53  ;;  %4665 = vmatprep.mubr.f32.mxu0 %v6120_v58  ;;  %v3481_v53 = vld [vmem:[%s6729_s3 + $0x488] sm:$0xff] }
 0x18c   : > { %5242 = vmatpush3.bf16.msra.mxu0 %v5239_v57  ;;  %4956 = vmatprep.subr.bf16.mxu1 %v4955_v4  ;;  %v3568_v57 = vld [vmem:[%s6729_s3 + $0x700] sm:$0xff]  ;;  %v5075_v60 = vpack.c.bf16 %v3481_v53, %v3480_v52  ;;  %v3582_v52 = vld [vmem:[%s6729_s3 + $0x770] sm:$0xff]  ;;  %v3583_v53 = vld [vmem:[%s6729_s3 + $0x778] sm:$0xff] }
 0x18d   : > { %4270 = vmatmul.mubr.f32.gmra.mrb[4].mxu1 %v5865_v54  ;;  %5244 = vmatprep.subr.bf16.mxu0 %v5243_v5  ;;  %v5267_v62 = vpack.c.bf16 %v3569_v59, %v3568_v57  ;;  %v5295_v59 = vpack.c.bf16 %v3583_v53, %v3582_v52 }
 0x18e   : > { %4666 = vmatmul.mubr.f32.gmra.mrb[20].mxu0 %v6130_v63  ;;  %4272 = vmatprep.mubr.f32.mxu1 %v5891_v3 }
 0x18f   : > { %4958 = vmatpush3.bf16.msra.mxu1 %v4955_v4  ;;  %4668 = vmatprep.mubr.f32.mxu0 %v6140_v6  ;;  %v3483_v4 = vld [vmem:[%s6729_s3 + $0x498] sm:$0xff] }
 0x190   : > { %5246 = vmatpush3.bf16.msra.mxu0 %v5243_v5  ;;  %4960 = vmatprep.subr.bf16.mxu1 %v4959_v15  ;;  %v3570_v5 = vld [vmem:[%s6729_s3 + $0x710] sm:$0xff]  ;;  %v5079_v9 = vpack.c.bf16 %v3483_v4, %v3482_v1  ;;  %v3584_v1 = vld [vmem:[%s6729_s3 + $0x780] sm:$0xff]  ;;  %v3585_v4 = vld [vmem:[%s6729_s3 + $0x788] sm:$0xff] }
 0x191   : > { %4273 = vmatmul.mubr.f32.gmra.mrb[6].mxu1 %v5889_v2  ;;  %5248 = vmatprep.subr.bf16.mxu0 %v5247_v16  ;;  %v5271_v12 = vpack.c.bf16 %v3571_v8, %v3570_v5  ;;  %v5299_v8 = vpack.c.bf16 %v3585_v4, %v3584_v1  ;;  %v3478_v1 = vld [vmem:[%s6729_s3 + $0x470] sm:$0xff]  ;;  %v3479_v4 = vld [vmem:[%s6729_s3 + $0x478] sm:$0xff] }
 0x192   : > { %4669 = vmatmul.mubr.f32.gmra.mrb[22].mxu0 %v6152_v13  ;;  %4307 = vmatprep.mubr.f32.mxu1 %v939_v21  ;;  %v3575_v21 = vld [vmem:[%s6729_s3 + $0x738] sm:$0xff] }
 0x193   : > { %4962 = vmatpush3.bf16.msra.mxu1 %v4959_v15  ;;  %4703 = vmatprep.mubr.f32.mxu0 %v5821_v34  ;;  %v3485_v15 = vld [vmem:[%s6729_s3 + $0x4a8] sm:$0xff] }
 0x194   : > { %5250 = vmatpush3.bf16.msra.mxu0 %v5247_v16  ;;  %4964 = vmatprep.subr.bf16.mxu1 %v4963_v7  ;;  %v3572_v16 = vld [vmem:[%s6729_s3 + $0x720] sm:$0xff]  ;;  %v5083_v17 = vpack.c.bf16 %v3485_v15, %v3484_v14  ;;  %v3586_v14 = vld [vmem:[%s6729_s3 + $0x790] sm:$0xff]  ;;  %v3587_v15 = vld [vmem:[%s6729_s3 + $0x798] sm:$0xff] }
 0x195   : > { %5252 = vmatprep.subr.bf16.mxu0 %v5251_v22 }
 0x197   : > { %4966 = vmatpush3.bf16.msra.mxu1 %v4963_v7  ;;  %v5087_v7 = vpack.c.bf16 %v3487_v19, %v3486_v18  ;;  %v3468_v18 = vld [vmem:[%s6729_s3 + $0x420] sm:$0xff]  ;;  %v3469_v19 = vld [vmem:[%s6729_s3 + $0x428] sm:$0xff] }
 0x198   : > { %5254 = vmatpush3.bf16.msra.mxu0 %v5251_v22  ;;  %4968 = vmatprep.subr.bf16.mxu1 %v4967_v29  ;;  %v3488_v22 = vld [vmem:[%s6729_s3 + $0x4c0] sm:$0xff] }
 0x199   : > { %5256 = vmatprep.subr.bf16.mxu0 %v5255_v30  ;;  %v5091_v28 = vpack.c.bf16 %v3489_v23, %v3488_v22  ;;  %v5462_v22 = vld [vmem:[#allocation2 + $0x41] sm:$0xff]  ;;  %v6461_v23 = vld [vmem:[#allocation2 + $0x51] sm:$0xff] }
 0x19b   : > { %4970 = vmatpush3.bf16.msra.mxu1 %v4967_v29  ;;  %v3490_v29 = vld [vmem:[%s6729_s3 + $0x4d0] sm:$0xff] }
 0x19c   : > { %5258 = vmatpush3.bf16.msra.mxu0 %v5255_v30  ;;  %4972 = vmatprep.subr.bf16.mxu1 %v4971_v25  ;;  %v3491_v30 = vld [vmem:[%s6729_s3 + $0x4d8] sm:$0xff] }
 0x19d   : > { %5260 = vmatprep.subr.bf16.mxu0 %v5259_v38  ;;  %v5095_v37 = vpack.c.bf16 %v3491_v30, %v3490_v29  ;;  %v3591_v29 = vld [vmem:[%s6729_s3 + $0x7b8] sm:$0xff] }
 0x19f   : > { %4974 = vmatpush3.bf16.msra.mxu1 %v4971_v25  ;;  %v5287_v25 = vpack.c.bf16 %v3579_v36, %v3578_v35  ;;  %v5463_v35 = vld [vmem:[#allocation2 + $0x61] sm:$0xff]  ;;  %v6480_v36 = vld [vmem:[#allocation2 + $0x71] sm:$0xff] }
 0x1a0   : > { %5262 = vmatpush3.bf16.msra.mxu0 %v5259_v38  ;;  %4976 = vmatprep.subr.bf16.mxu1 %v4975_v49  ;;  %v3493_v38 = vld [vmem:[%s6729_s3 + $0x4e8] sm:$0xff] }
 0x1a1   : > { %5264 = vmatprep.subr.bf16.mxu0 %v5263_v46 }
 0x1a3   : > { %4978 = vmatpush3.bf16.msra.mxu1 %v4975_v49  ;;  %v3494_v49 = vld [vmem:[%s6729_s3 + $0x4f0] sm:$0xff] }
 0x1a4   : > { %5266 = vmatpush3.bf16.msra.mxu0 %v5263_v46  ;;  %5076 = vmatprep.subr.bf16.mxu1 %v5075_v60  ;;  %v3495_v46 = vld [vmem:[%s6729_s3 + $0x4f8] sm:$0xff] }
 0x1a5   : > { %5268 = vmatprep.subr.bf16.mxu0 %v5267_v62  ;;  %v5103_v57 = vpack.c.bf16 %v3495_v46, %v3494_v49  ;;  %v3475_v49 = vld [vmem:[%s6729_s3 + $0x458] sm:$0xff]  ;;  %v3594_v46 = vld [vmem:[%s6729_s3 + $0x7d0] sm:$0xff] }
 0x1a6   : > { %4308 = vmatmul.mubr.f32.vlgmr.msra.gmra.mrb[8].mxu1 %v6038_v10  ;;  %v3573_v10 = vld [vmem:[%s6729_s3 + $0x728] sm:$0xff] }
 0x1a7   : > { %4704 = vmatmul.mubr.f32.vlgmr.msra.gmra.mrb[16].mxu0 %v5819_v32  ;;  %4310 = vmatprep.mubr.f32.mxu1 %v6090_v39  ;;  %v5275_v32 = vpack.c.bf16 %v3573_v10, %v3572_v16  ;;  %v5461_v10 = vld [vmem:[#allocation2 + $0x21] sm:$0xff] }
 0x1a8   : > { %5078 = vmatpush3.bf16.msra.mxu1 %v5075_v60  ;;  %4706 = vmatprep.mubr.f32.mxu0 %v5843_v43  ;;  %v3464_v60 = vld [vmem:[%s6729_s3 + $0x400] sm:$0xff] }
 0x1a9   : > { %5270 = vmatpush3.bf16.msra.mxu0 %v5267_v62  ;;  %5080 = vmatprep.subr.bf16.mxu1 %v5079_v9  ;;  %v3465_v62 = vld [vmem:[%s6729_s3 + $0x408] sm:$0xff] }
 0x1aa   : > { %4311 = vmatmul.mubr.f32.gmra.mrb[10].mxu1 %v6100_v45  ;;  %5272 = vmatprep.subr.bf16.mxu0 %v5271_v12  ;;  %v5107_v5 = vpack.c.bf16 %v3465_v62, %v3464_v60 }
 0x1ab   : > { %4707 = vmatmul.mubr.f32.gmra.mrb[18].mxu0 %v5841_v42  ;;  %4313 = vmatprep.mubr.f32.mxu1 %v6110_v50  ;;  %v5279_v42 = vpack.c.bf16 %v3575_v21, %v3574_v20  ;;  %v6452_v20 = vld [vmem:[#allocation2 + $0x41] sm:$0xff] }
 0x1ac   : > { %5082 = vmatpush3.bf16.msra.mxu1 %v5079_v9  ;;  %4709 = vmatprep.mubr.f32.mxu0 %v5867_v55  ;;  %v3466_v9 = vld [vmem:[%s6729_s3 + $0x410] sm:$0xff]  ;;  %v3588_v21 = vld [vmem:[%s6729_s3 + $0x7a0] sm:$0xff] }
 0x1ad   : > { %5274 = vmatpush3.bf16.msra.mxu0 %v5271_v12  ;;  %5084 = vmatprep.subr.bf16.mxu1 %v5083_v17  ;;  %v3467_v12 = vld [vmem:[%s6729_s3 + $0x418] sm:$0xff] }
 0x1ae   : > { %4314 = vmatmul.mubr.f32.gmra.mrb[12].mxu1 %v6120_v58  ;;  %5276 = vmatprep.subr.bf16.mxu0 %v5275_v32  ;;  %v5111_v16 = vpack.c.bf16 %v3467_v12, %v3466_v9  ;;  %v5135_v9 = vpack.c.bf16 %v3479_v4, %v3478_v1  ;;  %v3525_v4 = vld [vmem:[%s6729_s3 + $0x5e8] sm:$0xff] }
 0x1af   : > { %4710 = vmatmul.mubr.f32.gmra.mrb[20].mxu0 %v5865_v54  ;;  %4316 = vmatprep.mubr.f32.mxu1 %v6130_v63  ;;  %v5283_v54 = vpack.c.bf16 %v3577_v27, %v3576_v24  ;;  %v3470_v24 = vld [vmem:[%s6729_s3 + $0x430] sm:$0xff]  ;;  %v3471_v27 = vld [vmem:[%s6729_s3 + $0x438] sm:$0xff] }
 0x1b0   : > { %5086 = vmatpush3.bf16.msra.mxu1 %v5083_v17  ;;  %4712 = vmatprep.mubr.f32.mxu0 %v5891_v3  ;;  %v6442_v17 = vld [vmem:[#allocation2 + $0x31] sm:$0xff]  ;;  %v5119_v30 = vpack.c.bf16 %v3471_v27, %v3470_v24 }
 0x1b1   : > { %5278 = vmatpush3.bf16.msra.mxu0 %v5275_v32  ;;  %5088 = vmatprep.subr.bf16.mxu1 %v5087_v7  ;;  %v5303_v32 = vpack.c.bf16 %v3587_v15, %v3586_v14  ;;  %v3496_v14 = vld [vmem:[%s6729_s3 + $0x500] sm:$0xff]  ;;  %v3497_v15 = vld [vmem:[%s6729_s3 + $0x508] sm:$0xff]  ;;  %v3511_v24 = vld [vmem:[%s6729_s3 + $0x578] sm:$0xff] }
 0x1b2   : > { %4317 = vmatmul.mubr.f32.gmra.mrb[14].mxu1 %v6140_v6  ;;  %5280 = vmatprep.subr.bf16.mxu0 %v5279_v42 }
 0x1b3   : > { %4713 = vmatmul.mubr.f32.gmra.mrb[22].mxu0 %v5889_v2  ;;  %4483 = vmatprep.mubr.f32.mxu1 %v5821_v34  ;;  %v3492_v34 = vld [vmem:[%s6729_s3 + $0x4e0] sm:$0xff] }
 0x1b4   : > { %5090 = vmatpush3.bf16.msra.mxu1 %v5087_v7  ;;  %4747 = vmatprep.mubr.f32.mxu0 %v6385_v31  ;;  %v5099_v44 = vpack.c.bf16 %v3493_v38, %v3492_v34  ;;  %v3589_v7 = vld [vmem:[%s6729_s3 + $0x7a8] sm:$0xff]  ;;  %v3592_v38 = vld [vmem:[%s6729_s3 + $0x7c0] sm:$0xff] }
 0x1b5   : > { %5282 = vmatpush3.bf16.msra.mxu0 %v5279_v42  ;;  %5092 = vmatprep.subr.bf16.mxu1 %v5091_v28  ;;  %v5115_v42 = vpack.c.bf16 %v3469_v19, %v3468_v18  ;;  %v6490_v34 = vld [vmem:[#allocation2 + $0x81] sm:$0xff] }
 0x1b6   : > { %5284 = vmatprep.subr.bf16.mxu0 %v5283_v54  ;;  %v3500_v19 = vld [vmem:[%s6729_s3 + $0x520] sm:$0xff] }
 0x1b8   : > { %5094 = vmatpush3.bf16.msra.mxu1 %v5091_v28  ;;  %v6471_v28 = vld [vmem:[#allocation2 + $0x61] sm:$0xff] }
 0x1b9   : > { %5286 = vmatpush3.bf16.msra.mxu0 %v5283_v54  ;;  %5096 = vmatprep.subr.bf16.mxu1 %v5095_v37  ;;  %v3590_v54 = vld [vmem:[%s6729_s3 + $0x7b0] sm:$0xff] }
 0x1ba   : > { %5288 = vmatprep.subr.bf16.mxu0 %v5287_v25 }
 0x1bc   : > { %5098 = vmatpush3.bf16.msra.mxu1 %v5095_v37  ;;  %v3472_v37 = vld [vmem:[%s6729_s3 + $0x440] sm:$0xff] }
 0x1bd   : > { %5290 = vmatpush3.bf16.msra.mxu0 %v5287_v25  ;;  %5100 = vmatprep.subr.bf16.mxu1 %v5099_v44  ;;  %v3473_v25 = vld [vmem:[%s6729_s3 + $0x448] sm:$0xff] }
 0x1be   : > { %5292 = vmatprep.subr.bf16.mxu0 %v5291_v48 }
 0x1c0   : > { %5102 = vmatpush3.bf16.msra.mxu1 %v5099_v44  ;;  %v5123_v44 = vpack.c.bf16 %v3473_v25, %v3472_v37  ;;  %v973_v25 = vld [vmem:[#allocation2 + $0x30] sm:$0xff] }
 0x1c1   : > { %5294 = vmatpush3.bf16.msra.mxu0 %v5291_v48  ;;  %5104 = vmatprep.subr.bf16.mxu1 %v5103_v57  ;;  %v3474_v48 = vld [vmem:[%s6729_s3 + $0x450] sm:$0xff] }
 0x1c2   : > { %5296 = vmatprep.subr.bf16.mxu0 %v5295_v59  ;;  %v5127_v52 = vpack.c.bf16 %v3475_v49, %v3474_v48  ;;  %v975_v48 = vld [vmem:[#allocation2 + $0x50] sm:$0xff] }
 0x1c3   : > { %v3518_v49 = vld [vmem:[%s6729_s3 + $0x5b0] sm:$0xff] }
 0x1c4   : > { %5106 = vmatpush3.bf16.msra.mxu1 %v5103_v57  ;;  %v3477_v57 = vld [vmem:[%s6729_s3 + $0x468] sm:$0xff] }
 0x1c5   : > { %5298 = vmatpush3.bf16.msra.mxu0 %v5295_v59  ;;  %5108 = vmatprep.subr.bf16.mxu1 %v5107_v5  ;;  %v3596_v59 = vld [vmem:[%s6729_s3 + $0x7e0] sm:$0xff] }
 0x1c6   : > { %5300 = vmatprep.subr.bf16.mxu0 %v5299_v8 }
 0x1c7   : > { %4484 = vmatmul.mubr.f32.vlgmr.msra.gmra.mrb[16].mxu1 %v5461_v10  ;;  %v3498_v10 = vld [vmem:[%s6729_s3 + $0x510] sm:$0xff] }
 0x1c8   : > { %4748 = vmatmul.mubr.f32.vlgmr.msra.gmra.mrb[16].mxu0 %v6442_v17  ;;  %4486 = vmatprep.mubr.f32.mxu1 %v5843_v43  ;;  %v5307_v43 = vpack.c.bf16 %v3589_v7, %v3588_v21  ;;  %v3501_v21 = vld [vmem:[%s6729_s3 + $0x528] sm:$0xff] }
 0x1c9   : > { %5110 = vmatpush3.bf16.msra.mxu1 %v5107_v5  ;;  %4750 = vmatprep.mubr.f32.mxu0 %v6452_v20  ;;  %v3598_v5 = vld [vmem:[%s6729_s3 + $0x7f0] sm:$0xff]  ;;  %v5147_v7 = vpack.c.bf16 %v3501_v21, %v3500_v19 }
 0x1ca   : > { %5302 = vmatpush3.bf16.msra.mxu0 %v5299_v8  ;;  %5112 = vmatprep.subr.bf16.mxu1 %v5111_v16  ;;  %v3599_v8 = vld [vmem:[%s6729_s3 + $0x7f8] sm:$0xff] }
 0x1cb   : > { %4487 = vmatmul.mubr.f32.gmra.mrb[18].mxu1 %v5462_v22  ;;  %5304 = vmatprep.subr.bf16.mxu0 %v5303_v32  ;;  %v5327_v12 = vpack.c.bf16 %v3599_v8, %v3598_v5  ;;  %v3526_v8 = vld [vmem:[%s6729_s3 + $0x5f0] sm:$0xff] }
 0x1cc   : > { %4751 = vmatmul.mubr.f32.gmra.mrb[18].mxu0 %v6461_v23  ;;  %4489 = vmatprep.mubr.f32.mxu1 %v5867_v55  ;;  %v5311_v55 = vpack.c.bf16 %v3591_v29, %v3590_v54  ;;  %v3512_v54 = vld [vmem:[%s6729_s3 + $0x580] sm:$0xff]  ;;  %v3513_v29 = vld [vmem:[%s6729_s3 + $0x588] sm:$0xff] }
 0x1cd   : > { %5114 = vmatpush3.bf16.msra.mxu1 %v5111_v16  ;;  %4753 = vmatprep.mubr.f32.mxu0 %v6471_v28  ;;  %v5139_v16 = vpack.c.bf16 %v3497_v15, %v3496_v14 }
 0x1ce   : > { %5306 = vmatpush3.bf16.msra.mxu0 %v5303_v32  ;;  %5116 = vmatprep.subr.bf16.mxu1 %v5115_v42  ;;  %v3499_v32 = vld [vmem:[%s6729_s3 + $0x518] sm:$0xff] }
 0x1cf   : > { %4490 = vmatmul.mubr.f32.gmra.mrb[20].mxu1 %v5463_v35  ;;  %5308 = vmatprep.subr.bf16.mxu0 %v5307_v43  ;;  %v5143_v18 = vpack.c.bf16 %v3499_v32, %v3498_v10  ;;  %v3514_v35 = vld [vmem:[%s6729_s3 + $0x590] sm:$0xff] }
 0x1d0   : > { %4754 = vmatmul.mubr.f32.gmra.mrb[20].mxu0 %v6480_v36  ;;  %4492 = vmatprep.mubr.f32.mxu1 %v5891_v3  ;;  %v5315_v3 = vpack.c.bf16 %v3593_v40, %v3592_v38  ;;  %v3516_v38 = vld [vmem:[%s6729_s3 + $0x5a0] sm:$0xff]  ;;  %v3517_v40 = vld [vmem:[%s6729_s3 + $0x5a8] sm:$0xff] }
 0x1d1   : > { %5118 = vmatpush3.bf16.msra.mxu1 %v5115_v42  ;;  %4756 = vmatprep.mubr.f32.mxu0 %v6490_v34  ;;  %v3503_v42 = vld [vmem:[%s6729_s3 + $0x538] sm:$0xff] }
 0x1d2   : > { %5310 = vmatpush3.bf16.msra.mxu0 %v5307_v43  ;;  %5120 = vmatprep.subr.bf16.mxu1 %v5119_v30  ;;  %v3510_v43 = vld [vmem:[%s6729_s3 + $0x570] sm:$0xff] }
 0x1d3   : > { %4493 = vmatmul.mubr.f32.gmra.mrb[22].mxu1 %v5889_v2  ;;  %5312 = vmatprep.subr.bf16.mxu0 %v5311_v55  ;;  %v3595_v2 = vld [vmem:[%s6729_s3 + $0x7d8] sm:$0xff]  ;;  %v5167_v27 = vpack.c.bf16 %v3511_v24, %v3510_v43 }
 0x1d4   : > { %4757 = vmatmul.mubr.f32.gmra.mrb[22].mxu0 %v6499_v33  ;;  %4527 = vmatprep.mubr.f32.mxu1 %v5961_v26  ;;  %v5319_v53 = vpack.c.bf16 %v3595_v2, %v3594_v46  ;;  %v3476_v26 = vld [vmem:[%s6729_s3 + $0x460] sm:$0xff]  ;;  %v3519_v46 = vld [vmem:[%s6729_s3 + $0x5b8] sm:$0xff] }
 0x1d5   : > { %5122 = vmatpush3.bf16.msra.mxu1 %v5119_v30  ;;  %4791 = vmatprep.mubr.f32.mxu0 %v6090_v39  ;;  %v3597_v39 = vld [vmem:[%s6729_s3 + $0x7e8] sm:$0xff]  ;;  %v5131_v60 = vpack.c.bf16 %v3477_v57, %v3476_v26  ;;  %v5171_v30 = vpack.c.bf16 %v3513_v29, %v3512_v54  ;;  %v976_v2 = vld [vmem:[#allocation2 + $0x60] sm:$0xff] }
 0x1d6   : > { %5314 = vmatpush3.bf16.msra.mxu0 %v5311_v55  ;;  %5124 = vmatprep.subr.bf16.mxu1 %v5123_v44  ;;  %v5323_v62 = vpack.c.bf16 %v3597_v39, %v3596_v59  ;;  %v3515_v55 = vld [vmem:[%s6729_s3 + $0x598] sm:$0xff]  ;;  %v3520_v26 = vld [vmem:[%s6729_s3 + $0x5c0] sm:$0xff]  ;;  %v3521_v57 = vld [vmem:[%s6729_s3 + $0x5c8] sm:$0xff] }
 0x1d7   : > { %5316 = vmatprep.subr.bf16.mxu0 %v5315_v3  ;;  %v5175_v37 = vpack.c.bf16 %v3515_v55, %v3514_v35  ;;  %v5187_v59 = vpack.c.bf16 %v3521_v57, %v3520_v26  ;;  %v3522_v39 = vld [vmem:[%s6729_s3 + $0x5d0] sm:$0xff] }
 0x1d9   : > { %5126 = vmatpush3.bf16.msra.mxu1 %v5123_v44  ;;  %v974_v44 = vld [vmem:[#allocation2 + $0x40] sm:$0xff] }
 0x1da   : > { %5318 = vmatpush3.bf16.msra.mxu0 %v5315_v3  ;;  %5128 = vmatprep.subr.bf16.mxu1 %v5127_v52  ;;  %v5179_v3 = vpack.c.bf16 %v3517_v40, %v3516_v38 }
 0x1db   : > { %5320 = vmatprep.subr.bf16.mxu0 %v5319_v53 }
 0x1dd   : > { %5130 = vmatpush3.bf16.msra.mxu1 %v5127_v52  ;;  %v5183_v52 = vpack.c.bf16 %v3519_v46, %v3518_v49 }
 0x1de   : > { %5322 = vmatpush3.bf16.msra.mxu0 %v5319_v53  ;;  %5132 = vmatprep.subr.bf16.mxu1 %v5131_v60  ;;  %v977_v53 = vld [vmem:[#allocation2 + $0x70] sm:$0xff] }
 0x1df   : > { %5324 = vmatprep.subr.bf16.mxu0 %v5323_v62 }
 0x1e1   : > { %5134 = vmatpush3.bf16.msra.mxu1 %v5131_v60  ;;  %v3523_v60 = vld [vmem:[%s6729_s3 + $0x5d8] sm:$0xff] }
 0x1e2   : > { %5326 = vmatpush3.bf16.msra.mxu0 %v5323_v62  ;;  %5136 = vmatprep.subr.bf16.mxu1 %v5135_v9  ;;  %v5464_v62 = vld [vmem:[#allocation2] sm:$0xff]  ;;  %v5191_v1 = vpack.c.bf16 %v3523_v60, %v3522_v39 }
 0x1e3   : > { %5328 = vmatprep.subr.bf16.mxu0 %v5327_v12 }
 0x1e5   : > { %5138 = vmatpush3.bf16.msra.mxu1 %v5135_v9 }
 0x1e6   : > { %5330 = vmatpush3.bf16.msra.mxu0 %v5327_v12  ;;  %5140 = vmatprep.subr.bf16.mxu1 %v5139_v16 }
 0x1e8   : > { %4528 = vmatmul.mubr.f32.vlgmr.msra.gmra.mrb[16].mxu1 %v5971_v41  ;;  %v3502_v41 = vld [vmem:[%s6729_s3 + $0x530] sm:$0xff] }
 0x1e9   : > { %4792 = vmatmul.mubr.f32.vlgmr.msra.gmra.mrb[16].mxu0 %v6100_v45  ;;  %4530 = vmatprep.mubr.f32.mxu1 %v5981_v47  ;;  %v5151_v47 = vpack.c.bf16 %v3503_v42, %v3502_v41  ;;  %v3505_v45 = vld [vmem:[%s6729_s3 + $0x548] sm:$0xff] }
 0x1ea   : > { %5142 = vmatpush3.bf16.msra.mxu1 %v5139_v16  ;;  %4794 = vmatprep.mubr.f32.mxu0 %v6110_v50 }
 0x1eb   : > { %5144 = vmatprep.subr.bf16.mxu1 %v5143_v18 }
 0x1ec   : > { %4531 = vmatmul.mubr.f32.gmra.mrb[18].mxu1 %v5991_v51  ;;  %v3504_v51 = vld [vmem:[%s6729_s3 + $0x540] sm:$0xff] }
 0x1ed   : > { %4795 = vmatmul.mubr.f32.gmra.mrb[18].mxu0 %v6120_v58  ;;  %4533 = vmatprep.mubr.f32.mxu1 %v6001_v56  ;;  %v995_v56 = vld [vmem:[#allocation2 + $0x92] sm:$0xff]  ;;  %v5155_v50 = vpack.c.bf16 %v3505_v45, %v3504_v51 }
 0x1ee   : > { %5146 = vmatpush3.bf16.msra.mxu1 %v5143_v18  ;;  %4797 = vmatprep.mubr.f32.mxu0 %v6130_v63  ;;  %v3506_v58 = vld [vmem:[%s6729_s3 + $0x550] sm:$0xff]  ;;  %v3507_v63 = vld [vmem:[%s6729_s3 + $0x558] sm:$0xff] }
 0x1ef   : > { %5148 = vmatprep.subr.bf16.mxu1 %v5147_v7 }
 0x1f0   : > { %4534 = vmatmul.mubr.f32.gmra.mrb[20].mxu1 %v6011_v61  ;;  %v972_v61 = vld [vmem:[#allocation2 + $0x20] sm:$0xff] }
 0x1f1   : > { %4798 = vmatmul.mubr.f32.gmra.mrb[20].mxu0 %v6140_v6  ;;  %4536 = vmatprep.mubr.f32.mxu1 %v6021_v0  ;;  %v5159_v0 = vpack.c.bf16 %v3507_v63, %v3506_v58  ;;  %v3508_v6 = vld [vmem:[%s6729_s3 + $0x560] sm:$0xff] }
 0x1f2   : > { %5150 = vmatpush3.bf16.msra.mxu1 %v5147_v7  ;;  %4800 = vmatprep.mubr.f32.mxu0 %v6152_v13  ;;  %v3509_v13 = vld [vmem:[%s6729_s3 + $0x568] sm:$0xff] }
 0x1f3   : > { %5152 = vmatprep.subr.bf16.mxu1 %v5151_v47  ;;  %v5163_v22 = vpack.c.bf16 %v3509_v13, %v3508_v6 }
 0x1f4   : > { %4537 = vmatmul.mubr.f32.gmra.mrb[22].mxu1 %v6149_v11 }
 0x1f5   : > { %4801 = vmatmul.mubr.f32.gmra.mrb[22].mxu0 %v995_v56  ;;  %4571 = vmatprep.mubr.f32.mxu1 %v972_v61 }
 0x1f6   : > { %5154 = vmatpush3.bf16.msra.mxu1 %v5151_v47 }
 0x1f7   : > { %5156 = vmatprep.subr.bf16.mxu1 %v5155_v50 }
 0x1fa   : > { %5158 = vmatpush3.bf16.msra.mxu1 %v5155_v50 }
 0x1fb   : > { %5160 = vmatprep.subr.bf16.mxu1 %v5159_v0 }
 0x1fe   : > { %5162 = vmatpush3.bf16.msra.mxu1 %v5159_v0 }
 0x1ff   : > { %5164 = vmatprep.subr.bf16.mxu1 %v5163_v22 }
 0x202   : > { %5166 = vmatpush3.bf16.msra.mxu1 %v5163_v22 }
 0x203   : > { %5168 = vmatprep.subr.bf16.mxu1 %v5167_v27 }
 0x206   : > { %5170 = vmatpush3.bf16.msra.mxu1 %v5167_v27 }
 0x207   : > { %5172 = vmatprep.subr.bf16.mxu1 %v5171_v30 }
 0x209   : > { %4572 = vmatmul.mubr.f32.vlgmr.msra.gmra.mrb[16].mxu1 %v973_v25 }
 0x20a   : > { %4574 = vmatprep.mubr.f32.mxu1 %v974_v44  ;;  %5174 = vmatpush3.bf16.msra.mxu1 %v5171_v30 }
 0x20b   : > { %5176 = vmatprep.subr.bf16.mxu1 %v5175_v37 }
 0x20d   : > { %4575 = vmatmul.mubr.f32.gmra.mrb[18].mxu1 %v975_v48 }
 0x20e   : > { %4577 = vmatprep.mubr.f32.mxu1 %v976_v2  ;;  %5178 = vmatpush3.bf16.msra.mxu1 %v5175_v37 }
 0x20f   : > { %5180 = vmatprep.subr.bf16.mxu1 %v5179_v3 }
 0x211   : > { %4578 = vmatmul.mubr.f32.gmra.mrb[20].mxu1 %v977_v53 }
 0x212   : > { %4580 = vmatprep.mubr.f32.mxu1 %v6149_v11  ;;  %5182 = vmatpush3.bf16.msra.mxu1 %v5179_v3  ;;  %v3524_v11 = vld [vmem:[%s6729_s3 + $0x5e0] sm:$0xff] }
 0x213   : > { %5184 = vmatprep.subr.bf16.mxu1 %v5183_v52  ;;  %v5195_v5 = vpack.c.bf16 %v3525_v4, %v3524_v11 }
 0x215   : > { %4581 = vmatmul.mubr.f32.gmra.mrb[22].mxu1 %v5464_v62 }
 0x216   : > { %5186 = vmatpush3.bf16.msra.mxu1 %v5183_v52  ;;  %4615 = vmatprep.mubr.f32.mxu1 %v6385_v31  ;;  %v3527_v31 = vld [vmem:[%s6729_s3 + $0x5f8] sm:$0xff] }
 0x217   : > { %5188 = vmatprep.subr.bf16.mxu1 %v5187_v59  ;;  %v5199_v9 = vpack.c.bf16 %v3527_v31, %v3526_v8 }
 0x21a   : > { %5190 = vmatpush3.bf16.msra.mxu1 %v5187_v59 }
 0x21b   : > { %5192 = vmatprep.subr.bf16.mxu1 %v5191_v1 }
 0x21e   : > { %5194 = vmatpush3.bf16.msra.mxu1 %v5191_v1 }
 0x21f   : > { %5196 = vmatprep.subr.bf16.mxu1 %v5195_v5 }
 0x222   : > { %5198 = vmatpush3.bf16.msra.mxu1 %v5195_v5 }
 0x223   : > { %5200 = vmatprep.subr.bf16.mxu1 %v5199_v9 }
 0x226   : > { %5202 = vmatpush3.bf16.msra.mxu1 %v5199_v9 }
 0x229   : > { %4616 = vmatmul.mubr.f32.vlgmr.msra.gmra.mrb[16].mxu1 %v6442_v17 }
 0x22a   : > { %4618 = vmatprep.mubr.f32.mxu1 %v6452_v20 }
 0x22d   : > { %4619 = vmatmul.mubr.f32.gmra.mrb[18].mxu1 %v6461_v23 }
 0x22e   : > { %4621 = vmatprep.mubr.f32.mxu1 %v6471_v28 }
 0x231   : > { %4622 = vmatmul.mubr.f32.gmra.mrb[20].mxu1 %v6480_v36 }
 0x232   : > { %4624 = vmatprep.mubr.f32.mxu1 %v6490_v34 }
 0x235   : > { %4625 = vmatmul.mubr.f32.gmra.mrb[22].mxu1 %v6499_v33 }
 0x238   : > { %v4441_v12 = vpop.f32.mrb[8].mxu0 }
 0x239   : > { %v2000_v14 = vpop.f32.mrb[9].mxu0 }
 0x23c   : > { %v4444_v15 = vpop.f32.mrb[10].mxu0 }
 0x23d   : > { %v2010_v16 = vpop.f32.mrb[11].mxu0 }
 0x240   : > { %v6659_v10 = vpop.f32.mrb[12].mxu0 }
 0x241   : > { %v6661_v32 = vpop.f32.mrb[13].mxu0 }
 0x244   : > { %v6663_v17 = vpop.f32.mrb[14].mxu0 }
 0x245   : > { %v6665_v20 = vpop.f32.mrb[15].mxu0 }
 0x258   : > { %v4265_v23 = vpop.f32.mrb[0].mxu1 }
 0x259   : > { %1500 = vst [vmem:[%s6671_s8 + $0x8] sm:$0xff] %v4265_v23  ;;  %v1522_v28 = vmul.f32 %v4265_v23, %v4265_v23  ;;  %v1452_v36 = vpop.f32.mrb[1].mxu1 }
 0x25a   : > { %1499 = vst [vmem:[%s6671_s8] sm:$0xff] %v1452_v36  ;;  %v1507_v34 = vadd.f32 %v4265_v23, %v1452_v36  ;;  %v1521_v33 = vmul.f32 %v1452_v36, %v1452_v36 }
 0x25c   : > { %v1529_v18 = vadd.f32 %v1522_v28, %v1521_v33  ;;  %v4268_v19 = vpop.f32.mrb[2].mxu1 }
 0x25d   : > { %1502 = vst [vmem:[%s6671_s8 + $0x18] sm:$0xff] %v4268_v19  ;;  %v1462_v21 = vpop.f32.mrb[3].mxu1  ;;  %v1524_v42 = vmul.f32 %v4268_v19, %v4268_v19 }
 0x25e   : > { %1501 = vst [vmem:[%s6671_s8 + $0x10] sm:$0xff] %v1462_v21  ;;  %v1508_v7 = vadd.f32 %v1507_v34, %v1462_v21  ;;  %v1523_v41 = vmul.f32 %v1462_v21, %v1462_v21 }
 0x260   : > { %v1530_v47 = vadd.f32 %v1529_v18, %v1523_v41  ;;  %v4271_v51 = vpop.f32.mrb[4].mxu1  ;;  %v1509_v45 = vadd.f32 %v4268_v19, %v1508_v7 }
 0x261   : > { %1504 = vst [vmem:[%s6671_s8 + $0x28] sm:$0xff] %v4271_v51  ;;  %v1472_v56 = vpop.f32.mrb[5].mxu1  ;;  %v1526_v63 = vmul.f32 %v4271_v51, %v4271_v51 }
 0x262   : > { %1503 = vst [vmem:[%s6671_s8 + $0x20] sm:$0xff] %v1472_v56  ;;  %v1510_v50 = vadd.f32 %v1509_v45, %v1472_v56  ;;  %v1525_v61 = vmul.f32 %v1472_v56, %v1472_v56  ;;  %v1531_v58 = vadd.f32 %v1530_v47, %v1524_v42 }
 0x264   : > { %v1532_v0 = vadd.f32 %v1531_v58, %v1525_v61  ;;  %v4274_v6 = vpop.f32.mrb[6].mxu1  ;;  %v1511_v13 = vadd.f32 %v4271_v51, %v1510_v50 }
 0x265   : > { %1506 = vst [vmem:[%s6671_s8 + $0x38] sm:$0xff] %v4274_v6  ;;  %v1482_v22 = vpop.f32.mrb[7].mxu1  ;;  %v1528_v54 = vmul.f32 %v4274_v6, %v4274_v6 }
 0x266   : > { %1505 = vst [vmem:[%s6671_s8 + $0x30] sm:$0xff] %v1482_v22  ;;  %v1512_v43 = vadd.f32 %v1511_v13, %v1482_v22  ;;  %v1527_v24 = vmul.f32 %v1482_v22, %v1482_v22  ;;  %v1533_v27 = vadd.f32 %v1532_v0, %v1526_v63 }
 0x268   : > { %v1513_v29 = vadd.f32 %v4274_v6, %v1512_v43  ;;  %v1534_v30 = vadd.f32 %v1533_v27, %v1527_v24 }
 0x26a   : > { %v1535_v35 = vadd.f32 %v1534_v30, %v1528_v54  ;;  %v1514_v59 = vrot.slane %v1513_v29, 4 }
 0x26c   : > { %v1536_v5 = vrot.slane %v1535_v35, 4 }
 0x279   : > { %v4309_v55 = vpop.f32.mrb[8].mxu1 }
 0x27a   : > { %v5331_v37 = vadd.f32 %v4441_v12, %v4309_v55  ;;  %v1643_v25 = vpop.f32.mrb[9].mxu1 }
 0x27b   : > { %v5332_v38 = vadd.f32 %v2000_v14, %v1643_v25  ;;  %v1515_v14 = vadd.f32 %v1514_v59, %v1513_v29 }
 0x27c   : > { %3457 = vst [vmem:[%s6671_s8 + $0x48] sm:$0xff] %v5331_v37  ;;  %v2071_v40 = vmul.f32 %v5331_v37, %v5331_v37 }
 0x27d   : > { %3456 = vst [vmem:[%s6671_s8 + $0x40] sm:$0xff] %v5332_v38  ;;  %v2056_v44 = vadd.f32 %v5332_v38, %v5331_v37  ;;  %v2070_v3 = vmul.f32 %v5332_v38, %v5332_v38  ;;  %v4312_v48 = vpop.f32.mrb[10].mxu1  ;;  %v1516_v19 = vrot.slane %v1515_v14, 2 }
 0x27e   : > { %v5333_v49 = vadd.f32 %v4444_v15, %v4312_v48  ;;  %v1653_v46 = vpop.f32.mrb[11].mxu1 }
 0x27f   : > { %v2078_v2 = vadd.f32 %v2071_v40, %v2070_v3  ;;  %v5334_v52 = vadd.f32 %v2010_v16, %v1653_v46 }
 0x280   : > { %3459 = vst [vmem:[%s6671_s8 + $0x58] sm:$0xff] %v5333_v49  ;;  %v2073_v62 = vmul.f32 %v5333_v49, %v5333_v49 }
 0x281   : > { %3458 = vst [vmem:[%s6671_s8 + $0x50] sm:$0xff] %v5334_v52  ;;  %v2057_v53 = vadd.f32 %v5334_v52, %v2056_v44  ;;  %v2072_v26 = vmul.f32 %v5334_v52, %v5334_v52  ;;  %v4315_v57 = vpop.f32.mrb[12].mxu1 }
 0x282   : > { %v5335_v39 = vadd.f32 %v6659_v10, %v4315_v57  ;;  %v1663_v60 = vpop.f32.mrb[13].mxu1 }
 0x283   : > { %v2079_v1 = vadd.f32 %v2078_v2, %v2072_v26  ;;  %v5336_v11 = vadd.f32 %v6661_v32, %v1663_v60  ;;  %v2058_v4 = vadd.f32 %v5333_v49, %v2057_v53  ;;  %v1537_v32 = vadd.f32 %v1536_v5, %v1535_v35 }
 0x284   : > { %3461 = vst [vmem:[%s6671_s8 + $0x68] sm:$0xff] %v5335_v39  ;;  %v2075_v10 = vmul.f32 %v5335_v39, %v5335_v39 }
 0x285   : > { %3460 = vst [vmem:[%s6671_s8 + $0x60] sm:$0xff] %v5336_v11  ;;  %v2059_v8 = vadd.f32 %v5336_v11, %v2058_v4  ;;  %v2074_v31 = vmul.f32 %v5336_v11, %v5336_v11  ;;  %v2080_v9 = vadd.f32 %v2079_v1, %v2073_v62  ;;  %v4318_v12 = vpop.f32.mrb[14].mxu1  ;;  %v1538_v42 = vrot.slane %v1537_v32, 2 }
 0x286   : > { %v5337_v15 = vadd.f32 %v6663_v17, %v4318_v12  ;;  %v1673_v16 = vpop.f32.mrb[15].mxu1  ;;  %v1517_v17 = vadd.f32 %v1516_v19, %v1515_v14 }
 0x287   : > { %v2081_v23 = vadd.f32 %v2080_v9, %v2074_v31  ;;  %v5338_v28 = vadd.f32 %v6665_v20, %v1673_v16  ;;  %v2060_v36 = vadd.f32 %v5335_v39, %v2059_v8  ;;  %v1539_v50 = vadd.f32 %v1538_v42, %v1537_v32 }
 0x288   : > { %3463 = vst [vmem:[%s6671_s8 + $0x78] sm:$0xff] %v5337_v15  ;;  %v2077_v21 = vmul.f32 %v5337_v15, %v5337_v15  ;;  %v1518_v58 = vrot.slane %v1517_v17, 1 }
 0x289   : > { %3462 = vst [vmem:[%s6671_s8 + $0x70] sm:$0xff] %v5338_v28  ;;  %v2061_v34 = vadd.f32 %v5338_v28, %v2060_v36  ;;  %v2076_v33 = vmul.f32 %v5338_v28, %v5338_v28  ;;  %v2082_v18 = vadd.f32 %v2081_v23, %v2075_v10  ;;  %v1540_v6 = vrot.slane %v1539_v50, 1 }
 0x28a   : > { %v1519_v43 = vadd.f32 %v1518_v58, %v1517_v17 }
 0x28b   : > { %v2062_v7 = vadd.f32 %v5337_v15, %v2061_v34  ;;  %v2083_v41 = vadd.f32 %v2082_v18, %v2076_v33  ;;  %v1541_v54 = vadd.f32 %v1540_v6, %v1539_v50 }
 0x28d   : > { %v2063_v47 = vrot.slane %v2062_v7, 4  ;;  %v2084_v51 = vadd.f32 %v2083_v41, %v2077_v21 }
 0x28f   : > { %v2064_v45 = vadd.f32 %v2063_v47, %v2062_v7  ;;  %v2085_v56 = vrot.slane %v2084_v51, 4 }
 0x291   : > { %v2065_v61 = vrot.slane %v2064_v45, 2  ;;  %v2086_v20 = vadd.f32 %v2085_v56, %v2084_v51 }
 0x293   : > { %v2066_v63 = vadd.f32 %v2065_v61, %v2064_v45  ;;  %v2087_v0 = vrot.slane %v2086_v20, 2 }
 0x295   : > { %v2067_v13 = vrot.slane %v2066_v63, 1  ;;  %v2088_v22 = vadd.f32 %v2087_v0, %v2086_v20 }
 0x297   : > { %v2068_v24 = vadd.f32 %v2067_v13, %v2066_v63  ;;  %v2089_v27 = vrot.slane %v2088_v22, 1 }
 0x299   : > { %v2090_v29 = vadd.f32 %v2089_v27, %v2088_v22  ;;  %v6693_v30 = vadd.f32 %v2068_v24, %v1519_v43 }
 0x29b   : > { %v6695_v35 = vadd.f32 %v2090_v29, %v1541_v54 }
 0x2bc   : > { %v4793_v55 = vpop.f32.mrb[16].mxu0 }
 0x2bd   : > { %3601 = vst [vmem:[%s6671_s8 + $0xc8] sm:$0xff] %v4793_v55  ;;  %v3169_v37 = vmul.f32 %v4793_v55, %v4793_v55  ;;  %v3098_v25 = vpop.f32.mrb[17].mxu0 }
 0x2be   : > { %3600 = vst [vmem:[%s6671_s8 + $0xc0] sm:$0xff] %v3098_v25  ;;  %v3154_v38 = vadd.f32 %v4793_v55, %v3098_v25  ;;  %v3168_v40 = vmul.f32 %v3098_v25, %v3098_v25 }
 0x2c0   : > { %v3176_v44 = vadd.f32 %v3169_v37, %v3168_v40  ;;  %v4796_v3 = vpop.f32.mrb[18].mxu0 }
 0x2c1   : > { %3603 = vst [vmem:[%s6671_s8 + $0xd8] sm:$0xff] %v4796_v3  ;;  %v3108_v48 = vpop.f32.mrb[19].mxu0  ;;  %v3171_v2 = vmul.f32 %v4796_v3, %v4796_v3 }
 0x2c2   : > { %3602 = vst [vmem:[%s6671_s8 + $0xd0] sm:$0xff] %v3108_v48  ;;  %v3155_v49 = vadd.f32 %v3154_v38, %v3108_v48  ;;  %v3170_v46 = vmul.f32 %v3108_v48, %v3108_v48 }
 0x2c4   : > { %v3177_v52 = vadd.f32 %v3176_v44, %v3170_v46  ;;  %v4799_v53 = vpop.f32.mrb[20].mxu0  ;;  %v3156_v26 = vadd.f32 %v4796_v3, %v3155_v49 }
 0x2c5   : > { %3605 = vst [vmem:[%s6671_s8 + $0xe8] sm:$0xff] %v4799_v53  ;;  %v3118_v57 = vpop.f32.mrb[21].mxu0  ;;  %v3173_v62 = vmul.f32 %v4799_v53, %v4799_v53 }
 0x2c6   : > { %3604 = vst [vmem:[%s6671_s8 + $0xe0] sm:$0xff] %v3118_v57  ;;  %v3157_v59 = vadd.f32 %v3156_v26, %v3118_v57  ;;  %v3172_v39 = vmul.f32 %v3118_v57, %v3118_v57  ;;  %v3178_v60 = vadd.f32 %v3177_v52, %v3171_v2 }
 0x2c8   : > { %v3179_v1 = vadd.f32 %v3178_v60, %v3172_v39  ;;  %v4802_v11 = vpop.f32.mrb[22].mxu0  ;;  %v3158_v4 = vadd.f32 %v4799_v53, %v3157_v59 }
 0x2c9   : > { %3607 = vst [vmem:[%s6671_s8 + $0xf8] sm:$0xff] %v4802_v11  ;;  %v3128_v5 = vpop.f32.mrb[23].mxu0  ;;  %v3175_v12 = vmul.f32 %v4802_v11, %v4802_v11 }
 0x2ca   : > { %3606 = vst [vmem:[%s6671_s8 + $0xf0] sm:$0xff] %v3128_v5  ;;  %v3159_v8 = vadd.f32 %v3158_v4, %v3128_v5  ;;  %v3174_v31 = vmul.f32 %v3128_v5, %v3128_v5  ;;  %v3180_v9 = vadd.f32 %v3179_v1, %v3173_v62 }
 0x2cc   : > { %v3160_v14 = vadd.f32 %v4802_v11, %v3159_v8  ;;  %v3181_v15 = vadd.f32 %v3180_v9, %v3174_v31 }
 0x2ce   : > { %v3182_v16 = vadd.f32 %v3181_v15, %v3175_v12  ;;  %v3161_v17 = vrot.slane %v3160_v14, 4 }
 0x2d0   : > { %v3183_v61 = vrot.slane %v3182_v16, 4  ;;  %v3162_v13 = vadd.f32 %v3161_v17, %v3160_v14 }
 0x2d2   : > { %v3184_v27 = vadd.f32 %v3183_v61, %v3182_v16  ;;  %v3163_v37 = vrot.slane %v3162_v13, 2 }
 0x2d4   : > { %v3185_v40 = vrot.slane %v3184_v27, 2  ;;  %v3164_v48 = vadd.f32 %v3163_v37, %v3162_v13 }
 0x2d6   : > { %v3186_v2 = vadd.f32 %v3185_v40, %v3184_v27  ;;  %v3165_v26 = vrot.slane %v3164_v48, 1 }
 0x2d8   : > { %v3187_v39 = vrot.slane %v3186_v2, 1  ;;  %v3166_v1 = vadd.f32 %v3165_v26, %v3164_v48 }
 0x2da   : > { %v3188_v5 = vadd.f32 %v3187_v39, %v3186_v2 }
 0x2fc   : > { %v4617_v10 = vpop.f32.mrb[16].mxu1 }
 0x2fd   : > { %3529 = vst [vmem:[%s6671_s8 + $0x88] sm:$0xff] %v4617_v10  ;;  %v2620_v23 = vmul.f32 %v4617_v10, %v4617_v10  ;;  %v2549_v28 = vpop.f32.mrb[17].mxu1 }
 0x2fe   : > { %3528 = vst [vmem:[%s6671_s8 + $0x80] sm:$0xff] %v2549_v28  ;;  %v2605_v36 = vadd.f32 %v4617_v10, %v2549_v28  ;;  %v2619_v32 = vmul.f32 %v2549_v28, %v2549_v28 }
 0x300   : > { %v2627_v34 = vadd.f32 %v2620_v23, %v2619_v32  ;;  %v4620_v33 = vpop.f32.mrb[18].mxu1 }
 0x301   : > { %3531 = vst [vmem:[%s6671_s8 + $0x98] sm:$0xff] %v4620_v33  ;;  %v2559_v18 = vpop.f32.mrb[19].mxu1  ;;  %v2622_v7 = vmul.f32 %v4620_v33, %v4620_v33 }
 0x302   : > { %3530 = vst [vmem:[%s6671_s8 + $0x90] sm:$0xff] %v2559_v18  ;;  %v2606_v19 = vadd.f32 %v2605_v36, %v2559_v18  ;;  %v2621_v21 = vmul.f32 %v2559_v18, %v2559_v18 }
 0x304   : > { %v2628_v41 = vadd.f32 %v2627_v34, %v2621_v21  ;;  %v4623_v42 = vpop.f32.mrb[20].mxu1  ;;  %v2607_v47 = vadd.f32 %v4620_v33, %v2606_v19 }
 0x305   : > { %3533 = vst [vmem:[%s6671_s8 + $0xa8] sm:$0xff] %v4623_v42  ;;  %v2569_v51 = vpop.f32.mrb[21].mxu1  ;;  %v2624_v20 = vmul.f32 %v4623_v42, %v4623_v42 }
 0x306   : > { %3532 = vst [vmem:[%s6671_s8 + $0xa0] sm:$0xff] %v2569_v51  ;;  %v2608_v45 = vadd.f32 %v2607_v47, %v2569_v51  ;;  %v2623_v56 = vmul.f32 %v2569_v51, %v2569_v51  ;;  %v2629_v50 = vadd.f32 %v2628_v41, %v2622_v7 }
 0x308   : > { %v2630_v58 = vadd.f32 %v2629_v50, %v2623_v56  ;;  %v4626_v63 = vpop.f32.mrb[22].mxu1  ;;  %v2609_v0 = vadd.f32 %v4623_v42, %v2608_v45 }
 0x309   : > { %3535 = vst [vmem:[%s6671_s8 + $0xb8] sm:$0xff] %v4626_v63  ;;  %v2579_v6 = vpop.f32.mrb[23].mxu1  ;;  %v2626_v54 = vmul.f32 %v4626_v63, %v4626_v63 }
 0x30a   : > { %3534 = vst [vmem:[%s6671_s8 + $0xb0] sm:$0xff] %v2579_v6  ;;  %v2610_v22 = vadd.f32 %v2609_v0, %v2579_v6  ;;  %v2625_v43 = vmul.f32 %v2579_v6, %v2579_v6  ;;  %v2631_v24 = vadd.f32 %v2630_v58, %v2624_v20 }
 0x30c   : > { %v2611_v29 = vadd.f32 %v4626_v63, %v2610_v22  ;;  %v2632_v55 = vadd.f32 %v2631_v24, %v2625_v43 }
 0x30e   : > { %v2612_v25 = vrot.slane %v2611_v29, 4  ;;  %v2633_v38 = vadd.f32 %v2632_v55, %v2626_v54 }
 0x310   : > { %v2613_v44 = vadd.f32 %v2612_v25, %v2611_v29  ;;  %v2634_v3 = vrot.slane %v2633_v38, 4 }
 0x312   : > { %v2614_v49 = vrot.slane %v2613_v44, 2  ;;  %v2635_v46 = vadd.f32 %v2634_v3, %v2633_v38 }
 0x314   : > { %v2615_v52 = vadd.f32 %v2614_v49, %v2613_v44  ;;  %v2636_v53 = vrot.slane %v2635_v46, 2 }
 0x316   : > { %v2616_v57 = vrot.slane %v2615_v52, 1  ;;  %v2637_v59 = vadd.f32 %v2636_v53, %v2635_v46 }
 0x318   : > { %v2617_v60 = vadd.f32 %v2616_v57, %v2615_v52  ;;  %v2638_v62 = vrot.slane %v2637_v59, 1 }
 0x31a   : > { %v2618_v11 = vadd.f32 %v2617_v60, %v6693_v30  ;;  %v2639_v4 = vadd.f32 %v2638_v62, %v2637_v59 }
 0x31c   : > { %v2640_v8 = vadd.f32 %v2639_v4, %v6695_v35  ;;  %v3167_v31 = vadd.f32 %v3166_v1, %v2618_v11 }
 0x31e   : > { %v3189_v9 = vadd.f32 %v3188_v5, %v2640_v8  ;;  %3190 = vst [vmem:[%s265_s11] sm:$0x1] %v3167_v31 }
 0x320   : > { %3191 = vst [vmem:[%s268_s14] sm:$0x1] %v3189_v9 }
 0x321 PF: > { %s17_s21 = sadd.s32 1, %s5471_s21  }
 0x322   : > { %p14_p4 = scmp.ge.s32.totalorder %s17_s21, 4  }
 0x324   :  { %16 = sbr.rel (!%p14_p4) target bundleno = 1 (0x1), region = 113 }

</bundles_post_ra>
